<compile_context>
chip_gen: v6e
topology: v6e:2x2x1
jax: 0.10.0
libtpu: 0.0.40
codegen_flags: <defaults>
</compile_context>

<pallas_src>
import functools

import numpy as np
import jax
import jax.numpy as jnp
from jax.experimental import pallas as pl
from jax.experimental.pallas import tpu as pltpu

BN_EPS = 1e-5
BN_SCALE = float(1.0 / np.sqrt(1.0 + BN_EPS))  # eval-mode BatchNorm1d at init
LN_EPS = 1e-5
VMEM_LIMIT = 64 * 1024 * 1024  # fits v7x physical VMEM; raises v5e 16MiB default


def _round_up(n, m):
    return ((n + m - 1) // m) * m


def _layernorm(y, g, b, eps):
    mu = jnp.mean(y, axis=-1, keepdims=True)
    var = jnp.mean((y - mu) ** 2, axis=-1, keepdims=True)
    inv = jax.lax.rsqrt(var + eps)
    return (y - mu) * inv * g + b


# ----------------------------- Pallas kernels -----------------------------

def _linear_kernel(x_ref, w_ref, b_ref, o_ref, *, act):
    y = jnp.dot(x_ref[...], w_ref[...], preferred_element_type=jnp.float32)
    y = y + b_ref[...]
    if act == "relu":
        y = jnp.maximum(y, 0.0)
    o_ref[...] = y.astype(o_ref.dtype)


def pallas_linear(x2d, w, b=None, act="none", tm=256):
    """y = x2d @ w + b (optionally ReLU).  x2d: (M, Cin), w: (Cin, Cout)."""
    M, cin = x2d.shape
    cout = w.shape[1]
    if b is None:
        b = jnp.zeros((cout,), jnp.float32)
    tm_eff = min(tm, _round_up(M, 8))           # big MXU-friendly row tile
    grid = (pl.cdiv(M, tm_eff),)                # partial last tile is masked
    return pl.pallas_call(
        functools.partial(_linear_kernel, act=act),
        out_shape=jax.ShapeDtypeStruct((M, cout), jnp.float32),
        grid=grid,
        in_specs=[
            pl.BlockSpec((tm_eff, cin), lambda i: (i, 0)),
            pl.BlockSpec((cin, cout), lambda i: (0, 0)),
            pl.BlockSpec((1, cout), lambda i: (0, 0)),
        ],
        out_specs=pl.BlockSpec((tm_eff, cout), lambda i: (i, 0)),
        compiler_params=pltpu.CompilerParams(
            dimension_semantics=("parallel",), vmem_limit_bytes=VMEM_LIMIT),
    )(x2d, w, b.reshape(1, cout))


def _mha_ln_kernel(q_ref, kv_ref, wq_ref, bq_ref, wkv_ref, bkv_ref,
                   wo_ref, bo_ref, g_ref, be_ref, o_ref, *, nheads, scale, eps):
    """Fused MHA + residual + LayerNorm for one batch element per grid step."""
    xq = q_ref[0]        # (Lq, H)  also the residual
    xkv = kv_ref[0]      # (Lk, H)
    q = jnp.dot(xq, wq_ref[...], preferred_element_type=jnp.float32) + bq_ref[...]
    kv = jnp.dot(xkv, wkv_ref[...], preferred_element_type=jnp.float32) + bkv_ref[...]
    H = q.shape[-1]
    dh = H // nheads
    outs = []
    for h in range(nheads):     # heads are lane slices -> no transposes
        qh = q[:, h * dh:(h + 1) * dh]
        kh = kv[:, h * dh:(h + 1) * dh]
        vh = kv[:, H + h * dh:H + (h + 1) * dh]
        s = jax.lax.dot_general(qh, kh, (((1,), (1,)), ((), ())),
                                preferred_element_type=jnp.float32) * scale
        m = jnp.max(s, axis=-1, keepdims=True)
        p = jnp.exp(s - m)
        p = p * pl.reciprocal(jnp.sum(p, axis=-1, keepdims=True), approx=True)
        outs.append(jnp.dot(p, vh, preferred_element_type=jnp.float32))
    attn = jnp.concatenate(outs, axis=-1)
    o = jnp.dot(attn, wo_ref[...], preferred_element_type=jnp.float32) + bo_ref[...]
    y = xq + o                                    # residual add
    o_ref[0] = _layernorm(y, g_ref[...], be_ref[...], eps).astype(o_ref.dtype)


def fused_mha_ln(q_in, kv_in, p, gamma, beta, nheads):
    B, Lq, H = q_in.shape
    Lk = kv_in.shape[1]
    dh = H // nheads
    return pl.pallas_call(
        functools.partial(_mha_ln_kernel, nheads=nheads,
                          scale=float(1.0 / np.sqrt(dh)), eps=LN_EPS),
        out_shape=jax.ShapeDtypeStruct((B, Lq, H), jnp.float32),
        grid=(B,),
        in_specs=[
            pl.BlockSpec((1, Lq, H), lambda b: (b, 0, 0)),
            pl.BlockSpec((1, Lk, H), lambda b: (b, 0, 0)),
            pl.BlockSpec((H, H), lambda b: (0, 0)),
            pl.BlockSpec((1, H), lambda b: (0, 0)),
            pl.BlockSpec((H, 2 * H), lambda b: (0, 0)),
            pl.BlockSpec((1, 2 * H), lambda b: (0, 0)),
            pl.BlockSpec((H, H), lambda b: (0, 0)),
            pl.BlockSpec((1, H), lambda b: (0, 0)),
            pl.BlockSpec((1, H), lambda b: (0, 0)),
            pl.BlockSpec((1, H), lambda b: (0, 0)),
        ],
        out_specs=pl.BlockSpec((1, Lq, H), lambda b: (b, 0, 0)),
        compiler_params=pltpu.CompilerParams(
            dimension_semantics=("parallel",), vmem_limit_bytes=VMEM_LIMIT),
    )(q_in, kv_in, p["wq"], p["bq"].reshape(1, H),
      p["wkv"], p["bkv"].reshape(1, 2 * H),
      p["wo"], p["bo"].reshape(1, H),
      gamma.reshape(1, H), beta.reshape(1, H))


def _ffn_ln_kernel(x_ref, w1_ref, b1_ref, w2_ref, b2_ref, g_ref, be_ref, o_ref, *, eps):
    """out = LayerNorm(x + relu(x@w1+b1) @ w2 + b2), row-tiled."""
    x = x_ref[...]
    h = jnp.maximum(
        jnp.dot(x, w1_ref[...], preferred_element_type=jnp.float32) + b1_ref[...], 0.0)
    y = x + jnp.dot(h, w2_ref[...], preferred_element_type=jnp.float32) + b2_ref[...]
    o_ref[...] = _layernorm(y, g_ref[...], be_ref[...], eps).astype(o_ref.dtype)


def pallas_ffn_ln(x2d, w1, b1, w2, b2, gamma, beta, tm=256):
    M, H = x2d.shape
    F = w1.shape[1]
    tm_eff = min(tm, _round_up(M, 8))
    return pl.pallas_call(
        functools.partial(_ffn_ln_kernel, eps=LN_EPS),
        out_shape=jax.ShapeDtypeStruct((M, H), jnp.float32),
        grid=(pl.cdiv(M, tm_eff),),
        in_specs=[
            pl.BlockSpec((tm_eff, H), lambda i: (i, 0)),
            pl.BlockSpec((H, F), lambda i: (0, 0)),
            pl.BlockSpec((1, F), lambda i: (0, 0)),
            pl.BlockSpec((F, H), lambda i: (0, 0)),
            pl.BlockSpec((1, H), lambda i: (0, 0)),
            pl.BlockSpec((1, H), lambda i: (0, 0)),
            pl.BlockSpec((1, H), lambda i: (0, 0)),
        ],
        out_specs=pl.BlockSpec((tm_eff, H), lambda i: (i, 0)),
        compiler_params=pltpu.CompilerParams(
            dimension_semantics=("parallel",), vmem_limit_bytes=VMEM_LIMIT),
    )(x2d, w1, b1.reshape(1, F), w2, b2.reshape(1, H),
      gamma.reshape(1, H), beta.reshape(1, H))


def _mlp2_kernel(x_ref, w1_ref, b1_ref, w2_ref, b2_ref, o_ref):
    """out = relu(x@w1+b1) @ w2 + b2 (final MLP head), row-tiled."""
    h = jnp.maximum(
        jnp.dot(x_ref[...], w1_ref[...], preferred_element_type=jnp.float32)
        + b1_ref[...], 0.0)
    o_ref[...] = (jnp.dot(h, w2_ref[...], preferred_element_type=jnp.float32)
                  + b2_ref[...]).astype(o_ref.dtype)


def pallas_mlp2(x2d, w1, b1, w2, b2, tm=256):
    M, H = x2d.shape
    F = w1.shape[1]
    out_dim = w2.shape[1]
    tm_eff = min(tm, _round_up(M, 8))
    return pl.pallas_call(
        _mlp2_kernel,
        out_shape=jax.ShapeDtypeStruct((M, out_dim), jnp.float32),
        grid=(pl.cdiv(M, tm_eff),),
        in_specs=[
            pl.BlockSpec((tm_eff, H), lambda i: (i, 0)),
            pl.BlockSpec((H, F), lambda i: (0, 0)),
            pl.BlockSpec((1, F), lambda i: (0, 0)),
            pl.BlockSpec((F, out_dim), lambda i: (0, 0)),
            pl.BlockSpec((1, out_dim), lambda i: (0, 0)),
        ],
        out_specs=pl.BlockSpec((tm_eff, out_dim), lambda i: (i, 0)),
        compiler_params=pltpu.CompilerParams(
            dimension_semantics=("parallel",), vmem_limit_bytes=VMEM_LIMIT),
    )(x2d, w1, b1.reshape(1, F), w2, b2.reshape(1, out_dim))


def _gnn_update_kernel(x_ref, pi_ref, pj_ref, elin_ref, edge_ref, xo_ref, eo_ref,
                       *, C, inv_k, bn_scale):
    x = x_ref[0]          # (ti, C)     residual (i-tile)
    pi = pi_ref[0]        # (ti, 4C)    fused [A|B|V|U](x), i-tile
    pj = pj_ref[0]        # (K, 4C)     fused [A|B|V|U](x), all j
    elin = elin_ref[0]    # (ti, K, C)  E(edge)
    edge = edge_ref[0]    # (ti, K, C)  edge features, e=(i,j)

    vix = pi[:, 0 * C:1 * C]          # A(x)[i]
    uix = pi[:, 3 * C:4 * C]          # U(x)[i]
    vjx = pj[:, 1 * C:2 * C]          # B(x)[j]
    ujx = pj[:, 2 * C:3 * C]          # V(x)[j]

    # end-gather -> Vix[i] broadcast over j ; start-gather -> Vjx[j] over i
    tmp = vix[:, None, :] + vjx[None, :, :] + elin
    edge_new = edge + jnp.maximum(tmp * bn_scale, 0.0)     # edge + relu(bne(.))

    # softmax over j of sigmoid(edge_new); sigmoid in (0,1) -> no max-subtraction
    e_sig = jax.nn.sigmoid(edge_new)
    p = jnp.exp(e_sig)
    denom = jnp.sum(p, axis=1, keepdims=True)
    p = p * pl.reciprocal(denom, approx=True)

    agg = jnp.sum(p * ujx[None, :, :], axis=1)             # sum_j p[i,j]*Ujx[j]
    x_new = uix + agg * inv_k
    xo_ref[0] = x + jnp.maximum(x_new * bn_scale, 0.0)     # res + relu(bnv(.))
    eo_ref[0] = edge_new


# ------------------------------ model glue ------------------------------

def gnn_layer(x, edge4, p):
    """x: (B, K, C) node features; edge4: (B, K, K, C) edge features."""
    B, K, C = x.shape
    x2 = x.reshape(B * K, C)

    # Fused A|B|V|U projection: one (C, 4C) matmul; lane-sliced in-kernel.
    proj = pallas_linear(x2, p["ABVU"]).reshape(B, K, 4 * C)
    elin = pallas_linear(edge4.reshape(B * K * K, C), p["E"]).reshape(B, K, K, C)

    ti = K if K <= 8 else 8          # tile the edge i-axis -> bounded VMEM
    node_tile = pl.BlockSpec((1, ti, C), lambda b, it: (b, it, 0))
    proj_tile = pl.BlockSpec((1, ti, 4 * C), lambda b, it: (b, it, 0))
    proj_full = pl.BlockSpec((1, K, 4 * C), lambda b, it: (b, 0, 0))
    edge_tile = pl.BlockSpec((1, ti, K, C), lambda b, it: (b, it, 0, 0))

    x_out, edge_out = pl.pallas_call(
        functools.partial(_gnn_update_kernel, C=C, inv_k=1.0 / K,
                          bn_scale=BN_SCALE),
        out_shape=(jax.ShapeDtypeStruct((B, K, C), jnp.float32),
                   jax.ShapeDtypeStruct((B, K, K, C), jnp.float32)),
        grid=(B, pl.cdiv(K, ti)),
        in_specs=[node_tile, proj_tile, proj_full, edge_tile, edge_tile],
        out_specs=(node_tile, edge_tile),
        compiler_params=pltpu.CompilerParams(
            dimension_semantics=("parallel", "parallel"),
            vmem_limit_bytes=VMEM_LIMIT),
    )(x, proj, proj, elin, edge4)
    return x_out, edge_out


def decoder_layer(x, mem, p, nheads):
    # nn.TransformerDecoderLayer, post-norm, relu FFN, dropout=identity (eval).
    # Each sub-block (attn / FFN) is one fused kernel incl. residual + LN.
    x = fused_mha_ln(x, x, p["self_attn"], p["ln1_g"], p["ln1_b"], nheads)
    x = fused_mha_ln(x, mem, p["cross_attn"], p["ln2_g"], p["ln2_b"], nheads)
    B, L, H = x.shape
    x = pallas_ffn_ln(x.reshape(B * L, H), p["w1"], p["b1"], p["w2"], p["b2"],
                      p["ln3_g"], p["ln3_b"]).reshape(B, L, H)
    return x


def forward(params, node, edge, nheads):
    B, K, C = node.shape
    x = node
    edge4 = edge.reshape(B, K, K, C)     # free metadata reshape
    for lp in params["gnn"]:
        x, edge4 = gnn_layer(x, edge4, lp)
    e = edge4.reshape(B, K * K, C)

    E = K * K
    H = params["node_emb_w"].shape[1]
    ne = pallas_linear(x.reshape(B * K, C), params["node_emb_w"],
                       params["node_emb_b"]).reshape(B, K, H)
    ee = pallas_linear(e.reshape(B * E, C), params["edge_emb_w"],
                       params["edge_emb_b"]).reshape(B, E, H)

    for tp in params["tf"]:
        ne = decoder_layer(ne, ee, tp, nheads)

    out_dim = params["mlp_w2"].shape[1]
    out = pallas_mlp2(ne.reshape(B * K, H), params["mlp_w1"], params["mlp_b1"],
                      params["mlp_w2"], params["mlp_b2"]).reshape(B, K, out_dim)
    return out


# ---------------------------- parameter init ----------------------------

def init_params(key, C, H, out_dim, n_gnn=2, n_tf=4):
    keys = iter(jax.random.split(key, 256))

    def nrm(shape, scale):
        return scale * jax.random.normal(next(keys), shape, dtype=jnp.float32)

    gnn_scale = float(np.sqrt(2.0 / C))        # init_weights_linear(dim_in, gain=1)
    # fused [A | B | V | U] weight -> (Vix, Vjx, Ujx, Uix) column blocks
    gnn = [dict(ABVU=nrm((C, 4 * C), gnn_scale), E=nrm((C, C), gnn_scale))
           for _ in range(n_gnn)]

    def mha_p():
        s = float(1.0 / np.sqrt(H))
        return dict(wq=nrm((H, H), s), bq=nrm((H,), 0.01),
                    wkv=nrm((H, 2 * H), s), bkv=nrm((2 * H,), 0.01),
                    wo=nrm((H, H), s), bo=nrm((H,), 0.01))

    tf = []
    for _ in range(n_tf):
        s = float(1.0 / np.sqrt(H))
        tf.append(dict(
            self_attn=mha_p(), cross_attn=mha_p(),
            w1=nrm((H, H), s), b1=nrm((H,), 0.01),
            w2=nrm((H, H), s), b2=nrm((H,), 0.01),
            ln1_g=jnp.ones((H,), jnp.float32), ln1_b=jnp.zeros((H,), jnp.float32),
            ln2_g=jnp.ones((H,), jnp.float32), ln2_b=jnp.zeros((H,), jnp.float32),
            ln3_g=jnp.ones((H,), jnp.float32), ln3_b=jnp.zeros((H,), jnp.float32),
        ))

    return dict(
        gnn=gnn, tf=tf,
        node_emb_w=nrm((C, H), float(1.0 / np.sqrt(C))), node_emb_b=nrm((H,), 0.01),
        edge_emb_w=nrm((C, H), float(1.0 / np.sqrt(C))), edge_emb_b=nrm((H,), 0.01),
        mlp_w1=nrm((H, H), float(1.0 / np.sqrt(H))), mlp_b1=nrm((H,), 0.01),
        mlp_w2=nrm((H, out_dim), float(1.0 / np.sqrt(H))), mlp_b2=nrm((out_dim,), 0.01),
    )


# --------------------------------- main ---------------------------------

if __name__ == "__main__":
    # Small shapes consistent with the module's forward:
    # in_channels == node_input_dim == edge_input_dim = C, num_classes = K,
    # edges = K*K, hidden_dim = H, num_heads = 4, output_dim = OUT.
    # (original hardcodes C=512, K=27; scaled down here.)
    B, C, K, H, NHEADS, OUT = 2, 32, 6, 32, 4, 8
    assert H % NHEADS == 0

    key = jax.random.PRNGKey(0)
    k_node, k_edge, k_param = jax.random.split(key, 3)
    node = jax.random.normal(k_node, (B, K, C), dtype=jnp.float32)
    edge = jax.random.normal(k_edge, (B, K * K, C), dtype=jnp.float32)
    params = init_params(k_param, C, H, OUT, n_gnn=2, n_tf=4)

    fwd = jax.jit(functools.partial(forward, nheads=NHEADS))
    out = fwd(params, node, edge)
    jax.block_until_ready(out)
    assert out.shape == (B, K, OUT) and out.dtype == jnp.float32
    print("KERNEL_OK")
</pallas_src>

<mosaic_0001>
module attributes {stable_mosaic.version = 11 : i64} {
  func.func @_linear_kernel(%arg0: i32, %arg1: memref<16x32xf32, #tpu.memory_space<vmem>>, %arg2: memref<32x128xf32, #tpu.memory_space<vmem>>, %arg3: memref<1x128xf32, #tpu.memory_space<vmem>>, %arg4: memref<16x128xf32, #tpu.memory_space<vmem>>) attributes {dimension_semantics = [#tpu.dimension_semantics<parallel>], iteration_bounds = array<i64: 1>, scalar_prefetch = 0 : i64, scratch_operands = 0 : i64, tpu.core_type = #tpu.core_type<tc>, window_params = [{transform_indices = @transform_0, window_bounds = array<i64: 16, 32>}, {pipeline_mode = #tpu.pipeline_mode<synchronous>, transform_indices = @transform_1, window_bounds = array<i64: 32, 128>}, {pipeline_mode = #tpu.pipeline_mode<synchronous>, transform_indices = @transform_2, window_bounds = array<i64: 1, 128>}, {transform_indices = @transform_3, window_bounds = array<i64: 16, 128>}]} {
    %c0 = arith.constant 0 : index
    %c0_0 = arith.constant 0 : index
    %0 = vector.load %arg1[%c0, %c0_0] : memref<16x32xf32, #tpu.memory_space<vmem>>, vector<16x32xf32>
    %c0_1 = arith.constant 0 : index
    %c0_2 = arith.constant 0 : index
    %1 = vector.load %arg2[%c0_1, %c0_2] : memref<32x128xf32, #tpu.memory_space<vmem>>, vector<32x128xf32>
    %cst = arith.constant dense<0.000000e+00> : vector<16x128xf32>
    %2 = tpu.matmul %0, %1, %cst {dimension_numbers = #tpu.dot_dimension_numbers<[1], [0], [0], [1], [0, 0, 1, 1], [], []>} : vector<16x32xf32>, vector<32x128xf32>, vector<16x128xf32> -> vector<16x128xf32>
    %c0_3 = arith.constant 0 : index
    %c0_4 = arith.constant 0 : index
    %3 = vector.load %arg3[%c0_3, %c0_4] : memref<1x128xf32, #tpu.memory_space<vmem>>, vector<1x128xf32>
    %4 = vector.broadcast %3 : vector<1x128xf32> to vector<16x128xf32>
    %5 = arith.addf %2, %4 : vector<16x128xf32>
    %c0_5 = arith.constant 0 : index
    %c0_6 = arith.constant 0 : index
    %6 = vector.load %arg4[%c0_5, %c0_6] : memref<16x128xf32, #tpu.memory_space<vmem>>, vector<16x128xf32>
    tpu.vector_store %arg4[%c0_5, %c0_6], %5 {strides = array<i32>} : memref<16x128xf32, #tpu.memory_space<vmem>>, vector<16x128xf32>,
    return
  }
  func.func @transform_0(%arg0: i32) -> (i32, i32) {
    %c0_i32 = arith.constant 0 : i32
    %c0_i32_0 = arith.constant 0 : i32
    return %arg0, %c0_i32 : i32, i32
  }
  func.func @transform_1(%arg0: i32) -> (i32, i32) {
    %c0_i32 = arith.constant 0 : i32
    %c0_i32_0 = arith.constant 0 : i32
    %c0_i32_1 = arith.constant 0 : i32
    return %c0_i32, %c0_i32_0 : i32, i32
  }
  func.func @transform_2(%arg0: i32) -> (i32, i32) {
    %c0_i32 = arith.constant 0 : i32
    %c0_i32_0 = arith.constant 0 : i32
    %c0_i32_1 = arith.constant 0 : i32
    return %c0_i32, %c0_i32_0 : i32, i32
  }
  func.func @transform_3(%arg0: i32) -> (i32, i32) {
    %c0_i32 = arith.constant 0 : i32
    %c0_i32_0 = arith.constant 0 : i32
    return %arg0, %c0_i32 : i32, i32
  }
}

module attributes {stable_mosaic.version = 11 : i64} {
  func.func @_linear_kernel(%arg0: i32, %arg1: memref<72x32xf32, #tpu.memory_space<vmem>>, %arg2: memref<32x32xf32, #tpu.memory_space<vmem>>, %arg3: memref<1x32xf32, #tpu.memory_space<vmem>>, %arg4: memref<72x32xf32, #tpu.memory_space<vmem>>) attributes {dimension_semantics = [#tpu.dimension_semantics<parallel>], iteration_bounds = array<i64: 1>, scalar_prefetch = 0 : i64, scratch_operands = 0 : i64, tpu.core_type = #tpu.core_type<tc>, window_params = [{transform_indices = @transform_0, window_bounds = array<i64: 72, 32>}, {pipeline_mode = #tpu.pipeline_mode<synchronous>, transform_indices = @transform_1, window_bounds = array<i64: 32, 32>}, {pipeline_mode = #tpu.pipeline_mode<synchronous>, transform_indices = @transform_2, window_bounds = array<i64: 1, 32>}, {transform_indices = @transform_3, window_bounds = array<i64: 72, 32>}]} {
    %c0 = arith.constant 0 : index
    %c0_0 = arith.constant 0 : index
    %0 = vector.load %arg1[%c0, %c0_0] : memref<72x32xf32, #tpu.memory_space<vmem>>, vector<72x32xf32>
    %c0_1 = arith.constant 0 : index
    %c0_2 = arith.constant 0 : index
    %1 = vector.load %arg2[%c0_1, %c0_2] : memref<32x32xf32, #tpu.memory_space<vmem>>, vector<32x32xf32>
    %cst = arith.constant dense<0.000000e+00> : vector<72x32xf32>
    %2 = tpu.matmul %0, %1, %cst {dimension_numbers = #tpu.dot_dimension_numbers<[1], [0], [0], [1], [0, 0, 1, 1], [], []>} : vector<72x32xf32>, vector<32x32xf32>, vector<72x32xf32> -> vector<72x32xf32>
    %c0_3 = arith.constant 0 : index
    %c0_4 = arith.constant 0 : index
    %3 = vector.load %arg3[%c0_3, %c0_4] : memref<1x32xf32, #tpu.memory_space<vmem>>, vector<1x32xf32>
    %4 = vector.broadcast %3 : vector<1x32xf32> to vector<72x32xf32>
    %5 = arith.addf %2, %4 : vector<72x32xf32>
    %c0_5 = arith.constant 0 : index
    %c0_6 = arith.constant 0 : index
    %6 = vector.load %arg4[%c0_5, %c0_6] : memref<72x32xf32, #tpu.memory_space<vmem>>, vector<72x32xf32>
    tpu.vector_store %arg4[%c0_5, %c0_6], %5 {strides = array<i32>} : memref<72x32xf32, #tpu.memory_space<vmem>>, vector<72x32xf32>,
    return
  }
  func.func @transform_0(%arg0: i32) -> (i32, i32) {
    %c0_i32 = arith.constant 0 : i32
    %c0_i32_0 = arith.constant 0 : i32
    return %arg0, %c0_i32 : i32, i32
  }
  func.func @transform_1(%arg0: i32) -> (i32, i32) {
    %c0_i32 = arith.constant 0 : i32
    %c0_i32_0 = arith.constant 0 : i32
    %c0_i32_1 = arith.constant 0 : i32
    return %c0_i32, %c0_i32_0 : i32, i32
  }
  func.func @transform_2(%arg0: i32) -> (i32, i32) {
    %c0_i32 = arith.constant 0 : i32
    %c0_i32_0 = arith.constant 0 : i32
    %c0_i32_1 = arith.constant 0 : i32
    return %c0_i32, %c0_i32_0 : i32, i32
  }
  func.func @transform_3(%arg0: i32) -> (i32, i32) {
    %c0_i32 = arith.constant 0 : i32
    %c0_i32_0 = arith.constant 0 : i32
    return %arg0, %c0_i32 : i32, i32
  }
}

module attributes {stable_mosaic.version = 11 : i64} {
  func.func @_linear_kernel(%arg0: i32, %arg1: memref<16x32xf32, #tpu.memory_space<vmem>>, %arg2: memref<32x32xf32, #tpu.memory_space<vmem>>, %arg3: memref<1x32xf32, #tpu.memory_space<vmem>>, %arg4: memref<16x32xf32, #tpu.memory_space<vmem>>) attributes {dimension_semantics = [#tpu.dimension_semantics<parallel>], iteration_bounds = array<i64: 1>, scalar_prefetch = 0 : i64, scratch_operands = 0 : i64, tpu.core_type = #tpu.core_type<tc>, window_params = [{transform_indices = @transform_0, window_bounds = array<i64: 16, 32>}, {pipeline_mode = #tpu.pipeline_mode<synchronous>, transform_indices = @transform_1, window_bounds = array<i64: 32, 32>}, {pipeline_mode = #tpu.pipeline_mode<synchronous>, transform_indices = @transform_2, window_bounds = array<i64: 1, 32>}, {transform_indices = @transform_3, window_bounds = array<i64: 16, 32>}]} {
    %c0 = arith.constant 0 : index
    %c0_0 = arith.constant 0 : index
    %0 = vector.load %arg1[%c0, %c0_0] : memref<16x32xf32, #tpu.memory_space<vmem>>, vector<16x32xf32>
    %c0_1 = arith.constant 0 : index
    %c0_2 = arith.constant 0 : index
    %1 = vector.load %arg2[%c0_1, %c0_2] : memref<32x32xf32, #tpu.memory_space<vmem>>, vector<32x32xf32>
    %cst = arith.constant dense<0.000000e+00> : vector<16x32xf32>
    %2 = tpu.matmul %0, %1, %cst {dimension_numbers = #tpu.dot_dimension_numbers<[1], [0], [0], [1], [0, 0, 1, 1], [], []>} : vector<16x32xf32>, vector<32x32xf32>, vector<16x32xf32> -> vector<16x32xf32>
    %c0_3 = arith.constant 0 : index
    %c0_4 = arith.constant 0 : index
    %3 = vector.load %arg3[%c0_3, %c0_4] : memref<1x32xf32, #tpu.memory_space<vmem>>, vector<1x32xf32>
    %4 = vector.broadcast %3 : vector<1x32xf32> to vector<16x32xf32>
    %5 = arith.addf %2, %4 : vector<16x32xf32>
    %c0_5 = arith.constant 0 : index
    %c0_6 = arith.constant 0 : index
    %6 = vector.load %arg4[%c0_5, %c0_6] : memref<16x32xf32, #tpu.memory_space<vmem>>, vector<16x32xf32>
    tpu.vector_store %arg4[%c0_5, %c0_6], %5 {strides = array<i32>} : memref<16x32xf32, #tpu.memory_space<vmem>>, vector<16x32xf32>,
    return
  }
  func.func @transform_0(%arg0: i32) -> (i32, i32) {
    %c0_i32 = arith.constant 0 : i32
    %c0_i32_0 = arith.constant 0 : i32
    return %arg0, %c0_i32 : i32, i32
  }
  func.func @transform_1(%arg0: i32) -> (i32, i32) {
    %c0_i32 = arith.constant 0 : i32
    %c0_i32_0 = arith.constant 0 : i32
    %c0_i32_1 = arith.constant 0 : i32
    return %c0_i32, %c0_i32_0 : i32, i32
  }
  func.func @transform_2(%arg0: i32) -> (i32, i32) {
    %c0_i32 = arith.constant 0 : i32
    %c0_i32_0 = arith.constant 0 : i32
    %c0_i32_1 = arith.constant 0 : i32
    return %c0_i32, %c0_i32_0 : i32, i32
  }
  func.func @transform_3(%arg0: i32) -> (i32, i32) {
    %c0_i32 = arith.constant 0 : i32
    %c0_i32_0 = arith.constant 0 : i32
    return %arg0, %c0_i32 : i32, i32
  }
}

module attributes {stable_mosaic.version = 11 : i64} {
  func.func @_gnn_update_kernel(%arg0: i32, %arg1: i32, %arg2: memref<1x6x32xf32, #tpu.memory_space<vmem>>, %arg3: memref<1x6x128xf32, #tpu.memory_space<vmem>>, %arg4: memref<1x6x128xf32, #tpu.memory_space<vmem>>, %arg5: memref<1x6x6x32xf32, #tpu.memory_space<vmem>>, %arg6: memref<1x6x6x32xf32, #tpu.memory_space<vmem>>, %arg7: memref<1x6x32xf32, #tpu.memory_space<vmem>>, %arg8: memref<1x6x6x32xf32, #tpu.memory_space<vmem>>) attributes {dimension_semantics = [#tpu.dimension_semantics<parallel>, #tpu.dimension_semantics<parallel>], iteration_bounds = array<i64: 2, 1>, scalar_prefetch = 0 : i64, scratch_operands = 0 : i64, tpu.core_type = #tpu.core_type<tc>, window_params = [{transform_indices = @transform_0, window_bounds = array<i64: 1, 6, 32>}, {transform_indices = @transform_1, window_bounds = array<i64: 1, 6, 128>}, {transform_indices = @transform_2, window_bounds = array<i64: 1, 6, 128>}, {transform_indices = @transform_3, window_bounds = array<i64: 1, 6, 6, 32>}, {transform_indices = @transform_4, window_bounds = array<i64: 1, 6, 6, 32>}, {transform_indices = @transform_5, window_bounds = array<i64: 1, 6, 32>}, {transform_indices = @transform_6, window_bounds = array<i64: 1, 6, 6, 32>}]} {
    %c0 = arith.constant 0 : index
    %c0_0 = arith.constant 0 : index
    %c0_1 = arith.constant 0 : index
    %0 = vector.load %arg2[%c0, %c0_0, %c0_1] : memref<1x6x32xf32, #tpu.memory_space<vmem>>, vector<1x6x32xf32>
    %1 = vector.shape_cast %0 : vector<1x6x32xf32> to vector<6x32xf32>
    %c0_2 = arith.constant 0 : index
    %c0_3 = arith.constant 0 : index
    %c0_4 = arith.constant 0 : index
    %2 = vector.load %arg3[%c0_2, %c0_3, %c0_4] : memref<1x6x128xf32, #tpu.memory_space<vmem>>, vector<1x6x128xf32>
    %3 = vector.shape_cast %2 : vector<1x6x128xf32> to vector<6x128xf32>
    %c0_5 = arith.constant 0 : index
    %c0_6 = arith.constant 0 : index
    %c0_7 = arith.constant 0 : index
    %4 = vector.load %arg4[%c0_5, %c0_6, %c0_7] : memref<1x6x128xf32, #tpu.memory_space<vmem>>, vector<1x6x128xf32>
    %5 = vector.shape_cast %4 : vector<1x6x128xf32> to vector<6x128xf32>
    %c0_8 = arith.constant 0 : index
    %c0_9 = arith.constant 0 : index
    %c0_10 = arith.constant 0 : index
    %c0_11 = arith.constant 0 : index
    %6 = vector.load %arg5[%c0_8, %c0_9, %c0_10, %c0_11] : memref<1x6x6x32xf32, #tpu.memory_space<vmem>>, vector<1x6x6x32xf32>
    %7 = vector.shape_cast %6 : vector<1x6x6x32xf32> to vector<6x6x32xf32>
    %c0_12 = arith.constant 0 : index
    %c0_13 = arith.constant 0 : index
    %c0_14 = arith.constant 0 : index
    %c0_15 = arith.constant 0 : index
    %8 = vector.load %arg6[%c0_12, %c0_13, %c0_14, %c0_15] : memref<1x6x6x32xf32, #tpu.memory_space<vmem>>, vector<1x6x6x32xf32>
    %9 = vector.shape_cast %8 : vector<1x6x6x32xf32> to vector<6x6x32xf32>
    %10 = vector.extract_strided_slice %3 {offsets = [0, 0], sizes = [6, 32], strides = [1, 1]} : vector<6x128xf32> to vector<6x32xf32>
    %11 = vector.extract_strided_slice %3 {offsets = [0, 96], sizes = [6, 32], strides = [1, 1]} : vector<6x128xf32> to vector<6x32xf32>
    %12 = vector.extract_strided_slice %5 {offsets = [0, 32], sizes = [6, 32], strides = [1, 1]} : vector<6x128xf32> to vector<6x32xf32>
    %13 = vector.extract_strided_slice %5 {offsets = [0, 64], sizes = [6, 32], strides = [1, 1]} : vector<6x128xf32> to vector<6x32xf32>
    %14 = vector.shape_cast %10 : vector<6x32xf32> to vector<6x1x32xf32>
    %15 = vector.shape_cast %12 : vector<6x32xf32> to vector<1x6x32xf32>
    %16 = vector.broadcast %14 : vector<6x1x32xf32> to vector<6x6x32xf32>
    %17 = vector.broadcast %15 : vector<1x6x32xf32> to vector<6x6x32xf32>
    %18 = arith.addf %16, %17 : vector<6x6x32xf32>
    %19 = arith.addf %18, %7 : vector<6x6x32xf32>
    %cst = arith.constant 0.999994993 : f32
    %20 = vector.broadcast %cst : f32 to vector<6x6x32xf32>
    %21 = arith.mulf %19, %20 : vector<6x6x32xf32>
    %cst_16 = arith.constant 0.000000e+00 : f32
    %22 = vector.broadcast %cst_16 : f32 to vector<6x6x32xf32>
    %23 = arith.maximumf %21, %22 : vector<6x6x32xf32>
    %24 = arith.addf %9, %23 : vector<6x6x32xf32>
    %25 = arith.negf %24 : vector<6x6x32xf32>
    %26 = math.exp %25 : vector<6x6x32xf32>
    %cst_17 = arith.constant 1.000000e+00 : f32
    %27 = vector.broadcast %cst_17 : f32 to vector<6x6x32xf32>
    %28 = arith.addf %27, %26 : vector<6x6x32xf32>
    %29 = arith.divf %27, %28 : vector<6x6x32xf32>
    %30 = math.exp %29 : vector<6x6x32xf32>
    %cst_18 = arith.constant dense<0.000000e+00> : vector<6x32xf32>
    %31 = vector.multi_reduction <add>, %30, %cst_18 [1] : vector<6x6x32xf32> to vector<6x32xf32>
    %32 = vector.shape_cast %31 : vector<6x32xf32> to vector<6x1x32xf32>
    %33 = tpu.reciprocal %32 {approx = true} : vector<6x1x32xf32> -> vector<6x1x32xf32>
    %34 = vector.broadcast %33 : vector<6x1x32xf32> to vector<6x6x32xf32>
    %35 = arith.mulf %30, %34 : vector<6x6x32xf32>
    %36 = vector.shape_cast %13 : vector<6x32xf32> to vector<1x6x32xf32>
    %37 = vector.broadcast %36 : vector<1x6x32xf32> to vector<6x6x32xf32>
    %38 = arith.mulf %35, %37 : vector<6x6x32xf32>
    %cst_19 = arith.constant dense<0.000000e+00> : vector<6x32xf32>
    %39 = vector.multi_reduction <add>, %38, %cst_19 [1] : vector<6x6x32xf32> to vector<6x32xf32>
    %cst_20 = arith.constant 0.166666672 : f32
    %40 = vector.broadcast %cst_20 : f32 to vector<6x32xf32>
    %41 = arith.mulf %39, %40 : vector<6x32xf32>
    %42 = arith.addf %11, %41 : vector<6x32xf32>
    %cst_21 = arith.constant 0.999994993 : f32
    %43 = vector.broadcast %cst_21 : f32 to vector<6x32xf32>
    %44 = arith.mulf %42, %43 : vector<6x32xf32>
    %cst_22 = arith.constant 0.000000e+00 : f32
    %45 = vector.broadcast %cst_22 : f32 to vector<6x32xf32>
    %46 = arith.maximumf %44, %45 : vector<6x32xf32>
    %47 = arith.addf %1, %46 : vector<6x32xf32>
    %c0_23 = arith.constant 0 : index
    %c0_24 = arith.constant 0 : index
    %c0_25 = arith.constant 0 : index
    %48 = vector.load %arg7[%c0_23, %c0_24, %c0_25] : memref<1x6x32xf32, #tpu.memory_space<vmem>>, vector<1x6x32xf32>
    %49 = vector.shape_cast %48 : vector<1x6x32xf32> to vector<6x32xf32>
    %50 = vector.shape_cast %47 : vector<6x32xf32> to vector<1x6x32xf32>
    tpu.vector_store %arg7[%c0_23, %c0_24, %c0_25], %50 {strides = array<i32>} : memref<1x6x32xf32, #tpu.memory_space<vmem>>, vector<1x6x32xf32>,
    %c0_26 = arith.constant 0 : index
    %c0_27 = arith.constant 0 : index
    %c0_28 = arith.constant 0 : index
    %c0_29 = arith.constant 0 : index
    %51 = vector.load %arg8[%c0_26, %c0_27, %c0_28, %c0_29] : memref<1x6x6x32xf32, #tpu.memory_space<vmem>>, vector<1x6x6x32xf32>
    %52 = vector.shape_cast %51 : vector<1x6x6x32xf32> to vector<6x6x32xf32>
    %53 = vector.shape_cast %24 : vector<6x6x32xf32> to vector<1x6x6x32xf32>
    tpu.vector_store %arg8[%c0_26, %c0_27, %c0_28, %c0_29], %53 {strides = array<i32>} : memref<1x6x6x32xf32, #tpu.memory_space<vmem>>, vector<1x6x6x32xf32>,
    return
  }
  func.func @transform_0(%arg0: i32, %arg1: i32) -> (i32, i32, i32) {
    %c0_i32 = arith.constant 0 : i32
    %c0_i32_0 = arith.constant 0 : i32
    return %arg0, %arg1, %c0_i32 : i32, i32, i32
  }
  func.func @transform_1(%arg0: i32, %arg1: i32) -> (i32, i32, i32) {
    %c0_i32 = arith.constant 0 : i32
    %c0_i32_0 = arith.constant 0 : i32
    return %arg0, %arg1, %c0_i32 : i32, i32, i32
  }
  func.func @transform_2(%arg0: i32, %arg1: i32) -> (i32, i32, i32) {
    %c0_i32 = arith.constant 0 : i32
    %c0_i32_0 = arith.constant 0 : i32
    %c0_i32_1 = arith.constant 0 : i32
    return %arg0, %c0_i32, %c0_i32_0 : i32, i32, i32
  }
  func.func @transform_3(%arg0: i32, %arg1: i32) -> (i32, i32, i32, i32) {
    %c0_i32 = arith.constant 0 : i32
    %c0_i32_0 = arith.constant 0 : i32
    %c0_i32_1 = arith.constant 0 : i32
    return %arg0, %arg1, %c0_i32, %c0_i32_0 : i32, i32, i32, i32
  }
  func.func @transform_4(%arg0: i32, %arg1: i32) -> (i32, i32, i32, i32) {
    %c0_i32 = arith.constant 0 : i32
    %c0_i32_0 = arith.constant 0 : i32
    %c0_i32_1 = arith.constant 0 : i32
    return %arg0, %arg1, %c0_i32, %c0_i32_0 : i32, i32, i32, i32
  }
  func.func @transform_5(%arg0: i32, %arg1: i32) -> (i32, i32, i32) {
    %c0_i32 = arith.constant 0 : i32
    %c0_i32_0 = arith.constant 0 : i32
    return %arg0, %arg1, %c0_i32 : i32, i32, i32
  }
  func.func @transform_6(%arg0: i32, %arg1: i32) -> (i32, i32, i32, i32) {
    %c0_i32 = arith.constant 0 : i32
    %c0_i32_0 = arith.constant 0 : i32
    %c0_i32_1 = arith.constant 0 : i32
    return %arg0, %arg1, %c0_i32, %c0_i32_0 : i32, i32, i32, i32
  }
}

module attributes {stable_mosaic.version = 11 : i64} {
  func.func @_ffn_ln_kernel(%arg0: i32, %arg1: memref<16x32xf32, #tpu.memory_space<vmem>>, %arg2: memref<32x32xf32, #tpu.memory_space<vmem>>, %arg3: memref<1x32xf32, #tpu.memory_space<vmem>>, %arg4: memref<32x32xf32, #tpu.memory_space<vmem>>, %arg5: memref<1x32xf32, #tpu.memory_space<vmem>>, %arg6: memref<1x32xf32, #tpu.memory_space<vmem>>, %arg7: memref<1x32xf32, #tpu.memory_space<vmem>>, %arg8: memref<16x32xf32, #tpu.memory_space<vmem>>) attributes {dimension_semantics = [#tpu.dimension_semantics<parallel>], iteration_bounds = array<i64: 1>, scalar_prefetch = 0 : i64, scratch_operands = 0 : i64, tpu.core_type = #tpu.core_type<tc>, window_params = [{transform_indices = @transform_0, window_bounds = array<i64: 16, 32>}, {pipeline_mode = #tpu.pipeline_mode<synchronous>, transform_indices = @transform_1, window_bounds = array<i64: 32, 32>}, {pipeline_mode = #tpu.pipeline_mode<synchronous>, transform_indices = @transform_2, window_bounds = array<i64: 1, 32>}, {pipeline_mode = #tpu.pipeline_mode<synchronous>, transform_indices = @transform_3, window_bounds = array<i64: 32, 32>}, {pipeline_mode = #tpu.pipeline_mode<synchronous>, transform_indices = @transform_4, window_bounds = array<i64: 1, 32>}, {pipeline_mode = #tpu.pipeline_mode<synchronous>, transform_indices = @transform_5, window_bounds = array<i64: 1, 32>}, {pipeline_mode = #tpu.pipeline_mode<synchronous>, transform_indices = @transform_6, window_bounds = array<i64: 1, 32>}, {transform_indices = @transform_7, window_bounds = array<i64: 16, 32>}]} {
    %c0 = arith.constant 0 : index
    %c0_0 = arith.constant 0 : index
    %0 = vector.load %arg1[%c0, %c0_0] : memref<16x32xf32, #tpu.memory_space<vmem>>, vector<16x32xf32>
    %c0_1 = arith.constant 0 : index
    %c0_2 = arith.constant 0 : index
    %1 = vector.load %arg2[%c0_1, %c0_2] : memref<32x32xf32, #tpu.memory_space<vmem>>, vector<32x32xf32>
    %cst = arith.constant dense<0.000000e+00> : vector<16x32xf32>
    %2 = tpu.matmul %0, %1, %cst {dimension_numbers = #tpu.dot_dimension_numbers<[1], [0], [0], [1], [0, 0, 1, 1], [], []>} : vector<16x32xf32>, vector<32x32xf32>, vector<16x32xf32> -> vector<16x32xf32>
    %c0_3 = arith.constant 0 : index
    %c0_4 = arith.constant 0 : index
    %3 = vector.load %arg3[%c0_3, %c0_4] : memref<1x32xf32, #tpu.memory_space<vmem>>, vector<1x32xf32>
    %4 = vector.broadcast %3 : vector<1x32xf32> to vector<16x32xf32>
    %5 = arith.addf %2, %4 : vector<16x32xf32>
    %cst_5 = arith.constant 0.000000e+00 : f32
    %6 = vector.broadcast %cst_5 : f32 to vector<16x32xf32>
    %7 = arith.maximumf %5, %6 : vector<16x32xf32>
    %c0_6 = arith.constant 0 : index
    %c0_7 = arith.constant 0 : index
    %8 = vector.load %arg4[%c0_6, %c0_7] : memref<32x32xf32, #tpu.memory_space<vmem>>, vector<32x32xf32>
    %cst_8 = arith.constant dense<0.000000e+00> : vector<16x32xf32>
    %9 = tpu.matmul %7, %8, %cst_8 {dimension_numbers = #tpu.dot_dimension_numbers<[1], [0], [0], [1], [0, 0, 1, 1], [], []>} : vector<16x32xf32>, vector<32x32xf32>, vector<16x32xf32> -> vector<16x32xf32>
    %10 = arith.addf %0, %9 : vector<16x32xf32>
    %c0_9 = arith.constant 0 : index
    %c0_10 = arith.constant 0 : index
    %11 = vector.load %arg5[%c0_9, %c0_10] : memref<1x32xf32, #tpu.memory_space<vmem>>, vector<1x32xf32>
    %12 = vector.broadcast %11 : vector<1x32xf32> to vector<16x32xf32>
    %13 = arith.addf %10, %12 : vector<16x32xf32>
    %c0_11 = arith.constant 0 : index
    %c0_12 = arith.constant 0 : index
    %14 = vector.load %arg6[%c0_11, %c0_12] : memref<1x32xf32, #tpu.memory_space<vmem>>, vector<1x32xf32>
    %c0_13 = arith.constant 0 : index
    %c0_14 = arith.constant 0 : index
    %15 = vector.load %arg7[%c0_13, %c0_14] : memref<1x32xf32, #tpu.memory_space<vmem>>, vector<1x32xf32>
    %cst_15 = arith.constant dense<0.000000e+00> : vector<16xf32>
    %16 = vector.multi_reduction <add>, %13, %cst_15 [1] : vector<16x32xf32> to vector<16xf32>
    %17 = vector.shape_cast %16 : vector<16xf32> to vector<16x1xf32>
    %cst_16 = arith.constant 3.200000e+01 : f32
    %18 = vector.broadcast %cst_16 : f32 to vector<16x1xf32>
    %19 = arith.divf %17, %18 : vector<16x1xf32>
    %20 = vector.broadcast %19 : vector<16x1xf32> to vector<16x32xf32>
    %21 = arith.subf %13, %20 : vector<16x32xf32>
    %22 = arith.mulf %21, %21 : vector<16x32xf32>
    %cst_17 = arith.constant dense<0.000000e+00> : vector<16xf32>
    %23 = vector.multi_reduction <add>, %22, %cst_17 [1] : vector<16x32xf32> to vector<16xf32>
    %24 = vector.shape_cast %23 : vector<16xf32> to vector<16x1xf32>
    %cst_18 = arith.constant 3.200000e+01 : f32
    %25 = vector.broadcast %cst_18 : f32 to vector<16x1xf32>
    %26 = arith.divf %24, %25 : vector<16x1xf32>
    %cst_19 = arith.constant 9.99999974E-6 : f32
    %27 = vector.broadcast %cst_19 : f32 to vector<16x1xf32>
    %28 = arith.addf %26, %27 : vector<16x1xf32>
    %29 = math.rsqrt %28 : vector<16x1xf32>
    %30 = vector.broadcast %19 : vector<16x1xf32> to vector<16x32xf32>
    %31 = arith.subf %13, %30 : vector<16x32xf32>
    %32 = vector.broadcast %29 : vector<16x1xf32> to vector<16x32xf32>
    %33 = arith.mulf %31, %32 : vector<16x32xf32>
    %34 = vector.broadcast %14 : vector<1x32xf32> to vector<16x32xf32>
    %35 = arith.mulf %33, %34 : vector<16x32xf32>
    %36 = vector.broadcast %15 : vector<1x32xf32> to vector<16x32xf32>
    %37 = arith.addf %35, %36 : vector<16x32xf32>
    %c0_20 = arith.constant 0 : index
    %c0_21 = arith.constant 0 : index
    %38 = vector.load %arg8[%c0_20, %c0_21] : memref<16x32xf32, #tpu.memory_space<vmem>>, vector<16x32xf32>
    tpu.vector_store %arg8[%c0_20, %c0_21], %37 {strides = array<i32>} : memref<16x32xf32, #tpu.memory_space<vmem>>, vector<16x32xf32>,
    return
  }
  func.func @transform_0(%arg0: i32) -> (i32, i32) {
    %c0_i32 = arith.constant 0 : i32
    %c0_i32_0 = arith.constant 0 : i32
    return %arg0, %c0_i32 : i32, i32
  }
  func.func @transform_1(%arg0: i32) -> (i32, i32) {
    %c0_i32 = arith.constant 0 : i32
    %c0_i32_0 = arith.constant 0 : i32
    %c0_i32_1 = arith.constant 0 : i32
    return %c0_i32, %c0_i32_0 : i32, i32
  }
  func.func @transform_2(%arg0: i32) -> (i32, i32) {
    %c0_i32 = arith.constant 0 : i32
    %c0_i32_0 = arith.constant 0 : i32
    %c0_i32_1 = arith.constant 0 : i32
    return %c0_i32, %c0_i32_0 : i32, i32
  }
  func.func @transform_3(%arg0: i32) -> (i32, i32) {
    %c0_i32 = arith.constant 0 : i32
    %c0_i32_0 = arith.constant 0 : i32
    %c0_i32_1 = arith.constant 0 : i32
    return %c0_i32, %c0_i32_0 : i32, i32
  }
  func.func @transform_4(%arg0: i32) -> (i32, i32) {
    %c0_i32 = arith.constant 0 : i32
    %c0_i32_0 = arith.constant 0 : i32
    %c0_i32_1 = arith.constant 0 : i32
    return %c0_i32, %c0_i32_0 : i32, i32
  }
  func.func @transform_5(%arg0: i32) -> (i32, i32) {
    %c0_i32 = arith.constant 0 : i32
    %c0_i32_0 = arith.constant 0 : i32
    %c0_i32_1 = arith.constant 0 : i32
    return %c0_i32, %c0_i32_0 : i32, i32
  }
  func.func @transform_6(%arg0: i32) -> (i32, i32) {
    %c0_i32 = arith.constant 0 : i32
    %c0_i32_0 = arith.constant 0 : i32
    %c0_i32_1 = arith.constant 0 : i32
    return %c0_i32, %c0_i32_0 : i32, i32
  }
  func.func @transform_7(%arg0: i32) -> (i32, i32) {
    %c0_i32 = arith.constant 0 : i32
    %c0_i32_0 = arith.constant 0 : i32
    return %arg0, %c0_i32 : i32, i32
  }
}

module attributes {stable_mosaic.version = 11 : i64} {
  func.func @_mha_ln_kernel(%arg0: i32, %arg1: memref<1x6x32xf32, #tpu.memory_space<vmem>>, %arg2: memref<1x6x32xf32, #tpu.memory_space<vmem>>, %arg3: memref<32x32xf32, #tpu.memory_space<vmem>>, %arg4: memref<1x32xf32, #tpu.memory_space<vmem>>, %arg5: memref<32x64xf32, #tpu.memory_space<vmem>>, %arg6: memref<1x64xf32, #tpu.memory_space<vmem>>, %arg7: memref<32x32xf32, #tpu.memory_space<vmem>>, %arg8: memref<1x32xf32, #tpu.memory_space<vmem>>, %arg9: memref<1x32xf32, #tpu.memory_space<vmem>>, %arg10: memref<1x32xf32, #tpu.memory_space<vmem>>, %arg11: memref<1x6x32xf32, #tpu.memory_space<vmem>>) attributes {dimension_semantics = [#tpu.dimension_semantics<parallel>], iteration_bounds = array<i64: 2>, scalar_prefetch = 0 : i64, scratch_operands = 0 : i64, tpu.core_type = #tpu.core_type<tc>, window_params = [{transform_indices = @transform_0, window_bounds = array<i64: 1, 6, 32>}, {transform_indices = @transform_1, window_bounds = array<i64: 1, 6, 32>}, {pipeline_mode = #tpu.pipeline_mode<synchronous>, transform_indices = @transform_2, window_bounds = array<i64: 32, 32>}, {pipeline_mode = #tpu.pipeline_mode<synchronous>, transform_indices = @transform_3, window_bounds = array<i64: 1, 32>}, {pipeline_mode = #tpu.pipeline_mode<synchronous>, transform_indices = @transform_4, window_bounds = array<i64: 32, 64>}, {pipeline_mode = #tpu.pipeline_mode<synchronous>, transform_indices = @transform_5, window_bounds = array<i64: 1, 64>}, {pipeline_mode = #tpu.pipeline_mode<synchronous>, transform_indices = @transform_6, window_bounds = array<i64: 32, 32>}, {pipeline_mode = #tpu.pipeline_mode<synchronous>, transform_indices = @transform_7, window_bounds = array<i64: 1, 32>}, {pipeline_mode = #tpu.pipeline_mode<synchronous>, transform_indices = @transform_8, window_bounds = array<i64: 1, 32>}, {pipeline_mode = #tpu.pipeline_mode<synchronous>, transform_indices = @transform_9, window_bounds = array<i64: 1, 32>}, {transform_indices = @transform_10, window_bounds = array<i64: 1, 6, 32>}]} {
    %c0 = arith.constant 0 : index
    %c0_0 = arith.constant 0 : index
    %c0_1 = arith.constant 0 : index
    %0 = vector.load %arg1[%c0, %c0_0, %c0_1] : memref<1x6x32xf32, #tpu.memory_space<vmem>>, vector<1x6x32xf32>
    %1 = vector.shape_cast %0 : vector<1x6x32xf32> to vector<6x32xf32>
    %c0_2 = arith.constant 0 : index
    %c0_3 = arith.constant 0 : index
    %c0_4 = arith.constant 0 : index
    %2 = vector.load %arg2[%c0_2, %c0_3, %c0_4] : memref<1x6x32xf32, #tpu.memory_space<vmem>>, vector<1x6x32xf32>
    %3 = vector.shape_cast %2 : vector<1x6x32xf32> to vector<6x32xf32>
    %c0_5 = arith.constant 0 : index
    %c0_6 = arith.constant 0 : index
    %4 = vector.load %arg3[%c0_5, %c0_6] : memref<32x32xf32, #tpu.memory_space<vmem>>, vector<32x32xf32>
    %cst = arith.constant dense<0.000000e+00> : vector<6x32xf32>
    %5 = tpu.matmul %1, %4, %cst {dimension_numbers = #tpu.dot_dimension_numbers<[1], [0], [0], [1], [0, 0, 1, 1], [], []>} : vector<6x32xf32>, vector<32x32xf32>, vector<6x32xf32> -> vector<6x32xf32>
    %c0_7 = arith.constant 0 : index
    %c0_8 = arith.constant 0 : index
    %6 = vector.load %arg4[%c0_7, %c0_8] : memref<1x32xf32, #tpu.memory_space<vmem>>, vector<1x32xf32>
    %7 = vector.broadcast %6 : vector<1x32xf32> to vector<6x32xf32>
    %8 = arith.addf %5, %7 : vector<6x32xf32>
    %c0_9 = arith.constant 0 : index
    %c0_10 = arith.constant 0 : index
    %9 = vector.load %arg5[%c0_9, %c0_10] : memref<32x64xf32, #tpu.memory_space<vmem>>, vector<32x64xf32>
    %cst_11 = arith.constant dense<0.000000e+00> : vector<6x64xf32>
    %10 = tpu.matmul %3, %9, %cst_11 {dimension_numbers = #tpu.dot_dimension_numbers<[1], [0], [0], [1], [0, 0, 1, 1], [], []>} : vector<6x32xf32>, vector<32x64xf32>, vector<6x64xf32> -> vector<6x64xf32>
    %c0_12 = arith.constant 0 : index
    %c0_13 = arith.constant 0 : index
    %11 = vector.load %arg6[%c0_12, %c0_13] : memref<1x64xf32, #tpu.memory_space<vmem>>, vector<1x64xf32>
    %12 = vector.broadcast %11 : vector<1x64xf32> to vector<6x64xf32>
    %13 = arith.addf %10, %12 : vector<6x64xf32>
    %14 = vector.extract_strided_slice %8 {offsets = [0, 0], sizes = [6, 8], strides = [1, 1]} : vector<6x32xf32> to vector<6x8xf32>
    %15 = vector.extract_strided_slice %13 {offsets = [0, 0], sizes = [6, 8], strides = [1, 1]} : vector<6x64xf32> to vector<6x8xf32>
    %16 = vector.extract_strided_slice %13 {offsets = [0, 32], sizes = [6, 8], strides = [1, 1]} : vector<6x64xf32> to vector<6x8xf32>
    %cst_14 = arith.constant dense<0.000000e+00> : vector<6x6xf32>
    %17 = tpu.matmul %14, %15, %cst_14 {dimension_numbers = #tpu.dot_dimension_numbers<[1], [1], [0], [0], [0, 0, 1, 0], [], []>} : vector<6x8xf32>, vector<6x8xf32>, vector<6x6xf32> -> vector<6x6xf32>
    %cst_15 = arith.constant 0.353553385 : f32
    %18 = vector.broadcast %cst_15 : f32 to vector<6x6xf32>
    %19 = arith.mulf %17, %18 : vector<6x6xf32>
    %cst_16 = arith.constant dense<0xFF800000> : vector<6xf32>
    %20 = vector.multi_reduction <maximumf>, %19, %cst_16 [1] : vector<6x6xf32> to vector<6xf32>
    %21 = vector.shape_cast %20 : vector<6xf32> to vector<6x1xf32>
    %22 = vector.broadcast %21 : vector<6x1xf32> to vector<6x6xf32>
    %23 = arith.subf %19, %22 : vector<6x6xf32>
    %24 = math.exp %23 : vector<6x6xf32>
    %cst_17 = arith.constant dense<0.000000e+00> : vector<6xf32>
    %25 = vector.multi_reduction <add>, %24, %cst_17 [1] : vector<6x6xf32> to vector<6xf32>
    %26 = vector.shape_cast %25 : vector<6xf32> to vector<6x1xf32>
    %27 = tpu.reciprocal %26 {approx = true} : vector<6x1xf32> -> vector<6x1xf32>
    %28 = vector.broadcast %27 : vector<6x1xf32> to vector<6x6xf32>
    %29 = arith.mulf %24, %28 : vector<6x6xf32>
    %cst_18 = arith.constant dense<0.000000e+00> : vector<6x8xf32>
    %30 = tpu.matmul %29, %16, %cst_18 {dimension_numbers = #tpu.dot_dimension_numbers<[1], [0], [0], [1], [0, 0, 1, 1], [], []>} : vector<6x6xf32>, vector<6x8xf32>, vector<6x8xf32> -> vector<6x8xf32>
    %31 = vector.extract_strided_slice %8 {offsets = [0, 8], sizes = [6, 8], strides = [1, 1]} : vector<6x32xf32> to vector<6x8xf32>
    %32 = vector.extract_strided_slice %13 {offsets = [0, 8], sizes = [6, 8], strides = [1, 1]} : vector<6x64xf32> to vector<6x8xf32>
    %33 = vector.extract_strided_slice %13 {offsets = [0, 40], sizes = [6, 8], strides = [1, 1]} : vector<6x64xf32> to vector<6x8xf32>
    %cst_19 = arith.constant dense<0.000000e+00> : vector<6x6xf32>
    %34 = tpu.matmul %31, %32, %cst_19 {dimension_numbers = #tpu.dot_dimension_numbers<[1], [1], [0], [0], [0, 0, 1, 0], [], []>} : vector<6x8xf32>, vector<6x8xf32>, vector<6x6xf32> -> vector<6x6xf32>
    %cst_20 = arith.constant 0.353553385 : f32
    %35 = vector.broadcast %cst_20 : f32 to vector<6x6xf32>
    %36 = arith.mulf %34, %35 : vector<6x6xf32>
    %cst_21 = arith.constant dense<0xFF800000> : vector<6xf32>
    %37 = vector.multi_reduction <maximumf>, %36, %cst_21 [1] : vector<6x6xf32> to vector<6xf32>
    %38 = vector.shape_cast %37 : vector<6xf32> to vector<6x1xf32>
    %39 = vector.broadcast %38 : vector<6x1xf32> to vector<6x6xf32>
    %40 = arith.subf %36, %39 : vector<6x6xf32>
    %41 = math.exp %40 : vector<6x6xf32>
    %cst_22 = arith.constant dense<0.000000e+00> : vector<6xf32>
    %42 = vector.multi_reduction <add>, %41, %cst_22 [1] : vector<6x6xf32> to vector<6xf32>
    %43 = vector.shape_cast %42 : vector<6xf32> to vector<6x1xf32>
    %44 = tpu.reciprocal %43 {approx = true} : vector<6x1xf32> -> vector<6x1xf32>
    %45 = vector.broadcast %44 : vector<6x1xf32> to vector<6x6xf32>
    %46 = arith.mulf %41, %45 : vector<6x6xf32>
    %cst_23 = arith.constant dense<0.000000e+00> : vector<6x8xf32>
    %47 = tpu.matmul %46, %33, %cst_23 {dimension_numbers = #tpu.dot_dimension_numbers<[1], [0], [0], [1], [0, 0, 1, 1], [], []>} : vector<6x6xf32>, vector<6x8xf32>, vector<6x8xf32> -> vector<6x8xf32>
    %48 = vector.extract_strided_slice %8 {offsets = [0, 16], sizes = [6, 8], strides = [1, 1]} : vector<6x32xf32> to vector<6x8xf32>
    %49 = vector.extract_strided_slice %13 {offsets = [0, 16], sizes = [6, 8], strides = [1, 1]} : vector<6x64xf32> to vector<6x8xf32>
    %50 = vector.extract_strided_slice %13 {offsets = [0, 48], sizes = [6, 8], strides = [1, 1]} : vector<6x64xf32> to vector<6x8xf32>
    %cst_24 = arith.constant dense<0.000000e+00> : vector<6x6xf32>
    %51 = tpu.matmul %48, %49, %cst_24 {dimension_numbers = #tpu.dot_dimension_numbers<[1], [1], [0], [0], [0, 0, 1, 0], [], []>} : vector<6x8xf32>, vector<6x8xf32>, vector<6x6xf32> -> vector<6x6xf32>
    %cst_25 = arith.constant 0.353553385 : f32
    %52 = vector.broadcast %cst_25 : f32 to vector<6x6xf32>
    %53 = arith.mulf %51, %52 : vector<6x6xf32>
    %cst_26 = arith.constant dense<0xFF800000> : vector<6xf32>
    %54 = vector.multi_reduction <maximumf>, %53, %cst_26 [1] : vector<6x6xf32> to vector<6xf32>
    %55 = vector.shape_cast %54 : vector<6xf32> to vector<6x1xf32>
    %56 = vector.broadcast %55 : vector<6x1xf32> to vector<6x6xf32>
    %57 = arith.subf %53, %56 : vector<6x6xf32>
    %58 = math.exp %57 : vector<6x6xf32>
    %cst_27 = arith.constant dense<0.000000e+00> : vector<6xf32>
    %59 = vector.multi_reduction <add>, %58, %cst_27 [1] : vector<6x6xf32> to vector<6xf32>
    %60 = vector.shape_cast %59 : vector<6xf32> to vector<6x1xf32>
    %61 = tpu.reciprocal %60 {approx = true} : vector<6x1xf32> -> vector<6x1xf32>
    %62 = vector.broadcast %61 : vector<6x1xf32> to vector<6x6xf32>
    %63 = arith.mulf %58, %62 : vector<6x6xf32>
    %cst_28 = arith.constant dense<0.000000e+00> : vector<6x8xf32>
    %64 = tpu.matmul %63, %50, %cst_28 {dimension_numbers = #tpu.dot_dimension_numbers<[1], [0], [0], [1], [0, 0, 1, 1], [], []>} : vector<6x6xf32>, vector<6x8xf32>, vector<6x8xf32> -> vector<6x8xf32>
    %65 = vector.extract_strided_slice %8 {offsets = [0, 24], sizes = [6, 8], strides = [1, 1]} : vector<6x32xf32> to vector<6x8xf32>
    %66 = vector.extract_strided_slice %13 {offsets = [0, 24], sizes = [6, 8], strides = [1, 1]} : vector<6x64xf32> to vector<6x8xf32>
    %67 = vector.extract_strided_slice %13 {offsets = [0, 56], sizes = [6, 8], strides = [1, 1]} : vector<6x64xf32> to vector<6x8xf32>
    %cst_29 = arith.constant dense<0.000000e+00> : vector<6x6xf32>
    %68 = tpu.matmul %65, %66, %cst_29 {dimension_numbers = #tpu.dot_dimension_numbers<[1], [1], [0], [0], [0, 0, 1, 0], [], []>} : vector<6x8xf32>, vector<6x8xf32>, vector<6x6xf32> -> vector<6x6xf32>
    %cst_30 = arith.constant 0.353553385 : f32
    %69 = vector.broadcast %cst_30 : f32 to vector<6x6xf32>
    %70 = arith.mulf %68, %69 : vector<6x6xf32>
    %cst_31 = arith.constant dense<0xFF800000> : vector<6xf32>
    %71 = vector.multi_reduction <maximumf>, %70, %cst_31 [1] : vector<6x6xf32> to vector<6xf32>
    %72 = vector.shape_cast %71 : vector<6xf32> to vector<6x1xf32>
    %73 = vector.broadcast %72 : vector<6x1xf32> to vector<6x6xf32>
    %74 = arith.subf %70, %73 : vector<6x6xf32>
    %75 = math.exp %74 : vector<6x6xf32>
    %cst_32 = arith.constant dense<0.000000e+00> : vector<6xf32>
    %76 = vector.multi_reduction <add>, %75, %cst_32 [1] : vector<6x6xf32> to vector<6xf32>
    %77 = vector.shape_cast %76 : vector<6xf32> to vector<6x1xf32>
    %78 = tpu.reciprocal %77 {approx = true} : vector<6x1xf32> -> vector<6x1xf32>
    %79 = vector.broadcast %78 : vector<6x1xf32> to vector<6x6xf32>
    %80 = arith.mulf %75, %79 : vector<6x6xf32>
    %cst_33 = arith.constant dense<0.000000e+00> : vector<6x8xf32>
    %81 = tpu.matmul %80, %67, %cst_33 {dimension_numbers = #tpu.dot_dimension_numbers<[1], [0], [0], [1], [0, 0, 1, 1], [], []>} : vector<6x6xf32>, vector<6x8xf32>, vector<6x8xf32> -> vector<6x8xf32>
    %82 = tpu.concatenate %30, %47, %64, %81 in 1 : vector<6x8xf32>, vector<6x8xf32>, vector<6x8xf32>, vector<6x8xf32> -> vector<6x32xf32>
    %c0_34 = arith.constant 0 : index
    %c0_35 = arith.constant 0 : index
    %83 = vector.load %arg7[%c0_34, %c0_35] : memref<32x32xf32, #tpu.memory_space<vmem>>, vector<32x32xf32>
    %cst_36 = arith.constant dense<0.000000e+00> : vector<6x32xf32>
    %84 = tpu.matmul %82, %83, %cst_36 {dimension_numbers = #tpu.dot_dimension_numbers<[1], [0], [0], [1], [0, 0, 1, 1], [], []>} : vector<6x32xf32>, vector<32x32xf32>, vector<6x32xf32> -> vector<6x32xf32>
    %c0_37 = arith.constant 0 : index
    %c0_38 = arith.constant 0 : index
    %85 = vector.load %arg8[%c0_37, %c0_38] : memref<1x32xf32, #tpu.memory_space<vmem>>, vector<1x32xf32>
    %86 = vector.broadcast %85 : vector<1x32xf32> to vector<6x32xf32>
    %87 = arith.addf %84, %86 : vector<6x32xf32>
    %88 = arith.addf %1, %87 : vector<6x32xf32>
    %c0_39 = arith.constant 0 : index
    %c0_40 = arith.constant 0 : index
    %89 = vector.load %arg9[%c0_39, %c0_40] : memref<1x32xf32, #tpu.memory_space<vmem>>, vector<1x32xf32>
    %c0_41 = arith.constant 0 : index
    %c0_42 = arith.constant 0 : index
    %90 = vector.load %arg10[%c0_41, %c0_42] : memref<1x32xf32, #tpu.memory_space<vmem>>, vector<1x32xf32>
    %cst_43 = arith.constant dense<0.000000e+00> : vector<6xf32>
    %91 = vector.multi_reduction <add>, %88, %cst_43 [1] : vector<6x32xf32> to vector<6xf32>
    %92 = vector.shape_cast %91 : vector<6xf32> to vector<6x1xf32>
    %cst_44 = arith.constant 3.200000e+01 : f32
    %93 = vector.broadcast %cst_44 : f32 to vector<6x1xf32>
    %94 = arith.divf %92, %93 : vector<6x1xf32>
    %95 = vector.broadcast %94 : vector<6x1xf32> to vector<6x32xf32>
    %96 = arith.subf %88, %95 : vector<6x32xf32>
    %97 = arith.mulf %96, %96 : vector<6x32xf32>
    %cst_45 = arith.constant dense<0.000000e+00> : vector<6xf32>
    %98 = vector.multi_reduction <add>, %97, %cst_45 [1] : vector<6x32xf32> to vector<6xf32>
    %99 = vector.shape_cast %98 : vector<6xf32> to vector<6x1xf32>
    %cst_46 = arith.constant 3.200000e+01 : f32
    %100 = vector.broadcast %cst_46 : f32 to vector<6x1xf32>
    %101 = arith.divf %99, %100 : vector<6x1xf32>
    %cst_47 = arith.constant 9.99999974E-6 : f32
    %102 = vector.broadcast %cst_47 : f32 to vector<6x1xf32>
    %103 = arith.addf %101, %102 : vector<6x1xf32>
    %104 = math.rsqrt %103 : vector<6x1xf32>
    %105 = vector.broadcast %94 : vector<6x1xf32> to vector<6x32xf32>
    %106 = arith.subf %88, %105 : vector<6x32xf32>
    %107 = vector.broadcast %104 : vector<6x1xf32> to vector<6x32xf32>
    %108 = arith.mulf %106, %107 : vector<6x32xf32>
    %109 = vector.broadcast %89 : vector<1x32xf32> to vector<6x32xf32>
    %110 = arith.mulf %108, %109 : vector<6x32xf32>
    %111 = vector.broadcast %90 : vector<1x32xf32> to vector<6x32xf32>
    %112 = arith.addf %110, %111 : vector<6x32xf32>
    %c0_48 = arith.constant 0 : index
    %c0_49 = arith.constant 0 : index
    %c0_50 = arith.constant 0 : index
    %113 = vector.load %arg11[%c0_48, %c0_49, %c0_50] : memref<1x6x32xf32, #tpu.memory_space<vmem>>, vector<1x6x32xf32>
    %114 = vector.shape_cast %113 : vector<1x6x32xf32> to vector<6x32xf32>
    %115 = vector.shape_cast %112 : vector<6x32xf32> to vector<1x6x32xf32>
    tpu.vector_store %arg11[%c0_48, %c0_49, %c0_50], %115 {strides = array<i32>} : memref<1x6x32xf32, #tpu.memory_space<vmem>>, vector<1x6x32xf32>,
    return
  }
  func.func @transform_0(%arg0: i32) -> (i32, i32, i32) {
    %c0_i32 = arith.constant 0 : i32
    %c0_i32_0 = arith.constant 0 : i32
    %c0_i32_1 = arith.constant 0 : i32
    return %arg0, %c0_i32, %c0_i32_0 : i32, i32, i32
  }
  func.func @transform_1(%arg0: i32) -> (i32, i32, i32) {
    %c0_i32 = arith.constant 0 : i32
    %c0_i32_0 = arith.constant 0 : i32
    %c0_i32_1 = arith.constant 0 : i32
    return %arg0, %c0_i32, %c0_i32_0 : i32, i32, i32
  }
  func.func @transform_2(%arg0: i32) -> (i32, i32) {
    %c0_i32 = arith.constant 0 : i32
    %c0_i32_0 = arith.constant 0 : i32
    %c0_i32_1 = arith.constant 0 : i32
    return %c0_i32, %c0_i32_0 : i32, i32
  }
  func.func @transform_3(%arg0: i32) -> (i32, i32) {
    %c0_i32 = arith.constant 0 : i32
    %c0_i32_0 = arith.constant 0 : i32
    %c0_i32_1 = arith.constant 0 : i32
    return %c0_i32, %c0_i32_0 : i32, i32
  }
  func.func @transform_4(%arg0: i32) -> (i32, i32) {
    %c0_i32 = arith.constant 0 : i32
    %c0_i32_0 = arith.constant 0 : i32
    %c0_i32_1 = arith.constant 0 : i32
    return %c0_i32, %c0_i32_0 : i32, i32
  }
  func.func @transform_5(%arg0: i32) -> (i32, i32) {
    %c0_i32 = arith.constant 0 : i32
    %c0_i32_0 = arith.constant 0 : i32
    %c0_i32_1 = arith.constant 0 : i32
    return %c0_i32, %c0_i32_0 : i32, i32
  }
  func.func @transform_6(%arg0: i32) -> (i32, i32) {
    %c0_i32 = arith.constant 0 : i32
    %c0_i32_0 = arith.constant 0 : i32
    %c0_i32_1 = arith.constant 0 : i32
    return %c0_i32, %c0_i32_0 : i32, i32
  }
  func.func @transform_7(%arg0: i32) -> (i32, i32) {
    %c0_i32 = arith.constant 0 : i32
    %c0_i32_0 = arith.constant 0 : i32
    %c0_i32_1 = arith.constant 0 : i32
    return %c0_i32, %c0_i32_0 : i32, i32
  }
  func.func @transform_8(%arg0: i32) -> (i32, i32) {
    %c0_i32 = arith.constant 0 : i32
    %c0_i32_0 = arith.constant 0 : i32
    %c0_i32_1 = arith.constant 0 : i32
    return %c0_i32, %c0_i32_0 : i32, i32
  }
  func.func @transform_9(%arg0: i32) -> (i32, i32) {
    %c0_i32 = arith.constant 0 : i32
    %c0_i32_0 = arith.constant 0 : i32
    %c0_i32_1 = arith.constant 0 : i32
    return %c0_i32, %c0_i32_0 : i32, i32
  }
  func.func @transform_10(%arg0: i32) -> (i32, i32, i32) {
    %c0_i32 = arith.constant 0 : i32
    %c0_i32_0 = arith.constant 0 : i32
    %c0_i32_1 = arith.constant 0 : i32
    return %arg0, %c0_i32, %c0_i32_0 : i32, i32, i32
  }
}

module attributes {stable_mosaic.version = 11 : i64} {
  func.func @_mha_ln_kernel(%arg0: i32, %arg1: memref<1x6x32xf32, #tpu.memory_space<vmem>>, %arg2: memref<1x36x32xf32, #tpu.memory_space<vmem>>, %arg3: memref<32x32xf32, #tpu.memory_space<vmem>>, %arg4: memref<1x32xf32, #tpu.memory_space<vmem>>, %arg5: memref<32x64xf32, #tpu.memory_space<vmem>>, %arg6: memref<1x64xf32, #tpu.memory_space<vmem>>, %arg7: memref<32x32xf32, #tpu.memory_space<vmem>>, %arg8: memref<1x32xf32, #tpu.memory_space<vmem>>, %arg9: memref<1x32xf32, #tpu.memory_space<vmem>>, %arg10: memref<1x32xf32, #tpu.memory_space<vmem>>, %arg11: memref<1x6x32xf32, #tpu.memory_space<vmem>>) attributes {dimension_semantics = [#tpu.dimension_semantics<parallel>], iteration_bounds = array<i64: 2>, scalar_prefetch = 0 : i64, scratch_operands = 0 : i64, tpu.core_type = #tpu.core_type<tc>, window_params = [{transform_indices = @transform_0, window_bounds = array<i64: 1, 6, 32>}, {transform_indices = @transform_1, window_bounds = array<i64: 1, 36, 32>}, {pipeline_mode = #tpu.pipeline_mode<synchronous>, transform_indices = @transform_2, window_bounds = array<i64: 32, 32>}, {pipeline_mode = #tpu.pipeline_mode<synchronous>, transform_indices = @transform_3, window_bounds = array<i64: 1, 32>}, {pipeline_mode = #tpu.pipeline_mode<synchronous>, transform_indices = @transform_4, window_bounds = array<i64: 32, 64>}, {pipeline_mode = #tpu.pipeline_mode<synchronous>, transform_indices = @transform_5, window_bounds = array<i64: 1, 64>}, {pipeline_mode = #tpu.pipeline_mode<synchronous>, transform_indices = @transform_6, window_bounds = array<i64: 32, 32>}, {pipeline_mode = #tpu.pipeline_mode<synchronous>, transform_indices = @transform_7, window_bounds = array<i64: 1, 32>}, {pipeline_mode = #tpu.pipeline_mode<synchronous>, transform_indices = @transform_8, window_bounds = array<i64: 1, 32>}, {pipeline_mode = #tpu.pipeline_mode<synchronous>, transform_indices = @transform_9, window_bounds = array<i64: 1, 32>}, {transform_indices = @transform_10, window_bounds = array<i64: 1, 6, 32>}]} {
    %c0 = arith.constant 0 : index
    %c0_0 = arith.constant 0 : index
    %c0_1 = arith.constant 0 : index
    %0 = vector.load %arg1[%c0, %c0_0, %c0_1] : memref<1x6x32xf32, #tpu.memory_space<vmem>>, vector<1x6x32xf32>
    %1 = vector.shape_cast %0 : vector<1x6x32xf32> to vector<6x32xf32>
    %c0_2 = arith.constant 0 : index
    %c0_3 = arith.constant 0 : index
    %c0_4 = arith.constant 0 : index
    %2 = vector.load %arg2[%c0_2, %c0_3, %c0_4] : memref<1x36x32xf32, #tpu.memory_space<vmem>>, vector<1x36x32xf32>
    %3 = vector.shape_cast %2 : vector<1x36x32xf32> to vector<36x32xf32>
    %c0_5 = arith.constant 0 : index
    %c0_6 = arith.constant 0 : index
    %4 = vector.load %arg3[%c0_5, %c0_6] : memref<32x32xf32, #tpu.memory_space<vmem>>, vector<32x32xf32>
    %cst = arith.constant dense<0.000000e+00> : vector<6x32xf32>
    %5 = tpu.matmul %1, %4, %cst {dimension_numbers = #tpu.dot_dimension_numbers<[1], [0], [0], [1], [0, 0, 1, 1], [], []>} : vector<6x32xf32>, vector<32x32xf32>, vector<6x32xf32> -> vector<6x32xf32>
    %c0_7 = arith.constant 0 : index
    %c0_8 = arith.constant 0 : index
    %6 = vector.load %arg4[%c0_7, %c0_8] : memref<1x32xf32, #tpu.memory_space<vmem>>, vector<1x32xf32>
    %7 = vector.broadcast %6 : vector<1x32xf32> to vector<6x32xf32>
    %8 = arith.addf %5, %7 : vector<6x32xf32>
    %c0_9 = arith.constant 0 : index
    %c0_10 = arith.constant 0 : index
    %9 = vector.load %arg5[%c0_9, %c0_10] : memref<32x64xf32, #tpu.memory_space<vmem>>, vector<32x64xf32>
    %cst_11 = arith.constant dense<0.000000e+00> : vector<36x64xf32>
    %10 = tpu.matmul %3, %9, %cst_11 {dimension_numbers = #tpu.dot_dimension_numbers<[1], [0], [0], [1], [0, 0, 1, 1], [], []>} : vector<36x32xf32>, vector<32x64xf32>, vector<36x64xf32> -> vector<36x64xf32>
    %c0_12 = arith.constant 0 : index
    %c0_13 = arith.constant 0 : index
    %11 = vector.load %arg6[%c0_12, %c0_13] : memref<1x64xf32, #tpu.memory_space<vmem>>, vector<1x64xf32>
    %12 = vector.broadcast %11 : vector<1x64xf32> to vector<36x64xf32>
    %13 = arith.addf %10, %12 : vector<36x64xf32>
    %14 = vector.extract_strided_slice %8 {offsets = [0, 0], sizes = [6, 8], strides = [1, 1]} : vector<6x32xf32> to vector<6x8xf32>
    %15 = vector.extract_strided_slice %13 {offsets = [0, 0], sizes = [36, 8], strides = [1, 1]} : vector<36x64xf32> to vector<36x8xf32>
    %16 = vector.extract_strided_slice %13 {offsets = [0, 32], sizes = [36, 8], strides = [1, 1]} : vector<36x64xf32> to vector<36x8xf32>
    %cst_14 = arith.constant dense<0.000000e+00> : vector<6x36xf32>
    %17 = tpu.matmul %14, %15, %cst_14 {dimension_numbers = #tpu.dot_dimension_numbers<[1], [1], [0], [0], [0, 0, 1, 0], [], []>} : vector<6x8xf32>, vector<36x8xf32>, vector<6x36xf32> -> vector<6x36xf32>
    %cst_15 = arith.constant 0.353553385 : f32
    %18 = vector.broadcast %cst_15 : f32 to vector<6x36xf32>
    %19 = arith.mulf %17, %18 : vector<6x36xf32>
    %cst_16 = arith.constant dense<0xFF800000> : vector<6xf32>
    %20 = vector.multi_reduction <maximumf>, %19, %cst_16 [1] : vector<6x36xf32> to vector<6xf32>
    %21 = vector.shape_cast %20 : vector<6xf32> to vector<6x1xf32>
    %22 = vector.broadcast %21 : vector<6x1xf32> to vector<6x36xf32>
    %23 = arith.subf %19, %22 : vector<6x36xf32>
    %24 = math.exp %23 : vector<6x36xf32>
    %cst_17 = arith.constant dense<0.000000e+00> : vector<6xf32>
    %25 = vector.multi_reduction <add>, %24, %cst_17 [1] : vector<6x36xf32> to vector<6xf32>
    %26 = vector.shape_cast %25 : vector<6xf32> to vector<6x1xf32>
    %27 = tpu.reciprocal %26 {approx = true} : vector<6x1xf32> -> vector<6x1xf32>
    %28 = vector.broadcast %27 : vector<6x1xf32> to vector<6x36xf32>
    %29 = arith.mulf %24, %28 : vector<6x36xf32>
    %cst_18 = arith.constant dense<0.000000e+00> : vector<6x8xf32>
    %30 = tpu.matmul %29, %16, %cst_18 {dimension_numbers = #tpu.dot_dimension_numbers<[1], [0], [0], [1], [0, 0, 1, 1], [], []>} : vector<6x36xf32>, vector<36x8xf32>, vector<6x8xf32> -> vector<6x8xf32>
    %31 = vector.extract_strided_slice %8 {offsets = [0, 8], sizes = [6, 8], strides = [1, 1]} : vector<6x32xf32> to vector<6x8xf32>
    %32 = vector.extract_strided_slice %13 {offsets = [0, 8], sizes = [36, 8], strides = [1, 1]} : vector<36x64xf32> to vector<36x8xf32>
    %33 = vector.extract_strided_slice %13 {offsets = [0, 40], sizes = [36, 8], strides = [1, 1]} : vector<36x64xf32> to vector<36x8xf32>
    %cst_19 = arith.constant dense<0.000000e+00> : vector<6x36xf32>
    %34 = tpu.matmul %31, %32, %cst_19 {dimension_numbers = #tpu.dot_dimension_numbers<[1], [1], [0], [0], [0, 0, 1, 0], [], []>} : vector<6x8xf32>, vector<36x8xf32>, vector<6x36xf32> -> vector<6x36xf32>
    %cst_20 = arith.constant 0.353553385 : f32
    %35 = vector.broadcast %cst_20 : f32 to vector<6x36xf32>
    %36 = arith.mulf %34, %35 : vector<6x36xf32>
    %cst_21 = arith.constant dense<0xFF800000> : vector<6xf32>
    %37 = vector.multi_reduction <maximumf>, %36, %cst_21 [1] : vector<6x36xf32> to vector<6xf32>
    %38 = vector.shape_cast %37 : vector<6xf32> to vector<6x1xf32>
    %39 = vector.broadcast %38 : vector<6x1xf32> to vector<6x36xf32>
    %40 = arith.subf %36, %39 : vector<6x36xf32>
    %41 = math.exp %40 : vector<6x36xf32>
    %cst_22 = arith.constant dense<0.000000e+00> : vector<6xf32>
    %42 = vector.multi_reduction <add>, %41, %cst_22 [1] : vector<6x36xf32> to vector<6xf32>
    %43 = vector.shape_cast %42 : vector<6xf32> to vector<6x1xf32>
    %44 = tpu.reciprocal %43 {approx = true} : vector<6x1xf32> -> vector<6x1xf32>
    %45 = vector.broadcast %44 : vector<6x1xf32> to vector<6x36xf32>
    %46 = arith.mulf %41, %45 : vector<6x36xf32>
    %cst_23 = arith.constant dense<0.000000e+00> : vector<6x8xf32>
    %47 = tpu.matmul %46, %33, %cst_23 {dimension_numbers = #tpu.dot_dimension_numbers<[1], [0], [0], [1], [0, 0, 1, 1], [], []>} : vector<6x36xf32>, vector<36x8xf32>, vector<6x8xf32> -> vector<6x8xf32>
    %48 = vector.extract_strided_slice %8 {offsets = [0, 16], sizes = [6, 8], strides = [1, 1]} : vector<6x32xf32> to vector<6x8xf32>
    %49 = vector.extract_strided_slice %13 {offsets = [0, 16], sizes = [36, 8], strides = [1, 1]} : vector<36x64xf32> to vector<36x8xf32>
    %50 = vector.extract_strided_slice %13 {offsets = [0, 48], sizes = [36, 8], strides = [1, 1]} : vector<36x64xf32> to vector<36x8xf32>
    %cst_24 = arith.constant dense<0.000000e+00> : vector<6x36xf32>
    %51 = tpu.matmul %48, %49, %cst_24 {dimension_numbers = #tpu.dot_dimension_numbers<[1], [1], [0], [0], [0, 0, 1, 0], [], []>} : vector<6x8xf32>, vector<36x8xf32>, vector<6x36xf32> -> vector<6x36xf32>
    %cst_25 = arith.constant 0.353553385 : f32
    %52 = vector.broadcast %cst_25 : f32 to vector<6x36xf32>
    %53 = arith.mulf %51, %52 : vector<6x36xf32>
    %cst_26 = arith.constant dense<0xFF800000> : vector<6xf32>
    %54 = vector.multi_reduction <maximumf>, %53, %cst_26 [1] : vector<6x36xf32> to vector<6xf32>
    %55 = vector.shape_cast %54 : vector<6xf32> to vector<6x1xf32>
    %56 = vector.broadcast %55 : vector<6x1xf32> to vector<6x36xf32>
    %57 = arith.subf %53, %56 : vector<6x36xf32>
    %58 = math.exp %57 : vector<6x36xf32>
    %cst_27 = arith.constant dense<0.000000e+00> : vector<6xf32>
    %59 = vector.multi_reduction <add>, %58, %cst_27 [1] : vector<6x36xf32> to vector<6xf32>
    %60 = vector.shape_cast %59 : vector<6xf32> to vector<6x1xf32>
    %61 = tpu.reciprocal %60 {approx = true} : vector<6x1xf32> -> vector<6x1xf32>
    %62 = vector.broadcast %61 : vector<6x1xf32> to vector<6x36xf32>
    %63 = arith.mulf %58, %62 : vector<6x36xf32>
    %cst_28 = arith.constant dense<0.000000e+00> : vector<6x8xf32>
    %64 = tpu.matmul %63, %50, %cst_28 {dimension_numbers = #tpu.dot_dimension_numbers<[1], [0], [0], [1], [0, 0, 1, 1], [], []>} : vector<6x36xf32>, vector<36x8xf32>, vector<6x8xf32> -> vector<6x8xf32>
    %65 = vector.extract_strided_slice %8 {offsets = [0, 24], sizes = [6, 8], strides = [1, 1]} : vector<6x32xf32> to vector<6x8xf32>
    %66 = vector.extract_strided_slice %13 {offsets = [0, 24], sizes = [36, 8], strides = [1, 1]} : vector<36x64xf32> to vector<36x8xf32>
    %67 = vector.extract_strided_slice %13 {offsets = [0, 56], sizes = [36, 8], strides = [1, 1]} : vector<36x64xf32> to vector<36x8xf32>
    %cst_29 = arith.constant dense<0.000000e+00> : vector<6x36xf32>
    %68 = tpu.matmul %65, %66, %cst_29 {dimension_numbers = #tpu.dot_dimension_numbers<[1], [1], [0], [0], [0, 0, 1, 0], [], []>} : vector<6x8xf32>, vector<36x8xf32>, vector<6x36xf32> -> vector<6x36xf32>
    %cst_30 = arith.constant 0.353553385 : f32
    %69 = vector.broadcast %cst_30 : f32 to vector<6x36xf32>
    %70 = arith.mulf %68, %69 : vector<6x36xf32>
    %cst_31 = arith.constant dense<0xFF800000> : vector<6xf32>
    %71 = vector.multi_reduction <maximumf>, %70, %cst_31 [1] : vector<6x36xf32> to vector<6xf32>
    %72 = vector.shape_cast %71 : vector<6xf32> to vector<6x1xf32>
    %73 = vector.broadcast %72 : vector<6x1xf32> to vector<6x36xf32>
    %74 = arith.subf %70, %73 : vector<6x36xf32>
    %75 = math.exp %74 : vector<6x36xf32>
    %cst_32 = arith.constant dense<0.000000e+00> : vector<6xf32>
    %76 = vector.multi_reduction <add>, %75, %cst_32 [1] : vector<6x36xf32> to vector<6xf32>
    %77 = vector.shape_cast %76 : vector<6xf32> to vector<6x1xf32>
    %78 = tpu.reciprocal %77 {approx = true} : vector<6x1xf32> -> vector<6x1xf32>
    %79 = vector.broadcast %78 : vector<6x1xf32> to vector<6x36xf32>
    %80 = arith.mulf %75, %79 : vector<6x36xf32>
    %cst_33 = arith.constant dense<0.000000e+00> : vector<6x8xf32>
    %81 = tpu.matmul %80, %67, %cst_33 {dimension_numbers = #tpu.dot_dimension_numbers<[1], [0], [0], [1], [0, 0, 1, 1], [], []>} : vector<6x36xf32>, vector<36x8xf32>, vector<6x8xf32> -> vector<6x8xf32>
    %82 = tpu.concatenate %30, %47, %64, %81 in 1 : vector<6x8xf32>, vector<6x8xf32>, vector<6x8xf32>, vector<6x8xf32> -> vector<6x32xf32>
    %c0_34 = arith.constant 0 : index
    %c0_35 = arith.constant 0 : index
    %83 = vector.load %arg7[%c0_34, %c0_35] : memref<32x32xf32, #tpu.memory_space<vmem>>, vector<32x32xf32>
    %cst_36 = arith.constant dense<0.000000e+00> : vector<6x32xf32>
    %84 = tpu.matmul %82, %83, %cst_36 {dimension_numbers = #tpu.dot_dimension_numbers<[1], [0], [0], [1], [0, 0, 1, 1], [], []>} : vector<6x32xf32>, vector<32x32xf32>, vector<6x32xf32> -> vector<6x32xf32>
    %c0_37 = arith.constant 0 : index
    %c0_38 = arith.constant 0 : index
    %85 = vector.load %arg8[%c0_37, %c0_38] : memref<1x32xf32, #tpu.memory_space<vmem>>, vector<1x32xf32>
    %86 = vector.broadcast %85 : vector<1x32xf32> to vector<6x32xf32>
    %87 = arith.addf %84, %86 : vector<6x32xf32>
    %88 = arith.addf %1, %87 : vector<6x32xf32>
    %c0_39 = arith.constant 0 : index
    %c0_40 = arith.constant 0 : index
    %89 = vector.load %arg9[%c0_39, %c0_40] : memref<1x32xf32, #tpu.memory_space<vmem>>, vector<1x32xf32>
    %c0_41 = arith.constant 0 : index
    %c0_42 = arith.constant 0 : index
    %90 = vector.load %arg10[%c0_41, %c0_42] : memref<1x32xf32, #tpu.memory_space<vmem>>, vector<1x32xf32>
    %cst_43 = arith.constant dense<0.000000e+00> : vector<6xf32>
    %91 = vector.multi_reduction <add>, %88, %cst_43 [1] : vector<6x32xf32> to vector<6xf32>
    %92 = vector.shape_cast %91 : vector<6xf32> to vector<6x1xf32>
    %cst_44 = arith.constant 3.200000e+01 : f32
    %93 = vector.broadcast %cst_44 : f32 to vector<6x1xf32>
    %94 = arith.divf %92, %93 : vector<6x1xf32>
    %95 = vector.broadcast %94 : vector<6x1xf32> to vector<6x32xf32>
    %96 = arith.subf %88, %95 : vector<6x32xf32>
    %97 = arith.mulf %96, %96 : vector<6x32xf32>
    %cst_45 = arith.constant dense<0.000000e+00> : vector<6xf32>
    %98 = vector.multi_reduction <add>, %97, %cst_45 [1] : vector<6x32xf32> to vector<6xf32>
    %99 = vector.shape_cast %98 : vector<6xf32> to vector<6x1xf32>
    %cst_46 = arith.constant 3.200000e+01 : f32
    %100 = vector.broadcast %cst_46 : f32 to vector<6x1xf32>
    %101 = arith.divf %99, %100 : vector<6x1xf32>
    %cst_47 = arith.constant 9.99999974E-6 : f32
    %102 = vector.broadcast %cst_47 : f32 to vector<6x1xf32>
    %103 = arith.addf %101, %102 : vector<6x1xf32>
    %104 = math.rsqrt %103 : vector<6x1xf32>
    %105 = vector.broadcast %94 : vector<6x1xf32> to vector<6x32xf32>
    %106 = arith.subf %88, %105 : vector<6x32xf32>
    %107 = vector.broadcast %104 : vector<6x1xf32> to vector<6x32xf32>
    %108 = arith.mulf %106, %107 : vector<6x32xf32>
    %109 = vector.broadcast %89 : vector<1x32xf32> to vector<6x32xf32>
    %110 = arith.mulf %108, %109 : vector<6x32xf32>
    %111 = vector.broadcast %90 : vector<1x32xf32> to vector<6x32xf32>
    %112 = arith.addf %110, %111 : vector<6x32xf32>
    %c0_48 = arith.constant 0 : index
    %c0_49 = arith.constant 0 : index
    %c0_50 = arith.constant 0 : index
    %113 = vector.load %arg11[%c0_48, %c0_49, %c0_50] : memref<1x6x32xf32, #tpu.memory_space<vmem>>, vector<1x6x32xf32>
    %114 = vector.shape_cast %113 : vector<1x6x32xf32> to vector<6x32xf32>
    %115 = vector.shape_cast %112 : vector<6x32xf32> to vector<1x6x32xf32>
    tpu.vector_store %arg11[%c0_48, %c0_49, %c0_50], %115 {strides = array<i32>} : memref<1x6x32xf32, #tpu.memory_space<vmem>>, vector<1x6x32xf32>,
    return
  }
  func.func @transform_0(%arg0: i32) -> (i32, i32, i32) {
    %c0_i32 = arith.constant 0 : i32
    %c0_i32_0 = arith.constant 0 : i32
    %c0_i32_1 = arith.constant 0 : i32
    return %arg0, %c0_i32, %c0_i32_0 : i32, i32, i32
  }
  func.func @transform_1(%arg0: i32) -> (i32, i32, i32) {
    %c0_i32 = arith.constant 0 : i32
    %c0_i32_0 = arith.constant 0 : i32
    %c0_i32_1 = arith.constant 0 : i32
    return %arg0, %c0_i32, %c0_i32_0 : i32, i32, i32
  }
  func.func @transform_2(%arg0: i32) -> (i32, i32) {
    %c0_i32 = arith.constant 0 : i32
    %c0_i32_0 = arith.constant 0 : i32
    %c0_i32_1 = arith.constant 0 : i32
    return %c0_i32, %c0_i32_0 : i32, i32
  }
  func.func @transform_3(%arg0: i32) -> (i32, i32) {
    %c0_i32 = arith.constant 0 : i32
    %c0_i32_0 = arith.constant 0 : i32
    %c0_i32_1 = arith.constant 0 : i32
    return %c0_i32, %c0_i32_0 : i32, i32
  }
  func.func @transform_4(%arg0: i32) -> (i32, i32) {
    %c0_i32 = arith.constant 0 : i32
    %c0_i32_0 = arith.constant 0 : i32
    %c0_i32_1 = arith.constant 0 : i32
    return %c0_i32, %c0_i32_0 : i32, i32
  }
  func.func @transform_5(%arg0: i32) -> (i32, i32) {
    %c0_i32 = arith.constant 0 : i32
    %c0_i32_0 = arith.constant 0 : i32
    %c0_i32_1 = arith.constant 0 : i32
    return %c0_i32, %c0_i32_0 : i32, i32
  }
  func.func @transform_6(%arg0: i32) -> (i32, i32) {
    %c0_i32 = arith.constant 0 : i32
    %c0_i32_0 = arith.constant 0 : i32
    %c0_i32_1 = arith.constant 0 : i32
    return %c0_i32, %c0_i32_0 : i32, i32
  }
  func.func @transform_7(%arg0: i32) -> (i32, i32) {
    %c0_i32 = arith.constant 0 : i32
    %c0_i32_0 = arith.constant 0 : i32
    %c0_i32_1 = arith.constant 0 : i32
    return %c0_i32, %c0_i32_0 : i32, i32
  }
  func.func @transform_8(%arg0: i32) -> (i32, i32) {
    %c0_i32 = arith.constant 0 : i32
    %c0_i32_0 = arith.constant 0 : i32
    %c0_i32_1 = arith.constant 0 : i32
    return %c0_i32, %c0_i32_0 : i32, i32
  }
  func.func @transform_9(%arg0: i32) -> (i32, i32) {
    %c0_i32 = arith.constant 0 : i32
    %c0_i32_0 = arith.constant 0 : i32
    %c0_i32_1 = arith.constant 0 : i32
    return %c0_i32, %c0_i32_0 : i32, i32
  }
  func.func @transform_10(%arg0: i32) -> (i32, i32, i32) {
    %c0_i32 = arith.constant 0 : i32
    %c0_i32_0 = arith.constant 0 : i32
    %c0_i32_1 = arith.constant 0 : i32
    return %arg0, %c0_i32, %c0_i32_0 : i32, i32, i32
  }
}

module attributes {stable_mosaic.version = 11 : i64} {
  func.func @_mlp2_kernel(%arg0: i32, %arg1: memref<16x32xf32, #tpu.memory_space<vmem>>, %arg2: memref<32x32xf32, #tpu.memory_space<vmem>>, %arg3: memref<1x32xf32, #tpu.memory_space<vmem>>, %arg4: memref<32x8xf32, #tpu.memory_space<vmem>>, %arg5: memref<1x8xf32, #tpu.memory_space<vmem>>, %arg6: memref<16x8xf32, #tpu.memory_space<vmem>>) attributes {dimension_semantics = [#tpu.dimension_semantics<parallel>], iteration_bounds = array<i64: 1>, scalar_prefetch = 0 : i64, scratch_operands = 0 : i64, tpu.core_type = #tpu.core_type<tc>, window_params = [{transform_indices = @transform_0, window_bounds = array<i64: 16, 32>}, {pipeline_mode = #tpu.pipeline_mode<synchronous>, transform_indices = @transform_1, window_bounds = array<i64: 32, 32>}, {pipeline_mode = #tpu.pipeline_mode<synchronous>, transform_indices = @transform_2, window_bounds = array<i64: 1, 32>}, {pipeline_mode = #tpu.pipeline_mode<synchronous>, transform_indices = @transform_3, window_bounds = array<i64: 32, 8>}, {pipeline_mode = #tpu.pipeline_mode<synchronous>, transform_indices = @transform_4, window_bounds = array<i64: 1, 8>}, {transform_indices = @transform_5, window_bounds = array<i64: 16, 8>}]} {
    %c0 = arith.constant 0 : index
    %c0_0 = arith.constant 0 : index
    %0 = vector.load %arg1[%c0, %c0_0] : memref<16x32xf32, #tpu.memory_space<vmem>>, vector<16x32xf32>
    %c0_1 = arith.constant 0 : index
    %c0_2 = arith.constant 0 : index
    %1 = vector.load %arg2[%c0_1, %c0_2] : memref<32x32xf32, #tpu.memory_space<vmem>>, vector<32x32xf32>
    %cst = arith.constant dense<0.000000e+00> : vector<16x32xf32>
    %2 = tpu.matmul %0, %1, %cst {dimension_numbers = #tpu.dot_dimension_numbers<[1], [0], [0], [1], [0, 0, 1, 1], [], []>} : vector<16x32xf32>, vector<32x32xf32>, vector<16x32xf32> -> vector<16x32xf32>
    %c0_3 = arith.constant 0 : index
    %c0_4 = arith.constant 0 : index
    %3 = vector.load %arg3[%c0_3, %c0_4] : memref<1x32xf32, #tpu.memory_space<vmem>>, vector<1x32xf32>
    %4 = vector.broadcast %3 : vector<1x32xf32> to vector<16x32xf32>
    %5 = arith.addf %2, %4 : vector<16x32xf32>
    %cst_5 = arith.constant 0.000000e+00 : f32
    %6 = vector.broadcast %cst_5 : f32 to vector<16x32xf32>
    %7 = arith.maximumf %5, %6 : vector<16x32xf32>
    %c0_6 = arith.constant 0 : index
    %c0_7 = arith.constant 0 : index
    %8 = vector.load %arg4[%c0_6, %c0_7] : memref<32x8xf32, #tpu.memory_space<vmem>>, vector<32x8xf32>
    %cst_8 = arith.constant dense<0.000000e+00> : vector<16x8xf32>
    %9 = tpu.matmul %7, %8, %cst_8 {dimension_numbers = #tpu.dot_dimension_numbers<[1], [0], [0], [1], [0, 0, 1, 1], [], []>} : vector<16x32xf32>, vector<32x8xf32>, vector<16x8xf32> -> vector<16x8xf32>
    %c0_9 = arith.constant 0 : index
    %c0_10 = arith.constant 0 : index
    %10 = vector.load %arg5[%c0_9, %c0_10] : memref<1x8xf32, #tpu.memory_space<vmem>>, vector<1x8xf32>
    %11 = vector.broadcast %10 : vector<1x8xf32> to vector<16x8xf32>
    %12 = arith.addf %9, %11 : vector<16x8xf32>
    %c0_11 = arith.constant 0 : index
    %c0_12 = arith.constant 0 : index
    %13 = vector.load %arg6[%c0_11, %c0_12] : memref<16x8xf32, #tpu.memory_space<vmem>>, vector<16x8xf32>
    tpu.vector_store %arg6[%c0_11, %c0_12], %12 {strides = array<i32>} : memref<16x8xf32, #tpu.memory_space<vmem>>, vector<16x8xf32>,
    return
  }
  func.func @transform_0(%arg0: i32) -> (i32, i32) {
    %c0_i32 = arith.constant 0 : i32
    %c0_i32_0 = arith.constant 0 : i32
    return %arg0, %c0_i32 : i32, i32
  }
  func.func @transform_1(%arg0: i32) -> (i32, i32) {
    %c0_i32 = arith.constant 0 : i32
    %c0_i32_0 = arith.constant 0 : i32
    %c0_i32_1 = arith.constant 0 : i32
    return %c0_i32, %c0_i32_0 : i32, i32
  }
  func.func @transform_2(%arg0: i32) -> (i32, i32) {
    %c0_i32 = arith.constant 0 : i32
    %c0_i32_0 = arith.constant 0 : i32
    %c0_i32_1 = arith.constant 0 : i32
    return %c0_i32, %c0_i32_0 : i32, i32
  }
  func.func @transform_3(%arg0: i32) -> (i32, i32) {
    %c0_i32 = arith.constant 0 : i32
    %c0_i32_0 = arith.constant 0 : i32
    %c0_i32_1 = arith.constant 0 : i32
    return %c0_i32, %c0_i32_0 : i32, i32
  }
  func.func @transform_4(%arg0: i32) -> (i32, i32) {
    %c0_i32 = arith.constant 0 : i32
    %c0_i32_0 = arith.constant 0 : i32
    %c0_i32_1 = arith.constant 0 : i32
    return %c0_i32, %c0_i32_0 : i32, i32
  }
  func.func @transform_5(%arg0: i32) -> (i32, i32) {
    %c0_i32 = arith.constant 0 : i32
    %c0_i32_0 = arith.constant 0 : i32
    return %arg0, %c0_i32 : i32, i32
  }
}

</mosaic_0001>

<bundles_post_ra>
// kernel: forward.22
= control target key start
LH: loop header
LB: loop body
LE: loop exit
PB: predicated region body
PF: predicated region fallthrough
CT: control target
= control target key end

     0   :  { %v253_v0 = vmov 0.0   ;;  %vm34_vm0 = vcmask 261120   ;;  %vm254_vm1 = vmmov 0   ;;  %s371_s1 = inlined_call_operand.vmem [shape: f32[32,32], index: 1, kind: input, shape index: {}]   ;;  %s372_s0 = inlined_call_operand.vmem [shape: f32[72,32], index: 0, kind: input, shape index: {}]   ;;  %s373_s2 = inlined_call_operand.vmem [shape: f32[1,32], index: 2, kind: input, shape index: {}]   ;;  %s374_s3 = inlined_call_operand.vmem [shape: f32[72,32], index: 3, kind: output, shape index: {}]  }
   0x1   :  { %208 = vmatprep.subr.mxu0 %v253_v0  ;;  %v26_v1 = vld [vmem:[%s371_s1 + $0x18] sm:$0xff]  ;;  %243 = vmatprep.subr.mxu1 %v253_v0  ;;  %v25_v2 = vld [vmem:[%s371_s1 + $0x10] sm:$0xff]  ;;  %v24_v3 = vld [vmem:[%s371_s1 + $0x8] sm:$0xff] }
   0x2   :  { %209 = vmatpush3.msra.mxu0 %v26_v1  ;;  %247 = vmatpush3.msra.mxu1 %v26_v1  ;;  %v23_v4 = vld [vmem:[%s371_s1] sm:$0xff]  ;;  %v19_v6 = vld [vmem:[%s372_s0 + $0x28] sm:$0xff]  ;;  %v20_v8 = vld [vmem:[%s372_s0 + $0x30] sm:$0xff] }
   0x3   :  { %210 = vmatprep.subr.mxu0 %v253_v0  ;;  %244 = vmatprep.subr.mxu1 %v253_v0  ;;  %v14_v5 = vld [vmem:[%s372_s0] sm:$0xff]  ;;  %v15_v7 = vld [vmem:[%s372_s0 + $0x8] sm:$0xff]  ;;  %v16_v9 = vld [vmem:[%s372_s0 + $0x10] sm:$0xff] }
   0x4   :  { %211 = vmatpush3.msra.mxu0 %v25_v2  ;;  %248 = vmatpush3.msra.mxu1 %v25_v2  ;;  %v21_v10 = vld [vmem:[%s372_s0 + $0x38] sm:$0xff]  ;;  %v22_v12 = vld [vmem:[%s372_s0 + $0x40] sm:$0xff] }
   0x5   :  { %212 = vmatprep.subr.mxu0 %v253_v0  ;;  %245 = vmatprep.subr.mxu1 %v253_v0  ;;  %v17_v11 = vld [vmem:[%s372_s0 + $0x18] sm:$0xff]  ;;  %v18_v13 = vld [vmem:[%s372_s0 + $0x20] sm:$0xff] }
   0x6   :  { %213 = vmatpush3.msra.mxu0 %v24_v3  ;;  %249 = vmatpush3.msra.mxu1 %v24_v3  ;;  %v185_v14 = vld [vmem:[%s373_s2] ss:$0 sm:$0xff] }
   0x7   :  { %214 = vmatprep.subr.mxu0 %v253_v0  ;;  %216 = vmatprep.mubr.msk.f32.mxu0 %vm254_vm1, %v253_v0 }
   0x8   :  { %215 = vmatpush3.msra.mxu0 %v23_v4  ;;  %246 = vmatprep.subr.mxu1 %v253_v0 }
   0x9   :  { %217 = vmatmul.mubr.msk.f32.vlgmr.msra.gmra.mxu0 %vm34_vm0, %v14_v5  ;;  %250 = vmatpush3.msra.mxu1 %v23_v4 }
   0xa   :  { %231 = vmatprep.mubr.msk.f32.mxu1 %vm254_vm1, %v253_v0  ;;  %219 = vmatprep.mubr.msk.f32.mxu0 %vm254_vm1, %v253_v0 }
   0xb   :  { %232 = vmatmul.mubr.msk.f32.vlgmr.msra.gmra.mxu1 %vm34_vm0, %v19_v6 }
   0xc   :  { %234 = vmatprep.mubr.msk.f32.mxu1 %vm254_vm1, %v253_v0 }
   0xd   :  { %220 = vmatmul.mubr.msk.f32.gmra.mxu0 %vm34_vm0, %v15_v7 }
   0xe   :  { %222 = vmatprep.mubr.msk.f32.mxu0 %vm254_vm1, %v253_v0 }
   0xf   :  { %235 = vmatmul.mubr.msk.f32.gmra.mxu1 %vm34_vm0, %v20_v8 }
  0x10   :  { %237 = vmatprep.mubr.msk.f32.mxu1 %vm254_vm1, %v253_v0 }
  0x11   :  { %223 = vmatmul.mubr.msk.f32.gmra.mxu0 %vm34_vm0, %v16_v9 }
  0x12   :  { %225 = vmatprep.mubr.msk.f32.mxu0 %vm254_vm1, %v253_v0 }
  0x13   :  { %238 = vmatmul.mubr.msk.f32.gmra.mxu1 %vm34_vm0, %v21_v10 }
  0x14   :  { %240 = vmatprep.mubr.msk.f32.mxu1 %vm254_vm1, %v253_v0 }
  0x15   :  { %226 = vmatmul.mubr.msk.f32.gmra.mxu0 %vm34_vm0, %v17_v11 }
  0x16   :  { %228 = vmatprep.mubr.msk.f32.mxu0 %vm254_vm1, %v253_v0 }
  0x17   :  { %241 = vmatmul.mubr.msk.f32.gmra.mxu1 %vm34_vm0, %v22_v12 }
  0x19   :  { %229 = vmatmul.mubr.msk.f32.gmra.mxu0 %vm34_vm0, %v18_v13 }
  0xc9   :  { %v128_v15 = vpop.f32.mrf.mxu0 }
  0xca   :  { %v129_v16 = vadd.f32 %v185_v14, %v128_v15 }
  0xcb   :  { %v218_v17 = vpop.f32.mrf.mxu0  ;;  %v153_v18 = vpop.f32.mrf.mxu1 }
  0xcc   :  { %172 = vst.msk [vmem:[%s374_s3] sm:$0xff] %vm34_vm0, %v129_v16  ;;  %v154_v19 = vadd.f32 %v185_v14, %v153_v18 }
  0xcd   :  { %v133_v20 = vpop.f32.mrf.mxu0  ;;  %v233_v21 = vpop.f32.mrf.mxu1 }
  0xce   :  { %177 = vst.msk [vmem:[%s374_s3 + $0x28] sm:$0xff] %vm34_vm0, %v154_v19  ;;  %v134_v22 = vadd.f32 %v185_v14, %v133_v20 }
  0xcf   :  { %v221_v23 = vpop.f32.mrf.mxu0  ;;  %v158_v24 = vpop.f32.mrf.mxu1 }
  0xd0   :  { %173 = vst.msk [vmem:[%s374_s3 + $0x8] sm:$0xff] %vm34_vm0, %v134_v22  ;;  %v159_v25 = vadd.f32 %v185_v14, %v158_v24 }
  0xd1   :  { %v138_v26 = vpop.f32.mrf.mxu0  ;;  %v236_v27 = vpop.f32.mrf.mxu1 }
  0xd2   :  { %178 = vst.msk [vmem:[%s374_s3 + $0x30] sm:$0xff] %vm34_vm0, %v159_v25  ;;  %v139_v28 = vadd.f32 %v185_v14, %v138_v26 }
  0xd3   :  { %v224_v29 = vpop.f32.mrf.mxu0  ;;  %v163_v30 = vpop.f32.mrf.mxu1 }
  0xd4   :  { %174 = vst.msk [vmem:[%s374_s3 + $0x10] sm:$0xff] %vm34_vm0, %v139_v28  ;;  %v164_v31 = vadd.f32 %v185_v14, %v163_v30 }
  0xd5   :  { %v143_v32 = vpop.f32.mrf.mxu0  ;;  %v239_v33 = vpop.f32.mrf.mxu1 }
  0xd6   :  { %179 = vst.msk [vmem:[%s374_s3 + $0x38] sm:$0xff] %vm34_vm0, %v164_v31  ;;  %v144_v34 = vadd.f32 %v185_v14, %v143_v32 }
  0xd7   :  { %v227_v35 = vpop.f32.mrf.mxu0  ;;  %v168_v36 = vpop.f32.mrf.mxu1 }
  0xd8   :  { %175 = vst.msk [vmem:[%s374_s3 + $0x18] sm:$0xff] %vm34_vm0, %v144_v34  ;;  %v169_v37 = vadd.f32 %v185_v14, %v168_v36 }
  0xd9   :  { %v148_v38 = vpop.f32.mrf.mxu0  ;;  %v242_v39 = vpop.f32.mrf.mxu1 }
  0xda   :  { %180 = vst.msk [vmem:[%s374_s3 + $0x40] sm:$0xff] %vm34_vm0, %v169_v37  ;;  %v149_v40 = vadd.f32 %v185_v14, %v148_v38 }
  0xdb   :  { %v230_v41 = vpop.f32.mrf.mxu0 }
  0xdc   :  { %176 = vst.msk [vmem:[%s374_s3 + $0x20] sm:$0xff] %vm34_vm0, %v149_v40 }

// kernel: forward.27
= control target key start
LH: loop header
LB: loop body
LE: loop exit
PB: predicated region body
PF: predicated region fallthrough
CT: control target
= control target key end

     0   :  { %vm27_vm0 = vcmask 261120   ;;  %s186_s1 = inlined_call_operand.vmem [shape: f32[32,32], index: 1, kind: input, shape index: {}]   ;;  %s187_s0 = inlined_call_operand.vmem [shape: f32[12,32], index: 0, kind: input, shape index: {}]   ;;  %s188_s2 = inlined_call_operand.vmem [shape: f32[1,32], index: 2, kind: input, shape index: {}]   ;;  %s189_s3 = inlined_call_operand.vmem [shape: f32[12,32], index: 3, kind: output, shape index: {}]  }
   0x1   :  { %v19_v0 = vld [vmem:[%s186_s1 + $0x18] sm:$0xff]  ;;  %v18_v1 = vld [vmem:[%s186_s1 + $0x10] sm:$0xff]  ;;  %v14_v2 = vld [vmem:[%s187_s0] sm:$0xff] }
   0x2   :  { %124 = vmatprep.subr.mxu0 %v19_v0  ;;  %v17_v3 = vld [vmem:[%s186_s1 + $0x8] sm:$0xff]  ;;  %132 = vmatprep.mubr.msk.f32.mxu0 %vm27_vm0, %v14_v2  ;;  %v16_v4 = vld [vmem:[%s186_s1] sm:$0xff] }
   0x3   :  { %125 = vmatpush3.msra.mxu0 %v19_v0  ;;  %v15_v5 = vld [vmem:[%s187_s0 + $0x8] sm:$0xff]  ;;  %v115_v6 = vld [vmem:[%s188_s2] ss:$0 sm:$0xff] }
   0x4   :  { %126 = vmatprep.subr.mxu0 %v18_v1 }
   0x5   :  { %127 = vmatpush3.msra.mxu0 %v18_v1 }
   0x6   :  { %128 = vmatprep.subr.mxu0 %v17_v3 }
   0x7   :  { %129 = vmatpush3.msra.mxu0 %v17_v3 }
   0x8   :  { %130 = vmatprep.subr.mxu0 %v16_v4 }
   0x9   :  { %131 = vmatpush3.msra.mxu0 %v16_v4 }
   0xa   :  { %133 = vmatmul.mubr.msk.f32.vlgmr.msra.gmra.mxu0 %vm27_vm0, %v15_v5 }
  0xca   :  { %v134_v7 = vpop.f32.mrf.mxu0 }
  0xcb   :  { %v106_v8 = vadd.f32 %v134_v7, %v115_v6 }
  0xcc   :  { %v100_v9 = vpop.f32.mrf.mxu0 }
  0xcd   :  { %110 = vst.msk [vmem:[%s189_s3 + $0x8] sm:$0xff] %vm27_vm0, %v106_v8  ;;  %v101_v10 = vadd.f32 %v115_v6, %v100_v9 }
  0xcf   :  { %109 = vst.msk [vmem:[%s189_s3] sm:$0xff] %vm27_vm0, %v101_v10 }

// kernel: forward.21
= control target key start
LH: loop header
LB: loop body
LE: loop exit
PB: predicated region body
PF: predicated region fallthrough
CT: control target
= control target key end

     0   :  { %vm27_vm0 = vcmask 261120   ;;  %s184_s1 = inlined_call_operand.vmem [shape: f32[32,128], index: 1, kind: input, shape index: {}]   ;;  %s185_s0 = inlined_call_operand.vmem [shape: f32[12,32], index: 0, kind: input, shape index: {}]   ;;  %s186_s2 = inlined_call_operand.vmem [shape: f32[1,128], index: 2, kind: input, shape index: {}]   ;;  %s187_s3 = inlined_call_operand.vmem [shape: f32[12,128], index: 3, kind: output, shape index: {}]  }
   0x1   :  { %v19_v0 = vld [vmem:[%s184_s1 + $0x18] sm:$0xff]  ;;  %v18_v1 = vld [vmem:[%s184_s1 + $0x10] sm:$0xff]  ;;  %v14_v2 = vld [vmem:[%s185_s0] sm:$0xff] }
   0x2   :  { %124 = vmatprep.subr.mxu0 %v19_v0  ;;  %v17_v3 = vld [vmem:[%s184_s1 + $0x8] sm:$0xff]  ;;  %132 = vmatprep.mubr.msk.f32.mxu0 %vm27_vm0, %v14_v2  ;;  %v16_v4 = vld [vmem:[%s184_s1] sm:$0xff] }
   0x3   :  { %125 = vmatpush3.msra.mxu0 %v19_v0  ;;  %v15_v5 = vld [vmem:[%s185_s0 + $0x8] sm:$0xff]  ;;  %v115_v6 = vld [vmem:[%s186_s2] ss:$0 sm:$0xff] }
   0x4   :  { %126 = vmatprep.subr.mxu0 %v18_v1 }
   0x5   :  { %127 = vmatpush3.msra.mxu0 %v18_v1 }
   0x6   :  { %128 = vmatprep.subr.mxu0 %v17_v3 }
   0x7   :  { %129 = vmatpush3.msra.mxu0 %v17_v3 }
   0x8   :  { %130 = vmatprep.subr.mxu0 %v16_v4 }
   0x9   :  { %131 = vmatpush3.msra.mxu0 %v16_v4 }
   0xa   :  { %133 = vmatmul.mubr.msk.f32.vlgmr.msra.gmra.mxu0 %vm27_vm0, %v15_v5 }
  0xca   :  { %v134_v7 = vpop.f32.mrf.mxu0 }
  0xcb   :  { %v106_v8 = vadd.f32 %v134_v7, %v115_v6 }
  0xcc   :  { %v100_v9 = vpop.f32.mrf.mxu0 }
  0xcd   :  { %110 = vst [vmem:[%s187_s3 + $0x8] sm:$0xff] %v106_v8  ;;  %v101_v10 = vadd.f32 %v115_v6, %v100_v9 }
  0xcf   :  { %109 = vst [vmem:[%s187_s3] sm:$0xff] %v101_v10 }

// kernel: forward.23
= control target key start
LH: loop header
LB: loop body
LE: loop exit
PB: predicated region body
PF: predicated region fallthrough
CT: control target
= control target key end

     0   :  { %s1089_s21 = smov 0   ;;  %s1091_s22 = smov 0   ;;  %s1175_s0 = inlined_call_operand.vmem [shape: f32[2,6,32], index: 0, kind: input, shape index: {}]   ;;  %s1176_s1 = inlined_call_operand.vmem [shape: f32[2,6,128], index: 1, kind: input, shape index: {}, may-alias: {1,2}]   ;;  %s1177_s2 = inlined_call_operand.vmem [shape: f32[2,6,128], index: 2, kind: input, shape index: {}, may-alias: {1,2}]   ;;  %s1178_s3 = inlined_call_operand.vmem [shape: f32[2,6,6,32], index: 3, kind: input, shape index: {}]   ;;  %s1179_s4 = inlined_call_operand.vmem [shape: f32[2,6,6,32], index: 4, kind: input, shape index: {}]   ;;  %s1180_s5 = inlined_call_operand.vmem [shape: f32[2,6,32], index: 5, kind: output, shape index: {0}]   ;;  %s1181_s6 = inlined_call_operand.vmem [shape: f32[2,6,6,32], index: 6, kind: output, shape index: {1}]  }
   0x1   :  { %s1093_s23 = smov 0  }
   0x2 LB: > { %s29_s24 = sadd.s32 1, %s1044_s22  ;;  %p932_p0 = scmp.ge.s32.totalorder %s1048_s23, 1  ;;  %s1048_s23 = sphi %s1093_s23, %s17_s23   ;;  %s1044_s22 = sphi %s1091_s22, %s1183_s22   ;;  %s1040_s21 = sphi %s1089_s21, %s1182_s21  }
   0x3   : > { %p31_p1 = scmp.ge.s32.totalorder %s29_s24, 2  ;;  %p292_p2 = scmp.lt.s32.totalorder %s1048_s23, 3 }
   0x5   : > { %s1185_s24 = smov (%p31_p1, %s29_s24), 0  ;;  %p293_p3 = pnand %p932_p0, %p292_p2 }
   0x6   : > { %p364_p4 = scmp.lt.s32.totalorder (!%p293_p3), %s1040_s21, 1  ;;  %s1050_s29 = smov (!%p293_p3), 96  }
   0x7   : > { %296 = sbr.rel (%p293_p3) target bundleno = 480 (0x1e0), region = 40  ;;  %s1051_s30 = smov (!%p293_p3), 64  }
   0x8   : > { %s1053_s20 = smov (!%p293_p3), 32  }
   0xc   : > { %s1187_s21 = smov (!%p364_p4, %s1040_s21), 1  ;;  %v1052_v1 = vmov 1966171168   ;;  %v439_v3 = vlaneseq  ;;  %vm594_vm0 = vcmask 259072   ;;  %vm712_vm1 = vcmask 1041409  }
   0xd   : > { %s1107_s25 = sshll.u32 %s1187_s21, 3  ;;  %v437_v2 = vunpack.c.l.s4 %v1052_v1  ;;  %s1123_s10 = smul.u32 48, %s1187_s21  ;;  %vm714_vm2 = vcmask 1042434   ;;  %vm716_vm3 = vcmask 1043459   ;;  %vm718_vm4 = vcmask 1044484  }
   0xe   : > { %s381_s28 = scalar_lea.vmem %s1177_s2, %s1107_s25  ;;  %v440_v5 = vshrl.u32 %v439_v3, 7  ;;  %s377_s9 = scalar_lea.vmem %s1176_s1, %s1107_s25  ;;  %vm720_vm5 = vcmask 1045509  }
   0xf   : > { %v421_v0 = vld [vmem:[%s381_s28] sm:$0x3f]  ;;  %v438_v4 = vunpack.c.0.s8 %v437_v2  ;;  %s390_s13 = scalar_lea.vmem %s1178_s3, %s1123_s10  ;;  %s400_s16 = scalar_lea.vmem %s1179_s4, %s1123_s10 }
  0x10   : > { %513 = vrot.lane.b32.xlu0 %v421_v0, %s1050_s29  ;;  %v1118_v7 = vld [vmem:[%s377_s9] sm:$0x3f]  ;;  %v484_v16 = vsub.s32 0, %v440_v5  ;;  %v423_v27 = vld [vmem:[%s390_s13 + $0x8] sm:$0x3f]  ;;  %s417_s19 = scalar_lea.vmem %s1181_s6, %s1123_s10  ;;  %s370_s27 = scalar_lea.vmem %s1175_s0, %s1107_s25 }
  0x11   : > { %v441_v6 = vsub.s32 %v438_v4, %v440_v5  ;;  %v435_v9 = vcombine.high %v1118_v7, %v1118_v7  ;;  %v422_v26 = vld [vmem:[%s390_s13] sm:$0x3f]  ;;  %v424_v28 = vld [vmem:[%s390_s13 + $0x10] sm:$0x3f]  ;;  %v425_v29 = vld [vmem:[%s390_s13 + $0x18] sm:$0x3f]  ;;  %s408_s7 = scalar_lea.vmem %s1180_s5, %s1107_s25 }
  0x12   : > { %v426_v31 = vld [vmem:[%s390_s13 + $0x20] sm:$0x3f]  ;;  %v427_v32 = vld [vmem:[%s390_s13 + $0x28] sm:$0x3f]  ;;  %v430_v45 = vld [vmem:[%s400_s16 + $0x10] sm:$0x3f] }
  0x13   : > { %v442_v8 = vrot.slane %v1118_v7, %v441_v6  ;;  %v449_v11 = vrot.slane %v435_v9, %v441_v6  ;;  %v428_v43 = vld [vmem:[%s400_s16] sm:$0x3f]  ;;  %v429_v44 = vld [vmem:[%s400_s16 + $0x8] sm:$0x3f]  ;;  %v431_v48 = vld [vmem:[%s400_s16 + $0x18] sm:$0x3f] }
  0x14   : > { %649 = vrot.lane.b32.xlu0 %v421_v0, %s1051_s30  ;;  %v432_v49 = vld [vmem:[%s400_s16 + $0x20] sm:$0x3f]  ;;  %v433_v56 = vld [vmem:[%s400_s16 + $0x28] sm:$0x3f] }
  0x15   : > { %v450_v10 = vcombine.high %v442_v8, %v442_v8  ;;  %v458_v12 = vrot.slane %v442_v8, %v441_v6  ;;  %v451_v14 = vcombine.high %v449_v11, %v449_v11  ;;  %v465_v18 = vrot.slane %v449_v11, %v441_v6 }
  0x17   : > { %v472_v13 = vrot.slane %v450_v10, %v441_v6  ;;  %v480_v15 = vcombine.high %v458_v12, %v458_v12  ;;  %v479_v19 = vrot.slane %v451_v14, %v441_v6  ;;  %v485_v20 = vrot.slane %v458_v12, %v484_v16 }
  0x18   : > { %v501_v24 = vrot.slane %v465_v18, %v484_v16 }
  0x19   : > { %v481_v17 = vcombine.high %v472_v13, %v472_v13  ;;  %v489_v21 = vrot.slane %v472_v13, %v484_v16  ;;  %v493_v22 = vrot.slane %v480_v15, %v484_v16  ;;  %v505_v25 = vrot.slane %v479_v19, %v484_v16 }
  0x1b   : > { %v497_v23 = vrot.slane %v481_v17, %v484_v16 }
  0x82   : > { %v514_v30 = vpop.permute.xlu0 %513 }
  0x83   : > { %v516_v33 = vadd.f32 %v514_v30, %v485_v20  ;;  %v517_v34 = vadd.f32 %v514_v30, %v489_v21  ;;  %v518_v35 = vadd.f32 %v514_v30, %v493_v22  ;;  %v519_v36 = vadd.f32 %v514_v30, %v497_v23 }
  0x84   : > { %v520_v37 = vadd.f32 %v514_v30, %v501_v24  ;;  %v521_v38 = vadd.f32 %v514_v30, %v505_v25 }
  0x85   : > { %v522_v39 = vadd.f32 %v516_v33, %v422_v26  ;;  %v523_v40 = vadd.f32 %v517_v34, %v423_v27  ;;  %v524_v41 = vadd.f32 %v518_v35, %v424_v28  ;;  %v525_v42 = vadd.f32 %v519_v36, %v425_v29 }
  0x86   : > { %v526_v46 = vadd.f32 %v520_v37, %v426_v31  ;;  %v527_v47 = vadd.f32 %v521_v38, %v427_v32 }
  0x87   : > { %v528_v50 = vmul.f32 0.999995, %v522_v39  ;;  %v529_v51 = vmul.f32 0.999995, %v523_v40  ;;  %v530_v52 = vmul.f32 0.999995, %v524_v41 }
  0x88   : > { %v531_v53 = vmul.f32 0.999995, %v525_v42  ;;  %v532_v54 = vmul.f32 0.999995, %v526_v46  ;;  %v533_v55 = vmul.f32 0.999995, %v527_v47 }
  0x89   : > { %v534_v57 = vmax.f32 %v528_v50, 0.0  ;;  %v535_v58 = vmax.f32 %v529_v51, 0.0  ;;  %v536_v59 = vmax.f32 %v530_v52, 0.0 }
  0x8a   : > { %v537_v60 = vmax.f32 %v531_v53, 0.0  ;;  %v538_v61 = vmax.f32 %v532_v54, 0.0  ;;  %v539_v62 = vmax.f32 %v533_v55, 0.0 }
  0x8b   : > { %v540_v63 = vadd.f32 %v534_v57, %v428_v43  ;;  %v541_v0 = vadd.f32 %v535_v58, %v429_v44  ;;  %v542_v1 = vadd.f32 %v536_v59, %v430_v45 }
  0x8c   : > { %v543_v2 = vadd.f32 %v537_v60, %v431_v48  ;;  %v544_v3 = vadd.f32 %v538_v61, %v432_v49  ;;  %v545_v4 = vadd.f32 %v539_v62, %v433_v56 }
  0x8d   : > { %v940_v5 = vmul.f32 -1.442695, %v540_v63  ;;  %v941_v6 = vmul.f32 -1.442695, %v541_v0  ;;  %v942_v8 = vmul.f32 -1.442695, %v542_v1 }
  0x8e   : > { %734 = vst.msk [vmem:[%s417_s19] sm:$0x3f] %vm594_vm0, %v540_v63  ;;  %735 = vst.msk [vmem:[%s417_s19 + $0x8] sm:$0x3f] %vm594_vm0, %v541_v0  ;;  %v943_v9 = vmul.f32 -1.442695, %v543_v2 }
  0x8f   : > { %736 = vst.msk [vmem:[%s417_s19 + $0x10] sm:$0x3f] %vm594_vm0, %v542_v1  ;;  %737 = vst.msk [vmem:[%s417_s19 + $0x18] sm:$0x3f] %vm594_vm0, %v543_v2  ;;  %978 = vpow2.f32 %v940_v5  ;;  %v944_v10 = vmul.f32 -1.442695, %v544_v3 }
  0x90   : > { %738 = vst.msk [vmem:[%s417_s19 + $0x20] sm:$0x3f] %vm594_vm0, %v544_v3  ;;  %739 = vst.msk [vmem:[%s417_s19 + $0x28] sm:$0x3f] %vm594_vm0, %v545_v4  ;;  %980 = vpow2.f32 %v941_v6  ;;  %v945_v11 = vmul.f32 -1.442695, %v545_v4 }
  0x91   : > { %982 = vpow2.f32 %v942_v8 }
  0x92   : > { %984 = vpow2.f32 %v943_v9 }
  0x93   : > { %986 = vpow2.f32 %v944_v10 }
  0x94   : > { %988 = vpow2.f32 %v945_v11 }
  0x9c   : > { %v979_v12 = vpop.eup %978 }
  0x9d   : > { %v981_v13 = vpop.eup %980  ;;  %v564_v14 = vadd.f32 1.0, %v979_v12 }
  0x9e   : > { %v983_v15 = vpop.eup %982  ;;  %v565_v16 = vadd.f32 1.0, %v981_v13 }
  0x9f   : > { %v985_v17 = vpop.eup %984  ;;  %v566_v18 = vadd.f32 1.0, %v983_v15  ;;  %990 = vrcp.f32 %v564_v14 }
  0xa0   : > { %v987_v19 = vpop.eup %986  ;;  %v567_v20 = vadd.f32 1.0, %v985_v17  ;;  %992 = vrcp.f32 %v565_v16 }
  0xa1   : > { %v989_v21 = vpop.eup %988  ;;  %v568_v22 = vadd.f32 1.0, %v987_v19  ;;  %994 = vrcp.f32 %v566_v18 }
  0xa2   : > { %v569_v23 = vadd.f32 1.0, %v989_v21  ;;  %996 = vrcp.f32 %v567_v20 }
  0xa3   : > { %998 = vrcp.f32 %v568_v22  ;;  %v650_v22 = vpop.permute.xlu0 %649 }
  0xa4   : > { %1000 = vrcp.f32 %v569_v23 }
  0xac   : > { %v991_v24 = vpop.eup %990 }
  0xad   : > { %v993_v25 = vpop.eup %992  ;;  %v582_v26 = vmul.f32 1.442695, %v991_v24 }
  0xae   : > { %v995_v27 = vpop.eup %994  ;;  %v584_v28 = vmul.f32 1.442695, %v993_v25 }
  0xaf   : > { %v997_v29 = vpop.eup %996  ;;  %1002 = vpow2.f32 %v582_v26  ;;  %v586_v30 = vmul.f32 1.442695, %v995_v27 }
  0xb0   : > { %v999_v31 = vpop.eup %998  ;;  %1004 = vpow2.f32 %v584_v28  ;;  %v588_v32 = vmul.f32 1.442695, %v997_v29 }
  0xb1   : > { %v1001_v33 = vpop.eup %1000  ;;  %1006 = vpow2.f32 %v586_v30  ;;  %v590_v34 = vmul.f32 1.442695, %v999_v31 }
  0xb2   : > { %1008 = vpow2.f32 %v588_v32  ;;  %v592_v35 = vmul.f32 1.442695, %v1001_v33 }
  0xb3   : > { %1010 = vpow2.f32 %v590_v34 }
  0xb4   : > { %1012 = vpow2.f32 %v592_v35 }
  0xbc   : > { %v1003_v36 = vpop.eup %1002 }
  0xbd   : > { %v1005_v37 = vpop.eup %1004  ;;  %v595_v38 = vsel %vm594_vm0, %v1003_v36, 0.0 }
  0xbe   : > { %v1007_v39 = vpop.eup %1006  ;;  %v596_v40 = vrot.slane %v595_v38, 4  ;;  %v602_v41 = vsel %vm594_vm0, %v1005_v37, 0.0 }
  0xbf   : > { %v1009_v42 = vpop.eup %1008  ;;  %v603_v43 = vrot.slane %v602_v41, 4  ;;  %v609_v44 = vsel %vm594_vm0, %v1007_v39, 0.0 }
  0xc0   : > { %v1011_v45 = vpop.eup %1010  ;;  %v597_v46 = vadd.f32 %v596_v40, %v595_v38  ;;  %v610_v47 = vrot.slane %v609_v44, 4  ;;  %v616_v48 = vsel %vm594_vm0, %v1009_v42, 0.0 }
  0xc1   : > { %v1013_v49 = vpop.eup %1012  ;;  %v604_v50 = vadd.f32 %v603_v43, %v602_v41  ;;  %v617_v51 = vrot.slane %v616_v48, 4  ;;  %v623_v52 = vsel %vm594_vm0, %v1011_v45, 0.0 }
  0xc2   : > { %v598_v53 = vrot.slane %v597_v46, 2  ;;  %v611_v54 = vadd.f32 %v610_v47, %v609_v44  ;;  %v624_v55 = vrot.slane %v623_v52, 4  ;;  %v630_v56 = vsel %vm594_vm0, %v1013_v49, 0.0 }
  0xc3   : > { %v605_v57 = vrot.slane %v604_v50, 2  ;;  %v618_v58 = vadd.f32 %v617_v51, %v616_v48  ;;  %v631_v59 = vrot.slane %v630_v56, 4 }
  0xc4   : > { %v599_v60 = vadd.f32 %v598_v53, %v597_v46  ;;  %v612_v61 = vrot.slane %v611_v54, 2  ;;  %v625_v62 = vadd.f32 %v624_v55, %v623_v52 }
  0xc5   : > { %v606_v63 = vadd.f32 %v605_v57, %v604_v50  ;;  %v619_v0 = vrot.slane %v618_v58, 2  ;;  %v632_v1 = vadd.f32 %v631_v59, %v630_v56 }
  0xc6   : > { %v600_v2 = vrot.slane %v599_v60, 1  ;;  %v613_v3 = vadd.f32 %v612_v61, %v611_v54  ;;  %v626_v4 = vrot.slane %v625_v62, 2 }
  0xc7   : > { %v607_v5 = vrot.slane %v606_v63, 1  ;;  %v620_v6 = vadd.f32 %v619_v0, %v618_v58  ;;  %v633_v8 = vrot.slane %v632_v1, 2 }
  0xc8   : > { %v601_v9 = vadd.f32 %v600_v2, %v599_v60  ;;  %v614_v10 = vrot.slane %v613_v3, 1  ;;  %v627_v11 = vadd.f32 %v626_v4, %v625_v62 }
  0xc9   : > { %v608_v12 = vadd.f32 %v607_v5, %v606_v63  ;;  %v621_v13 = vrot.slane %v620_v6, 1  ;;  %v634_v14 = vadd.f32 %v633_v8, %v632_v1 }
  0xca   : > { %v615_v15 = vadd.f32 %v614_v10, %v613_v3  ;;  %v628_v16 = vrot.slane %v627_v11, 1  ;;  %1014 = vrcp.f32 %v601_v9 }
  0xcb   : > { %v622_v17 = vadd.f32 %v621_v13, %v620_v6  ;;  %v635_v18 = vrot.slane %v634_v14, 1  ;;  %1016 = vrcp.f32 %v608_v12 }
  0xcc   : > { %v629_v19 = vadd.f32 %v628_v16, %v627_v11  ;;  %1018 = vrcp.f32 %v615_v15 }
  0xcd   : > { %v636_v20 = vadd.f32 %v635_v18, %v634_v14  ;;  %1020 = vrcp.f32 %v622_v17 }
  0xce   : > { %1022 = vrcp.f32 %v629_v19 }
  0xcf   : > { %1024 = vrcp.f32 %v636_v20 }
  0xd7   : > { %v1015_v21 = vpop.eup %1014 }
  0xd8   : > { %v1017_v23 = vpop.eup %1016  ;;  %v643_v24 = vmul.f32 %v1015_v21, %v1003_v36 }
  0xd9   : > { %v1019_v25 = vpop.eup %1018  ;;  %v644_v26 = vmul.f32 %v1017_v23, %v1005_v37 }
  0xda   : > { %v1021_v27 = vpop.eup %1020  ;;  %v645_v28 = vmul.f32 %v1019_v25, %v1007_v39  ;;  %v652_v29 = vmul.f32 %v650_v22, %v643_v24 }
  0xdb   : > { %v1023_v30 = vpop.eup %1022  ;;  %v646_v31 = vmul.f32 %v1021_v27, %v1009_v42  ;;  %v653_v32 = vmul.f32 %v650_v22, %v644_v26 }
  0xdc   : > { %v1025_v33 = vpop.eup %1024  ;;  %v647_v34 = vmul.f32 %v1023_v30, %v1011_v45  ;;  %v654_v35 = vmul.f32 %v650_v22, %v645_v28  ;;  %v658_v38 = vsel %vm594_vm0, %v652_v29, 0.0 }
  0xdd   : > { %v648_v40 = vmul.f32 %v1025_v33, %v1013_v49  ;;  %v655_v41 = vmul.f32 %v650_v22, %v646_v31  ;;  %v659_v43 = vrot.slane %v658_v38, 4  ;;  %v665_v44 = vsel %vm594_vm0, %v653_v32, 0.0 }
  0xde   : > { %v656_v46 = vmul.f32 %v650_v22, %v647_v34  ;;  %v666_v36 = vrot.slane %v665_v44, 4  ;;  %v672_v37 = vsel %vm594_vm0, %v654_v35, 0.0  ;;  %v419_v34 = vld [vmem:[%s370_s27] sm:$0x3f] }
  0xdf   : > { %v657_v47 = vmul.f32 %v650_v22, %v648_v40  ;;  %v660_v39 = vadd.f32 %v659_v43, %v658_v38  ;;  %v673_v48 = vrot.slane %v672_v37, 4  ;;  %v679_v42 = vsel %vm594_vm0, %v655_v41, 0.0 }
  0xe0   : > { %v667_v50 = vadd.f32 %v666_v36, %v665_v44  ;;  %v680_v51 = vrot.slane %v679_v42, 4  ;;  %v686_v45 = vsel %vm594_vm0, %v656_v46, 0.0 }
  0xe1   : > { %v661_v52 = vrot.slane %v660_v39, 2  ;;  %v674_v53 = vadd.f32 %v673_v48, %v672_v37  ;;  %v687_v49 = vrot.slane %v686_v45, 4  ;;  %v693_v54 = vsel %vm594_vm0, %v657_v47, 0.0 }
  0xe2   : > { %v668_v55 = vrot.slane %v667_v50, 2  ;;  %v681_v56 = vadd.f32 %v680_v51, %v679_v42  ;;  %v694_v57 = vrot.slane %v693_v54, 4 }
  0xe3   : > { %v662_v58 = vadd.f32 %v661_v52, %v660_v39  ;;  %v675_v59 = vrot.slane %v674_v53, 2  ;;  %v688_v60 = vadd.f32 %v687_v49, %v686_v45 }
  0xe4   : > { %v669_v61 = vadd.f32 %v668_v55, %v667_v50  ;;  %v682_v62 = vrot.slane %v681_v56, 2  ;;  %v695_v63 = vadd.f32 %v694_v57, %v693_v54 }
  0xe5   : > { %v663_v0 = vrot.slane %v662_v58, 1  ;;  %v676_v1 = vadd.f32 %v675_v59, %v674_v53  ;;  %v689_v2 = vrot.slane %v688_v60, 2 }
  0xe6   : > { %v670_v3 = vrot.slane %v669_v61, 1  ;;  %v683_v4 = vadd.f32 %v682_v62, %v681_v56  ;;  %v696_v5 = vrot.slane %v695_v63, 2 }
  0xe7   : > { %v664_v6 = vadd.f32 %v663_v0, %v662_v58  ;;  %v677_v8 = vrot.slane %v676_v1, 1  ;;  %v690_v9 = vadd.f32 %v689_v2, %v688_v60 }
  0xe8   : > { %v671_v10 = vadd.f32 %v670_v3, %v669_v61  ;;  %v684_v11 = vrot.slane %v683_v4, 1  ;;  %v697_v12 = vadd.f32 %v696_v5, %v695_v63 }
  0xe9   : > { %v678_v13 = vadd.f32 %v677_v8, %v676_v1  ;;  %v691_v14 = vrot.slane %v690_v9, 1  ;;  %v700_v15 = vmul.f32 0.16666667, %v664_v6 }
  0xea   : > { %v685_v16 = vadd.f32 %v684_v11, %v683_v4  ;;  %v698_v17 = vrot.slane %v697_v12, 1  ;;  %v701_v18 = vmul.f32 0.16666667, %v671_v10 }
  0xeb   : > { %v692_v19 = vadd.f32 %v691_v14, %v690_v9  ;;  %v702_v20 = vmul.f32 0.16666667, %v678_v13 }
  0xec   : > { %v699_v21 = vadd.f32 %v698_v17, %v697_v12  ;;  %v703_v22 = vmul.f32 0.16666667, %v685_v16  ;;  %v713_v23 = vsel %vm712_vm1, %v701_v18, %v700_v15 }
  0xed   : > { %v704_v24 = vmul.f32 0.16666667, %v692_v19  ;;  %v715_v25 = vsel %vm714_vm2, %v702_v20, %v713_v23 }
  0xee   : > { %v705_v26 = vmul.f32 0.16666667, %v699_v21  ;;  %v717_v27 = vsel %vm716_vm3, %v703_v22, %v715_v25 }
  0xef   : > { %v719_v28 = vsel %vm718_vm4, %v704_v24, %v717_v27 }
  0xf0   : > { %v721_v29 = vsel %vm720_vm5, %v705_v26, %v719_v28 }
  0xf1   : > { %722 = vrot.lane.b32.xlu1 %v721_v29, %s1050_s29 }
 0x163   : > { %v723_v30 = vpop.permute.xlu1 %722 }
 0x164   : > { %v725_v31 = vadd.f32 %v723_v30, %v1118_v7 }
 0x166   : > { %v726_v32 = vmul.f32 0.999995, %v725_v31 }
 0x168   : > { %v727_v33 = vmax.f32 %v726_v32, 0.0 }
 0x16a   : > { %729 = vrot.lane.b32.xlu1 %v727_v33, %s1053_s20 }
 0x1dc   : > { %v730_v35 = vpop.permute.xlu1 %729 }
 0x1dd   : > { %v732_v38 = vadd.f32 %v730_v35, %v419_v34 }
 0x1df   : > { %733 = vst.msk [vmem:[%s408_s7] sm:$0x3f] %vm594_vm0, %v732_v38 }
 0x1e0 PF: > { %s17_s23 = sadd.s32 1, %s1048_s23   ;;  %s1182_s21 = smov %s1044_s22 }
 0x1e1   : > { %p14_p5 = scmp.ge.s32.totalorder %s17_s23, 4   ;;  %s1183_s22 = smov %s1185_s24 }
 0x1e3   :  { %16 = sbr.rel (!%p14_p5) target bundleno = 2 (0x2), region = 94 }

// kernel: forward.31
= control target key start
LH: loop header
LB: loop body
LE: loop exit
PB: predicated region body
PF: predicated region fallthrough
CT: control target
= control target key end

     0   :  { %vm39_vm0 = vcmask 261120   ;;  %s414_s1 = inlined_call_operand.vmem [shape: f32[32,32], index: 1, kind: input, shape index: {}]   ;;  %s415_s0 = inlined_call_operand.vmem [shape: f32[12,32], index: 0, kind: input, shape index: {}]   ;;  %s416_s3 = inlined_call_operand.vmem [shape: f32[32,32], index: 3, kind: input, shape index: {}]   ;;  %s417_s2 = inlined_call_operand.vmem [shape: f32[1,32], index: 2, kind: input, shape index: {}]   ;;  %s418_s4 = inlined_call_operand.vmem [shape: f32[1,32], index: 4, kind: input, shape index: {}]   ;;  %s419_s5 = inlined_call_operand.vmem [shape: f32[1,32], index: 5, kind: input, shape index: {}]   ;;  %s420_s6 = inlined_call_operand.vmem [shape: f32[1,32], index: 6, kind: input, shape index: {}]   ;;  %s421_s7 = inlined_call_operand.vmem [shape: f32[12,32], index: 7, kind: output, shape index: {}]  }
   0x1   :  { %v31_v0 = vld [vmem:[%s414_s1 + $0x18] sm:$0xff]  ;;  %v30_v1 = vld [vmem:[%s414_s1 + $0x10] sm:$0xff]  ;;  %v26_v2 = vld [vmem:[%s415_s0] sm:$0xff] }
   0x2   :  { %290 = vmatprep.subr.mxu0 %v31_v0  ;;  %v29_v3 = vld [vmem:[%s414_s1 + $0x8] sm:$0xff]  ;;  %298 = vmatprep.mubr.msk.f32.mxu0 %vm39_vm0, %v26_v2  ;;  %v28_v4 = vld [vmem:[%s414_s1] sm:$0xff]  ;;  %v126_v6 = vld [vmem:[%s416_s3 + $0x18] sm:$0xff] }
   0x3   :  { %291 = vmatpush3.msra.mxu0 %v31_v0  ;;  %v27_v5 = vld [vmem:[%s415_s0 + $0x8] sm:$0xff]  ;;  %301 = vmatprep.subr.mxu1 %v126_v6  ;;  %v125_v7 = vld [vmem:[%s416_s3 + $0x10] sm:$0xff]  ;;  %v123_v9 = vld [vmem:[%s416_s3] sm:$0xff] }
   0x4   :  { %292 = vmatprep.subr.mxu0 %v30_v1  ;;  %302 = vmatpush3.msra.mxu1 %v126_v6  ;;  %v124_v8 = vld [vmem:[%s416_s3 + $0x8] sm:$0xff]  ;;  %v270_v10 = vld [vmem:[%s417_s2] ss:$0 sm:$0xff] }
   0x5   :  { %293 = vmatpush3.msra.mxu0 %v30_v1  ;;  %303 = vmatprep.subr.mxu1 %v125_v7  ;;  %v275_v21 = vld [vmem:[%s418_s4] ss:$0 sm:$0xff] }
   0x6   :  { %294 = vmatprep.subr.mxu0 %v29_v3  ;;  %304 = vmatpush3.msra.mxu1 %v125_v7  ;;  %v276_v43 = vld [vmem:[%s419_s5] ss:$0 sm:$0xff] }
   0x7   :  { %295 = vmatpush3.msra.mxu0 %v29_v3  ;;  %305 = vmatprep.subr.mxu1 %v124_v8  ;;  %v277_v45 = vld [vmem:[%s420_s6] ss:$0 sm:$0xff] }
   0x8   :  { %296 = vmatprep.subr.mxu0 %v28_v4  ;;  %306 = vmatpush3.msra.mxu1 %v124_v8 }
   0x9   :  { %297 = vmatpush3.msra.mxu0 %v28_v4  ;;  %307 = vmatprep.subr.mxu1 %v123_v9 }
   0xa   :  { %299 = vmatmul.mubr.msk.f32.vlgmr.msra.gmra.mxu0 %vm39_vm0, %v27_v5  ;;  %308 = vmatpush3.msra.mxu1 %v123_v9 }
  0xca   :  { %v300_v11 = vpop.f32.mrf.mxu0 }
  0xcb   :  { %v118_v12 = vadd.f32 %v300_v11, %v270_v10 }
  0xcc   :  { %v112_v13 = vpop.f32.mrf.mxu0 }
  0xcd   :  { %v113_v14 = vadd.f32 %v270_v10, %v112_v13  ;;  %v122_v16 = vmax.f32 %v118_v12, 0.0 }
  0xcf   :  { %v121_v15 = vmax.f32 %v113_v14, 0.0 }
  0xd1   :  { %309 = vmatprep.mubr.msk.f32.mxu1 %vm39_vm0, %v121_v15 }
  0xd2   :  { %310 = vmatmul.mubr.msk.f32.vlgmr.msra.gmra.mxu1 %vm39_vm0, %v122_v16 }
 0x192   :  { %v311_v17 = vpop.f32.mrf.mxu1 }
 0x193   :  { %v209_v19 = vadd.f32 %v311_v17, %v27_v5 }
 0x194   :  { %v199_v18 = vpop.f32.mrf.mxu1 }
 0x195   :  { %v208_v20 = vadd.f32 %v199_v18, %v26_v2  ;;  %v218_v24 = vadd.f32 %v275_v21, %v209_v19 }
 0x197   :  { %v217_v22 = vadd.f32 %v275_v21, %v208_v20  ;;  %v224_v25 = vsel %vm39_vm0, %v218_v24, 0.0 }
 0x199   :  { %v221_v23 = vsel %vm39_vm0, %v217_v22, 0.0 }
 0x19a   :  { %222 = vadd.xlane.f32.xlu0 %v221_v23 }
 0x19e   :  { %225 = vadd.xlane.f32.xlu0 %v224_v25 }
 0x223   :  { %v223_v26 = vpop.xlane.xlu0 %222 }
 0x224   :  { %v228_v27 = vmul.f32 0.03125, %v223_v26 }
 0x226   :  { %v230_v28 = vsub.f32 %v217_v22, %v228_v27 }
 0x227   :  { %v226_v29 = vpop.xlane.xlu0 %225 }
 0x228   :  { %v229_v30 = vmul.f32 0.03125, %v226_v29  ;;  %v232_v31 = vmul.f32 %v230_v28, %v230_v28 }
 0x22a   :  { %v231_v32 = vsub.f32 %v218_v24, %v229_v30  ;;  %v234_v33 = vsel %vm39_vm0, %v232_v31, 0.0 }
 0x22b   :  { %235 = vadd.xlane.f32.xlu1 %v234_v33 }
 0x22c   :  { %v233_v34 = vmul.f32 %v231_v32, %v231_v32 }
 0x22e   :  { %v237_v35 = vsel %vm39_vm0, %v233_v34, 0.0 }
 0x22f   :  { %238 = vadd.xlane.f32.xlu1 %v237_v35 }
 0x2b4   :  { %v236_v36 = vpop.xlane.xlu1 %235 }
 0x2b5   :  { %v240_v37 = vmul.f32 0.03125, %v236_v36 }
 0x2b7   :  { %v242_v38 = vadd.f32 1e-05, %v240_v37 }
 0x2b8   :  { %v239_v39 = vpop.xlane.xlu1 %238 }
 0x2b9   :  { %312 = vrsqrt.f32 %v242_v38  ;;  %v241_v40 = vmul.f32 0.03125, %v239_v39 }
 0x2bb   :  { %v243_v41 = vadd.f32 1e-05, %v241_v40 }
 0x2bd   :  { %314 = vrsqrt.f32 %v243_v41 }
 0x2c6   :  { %v313_v42 = vpop.eup %312 }
 0x2c7   :  { %v246_v44 = vmul.f32 %v313_v42, %v230_v28 }
 0x2c9   :  { %v254_v46 = vmul.f32 %v276_v43, %v246_v44 }
 0x2ca   :  { %v315_v47 = vpop.eup %314 }
 0x2cb   :  { %v262_v48 = vadd.f32 %v277_v45, %v254_v46  ;;  %v247_v49 = vmul.f32 %v315_v47, %v231_v32 }
 0x2cd   :  { %264 = vst.msk [vmem:[%s421_s7] sm:$0xff] %vm39_vm0, %v262_v48  ;;  %v255_v50 = vmul.f32 %v276_v43, %v247_v49 }
 0x2cf   :  { %v263_v51 = vadd.f32 %v277_v45, %v255_v50 }
 0x2d1   :  { %265 = vst.msk [vmem:[%s421_s7 + $0x8] sm:$0xff] %vm39_vm0, %v263_v51 }

// kernel: forward.41
= control target key start
LH: loop header
LB: loop body
LE: loop exit
PB: predicated region body
PF: predicated region fallthrough
CT: control target
= control target key end

     0   :  { %vm33_vm0 = vcmask 261120   ;;  %vm209_vm1 = vcmask 64512   ;;  %s332_s1 = inlined_call_operand.vmem [shape: f32[32,32], index: 1, kind: input, shape index: {}]   ;;  %s333_s0 = inlined_call_operand.vmem [shape: f32[12,32], index: 0, kind: input, shape index: {}]   ;;  %s334_s3 = inlined_call_operand.vmem [shape: f32[32,8], index: 3, kind: input, shape index: {}]   ;;  %s335_s2 = inlined_call_operand.vmem [shape: f32[1,32], index: 2, kind: input, shape index: {}]   ;;  %s336_s4 = inlined_call_operand.vmem [shape: f32[1,8], index: 4, kind: input, shape index: {}]   ;;  %s337_s5 = inlined_call_operand.vmem [shape: f32[12,8], index: 5, kind: output, shape index: {}]  }
   0x1   :  { %v25_v0 = vld [vmem:[%s332_s1 + $0x18] sm:$0xff]  ;;  %v24_v1 = vld [vmem:[%s332_s1 + $0x10] sm:$0xff]  ;;  %v20_v2 = vld [vmem:[%s333_s0] sm:$0xff] }
   0x2   :  { %234 = vmatprep.subr.mxu0 %v25_v0  ;;  %v23_v3 = vld [vmem:[%s332_s1 + $0x8] sm:$0xff]  ;;  %242 = vmatprep.mubr.msk.f32.mxu0 %vm33_vm0, %v20_v2  ;;  %v22_v4 = vld [vmem:[%s332_s1] sm:$0xff]  ;;  %v120_v6 = vld [vmem:[%s334_s3 + $0x18] sm:$0xff] }
   0x3   :  { %235 = vmatpush3.msra.mxu0 %v25_v0  ;;  %v21_v5 = vld [vmem:[%s333_s0 + $0x8] sm:$0xff]  ;;  %245 = vmatprep.subr.mxu1 %v120_v6  ;;  %v119_v7 = vld [vmem:[%s334_s3 + $0x10] sm:$0xff]  ;;  %v117_v9 = vld [vmem:[%s334_s3] sm:$0xff] }
   0x4   :  { %236 = vmatprep.subr.mxu0 %v24_v1  ;;  %246 = vmatpush3.msra.mxu1 %v120_v6  ;;  %v118_v8 = vld [vmem:[%s334_s3 + $0x8] sm:$0xff]  ;;  %v216_v10 = vld [vmem:[%s335_s2] ss:$0 sm:$0xff] }
   0x5   :  { %237 = vmatpush3.msra.mxu0 %v24_v1  ;;  %247 = vmatprep.subr.mxu1 %v119_v7  ;;  %v219_v17 = vld [vmem:[%s336_s4] ss:$0 sm:$0xff] }
   0x6   :  { %238 = vmatprep.subr.mxu0 %v23_v3  ;;  %248 = vmatpush3.msra.mxu1 %v119_v7 }
   0x7   :  { %239 = vmatpush3.msra.mxu0 %v23_v3  ;;  %249 = vmatprep.subr.mxu1 %v118_v8 }
   0x8   :  { %240 = vmatprep.subr.mxu0 %v22_v4  ;;  %250 = vmatpush3.msra.mxu1 %v118_v8 }
   0x9   :  { %241 = vmatpush3.msra.mxu0 %v22_v4  ;;  %251 = vmatprep.subr.mxu1 %v117_v9 }
   0xa   :  { %243 = vmatmul.mubr.msk.f32.vlgmr.msra.gmra.mxu0 %vm33_vm0, %v21_v5  ;;  %252 = vmatpush3.msra.mxu1 %v117_v9 }
  0xca   :  { %v244_v11 = vpop.f32.mrf.mxu0 }
  0xcb   :  { %v112_v12 = vadd.f32 %v244_v11, %v216_v10 }
  0xcc   :  { %v106_v13 = vpop.f32.mrf.mxu0 }
  0xcd   :  { %v107_v14 = vadd.f32 %v216_v10, %v106_v13  ;;  %v116_v16 = vmax.f32 %v112_v12, 0.0 }
  0xcf   :  { %v115_v15 = vmax.f32 %v107_v14, 0.0 }
  0xd1   :  { %253 = vmatprep.mubr.msk.f32.mxu1 %vm33_vm0, %v115_v15 }
  0xd2   :  { %254 = vmatmul.mubr.msk.f32.vlgmr.msra.gmra.mxu1 %vm33_vm0, %v116_v16 }
 0x192   :  { %v255_v18 = vpop.f32.mrf.mxu1 }
 0x193   :  { %v206_v19 = vadd.f32 %v255_v18, %v219_v17 }
 0x194   :  { %v200_v20 = vpop.f32.mrf.mxu1 }
 0x195   :  { %211 = vst.msk [vmem:[%s337_s5 + $0x8] sm:$0xff] %vm209_vm1, %v206_v19  ;;  %v201_v21 = vadd.f32 %v219_v17, %v200_v20 }
 0x197   :  { %210 = vst.msk [vmem:[%s337_s5] sm:$0xff] %vm209_vm1, %v201_v21 }

// kernel: forward.29
= control target key start
LH: loop header
LB: loop body
LE: loop exit
PB: predicated region body
PF: predicated region fallthrough
CT: control target
= control target key end

     0   :  { %s1663_s13 = smov 0   ;;  %s1826_s0 = inlined_call_operand.vmem [shape: f32[2,6,32], index: 0, kind: input, shape index: {}, may-alias: {0,1}]   ;;  %s1827_s1 = inlined_call_operand.vmem [shape: f32[2,6,32], index: 1, kind: input, shape index: {}, may-alias: {0,1}]   ;;  %s1828_s2 = inlined_call_operand.vmem [shape: f32[32,32], index: 2, kind: input, shape index: {}]   ;;  %s1829_s3 = inlined_call_operand.vmem [shape: f32[1,32], index: 3, kind: input, shape index: {}]   ;;  %s1830_s4 = inlined_call_operand.vmem [shape: f32[32,64], index: 4, kind: input, shape index: {}]   ;;  %s1831_s5 = inlined_call_operand.vmem [shape: f32[1,64], index: 5, kind: input, shape index: {}]   ;;  %s1832_s6 = inlined_call_operand.vmem [shape: f32[32,32], index: 6, kind: input, shape index: {}]   ;;  %s1833_s7 = inlined_call_operand.vmem [shape: f32[1,32], index: 7, kind: input, shape index: {}]   ;;  %s1834_s8 = inlined_call_operand.vmem [shape: f32[1,32], index: 8, kind: input, shape index: {}]   ;;  %s1835_s9 = inlined_call_operand.vmem [shape: f32[1,32], index: 9, kind: input, shape index: {}]   ;;  %s1836_s10 = inlined_call_operand.vmem [shape: f32[2,6,32], index: 10, kind: output, shape index: {}]  }
   0x1 LB: > { %s1412_s14 = sadd.s32 4294967295, %s1594_s13   ;;  %p1416_p0 = scmp.ge.s32.totalorder %s1594_s13, 1  ;;  %s1594_s13 = sphi %s1663_s13, %s20_s13  }
   0x2   : > { %p320_p1 = scmp.lt.s32.totalorder %s1594_s13, 3 }
   0x4   : > { %p321_p2 = pnand %p1416_p0, %p320_p1 }
   0x5   : > { %p360_p3 = scmp.lt.s32.totalorder (!%p321_p2), %s1412_s14, 1  ;;  %s1598_s23 = smov (!%p321_p2), 112  }
   0x6   : > { %324 = sbr.rel (%p321_p2) target bundleno = 1665 (0x681), region = 60  ;;  %s1599_s24 = smov (!%p321_p2), 120  }
   0x7   : > { %s1600_s25 = smov (!%p321_p2), 104   ;;  %s1601_s26 = smov (!%p321_p2), 96  }
   0x8   : > { %s1602_s28 = smov (!%p321_p2), 80   ;;  %s1603_s29 = smov (!%p321_p2), 72  }
   0x9   : > { %s1604_s30 = smov (!%p321_p2), 88   ;;  %s1605_s20 = smov (!%p321_p2), 8  }
   0xa   : > { %s1606_s21 = smov (!%p321_p2), 16   ;;  %s1607_s22 = smov (!%p321_p2), 24  }
   0xb   : > { %v462_v0 = vld [vmem:[%s1830_s4 + $0x18] sm:$0xff]  ;;  %v1596_v2 = vmov 0.0   ;;  %v461_v3 = vld [vmem:[%s1830_s4 + $0x10] sm:$0xff]  ;;  %s1838_s14 = smov (!%p360_p3, %s1412_s14), 1  ;;  %v460_v5 = vld [vmem:[%s1830_s4 + $0x8] sm:$0xff]  ;;  %vm385_vm0 = vcmask 261120  }
   0xc   : > { %v377_v1 = vld [vmem:[%s1828_s2 + $0x18] sm:$0xff]  ;;  %1488 = vmatprep.subr.mxu1 %v1596_v2  ;;  %1477 = vmatprep.subr.mxu0 %v1596_v2  ;;  %v376_v4 = vld [vmem:[%s1828_s2 + $0x10] sm:$0xff]  ;;  %v375_v6 = vld [vmem:[%s1828_s2 + $0x8] sm:$0xff]  ;;  %s1693_s27 = sshll.u32 %s1838_s14, 3  ;;  %vm1597_vm1 = vmmov 0   ;;  %vm543_vm2 = vcmask 64512  }
   0xd   : > { %1489 = vmatpush3.msra.mxu1 %v462_v0  ;;  %1478 = vmatpush3.msra.mxu0 %v377_v1  ;;  %v459_v7 = vld [vmem:[%s1830_s4] sm:$0xff]  ;;  %s367_s12 = scalar_lea.vmem %s1827_s1, %s1693_s27  ;;  %s363_s18 = scalar_lea.vmem %s1826_s0, %s1693_s27  ;;  %vm621_vm3 = vcmask 46080   ;;  %vm639_vm4 = vcmask 1045504   ;;  %vm635_vm5 = vcmask 48128   ;;  %vm1226_vm6 = vcmask 130048  }
   0xe   : > { %1490 = vmatprep.subr.mxu1 %v1596_v2  ;;  %1479 = vmatprep.subr.mxu0 %v1596_v2  ;;  %v373_v8 = vld [vmem:[%s367_s12] sm:$0x3f]  ;;  %vm1228_vm7 = vcmask 195584   ;;  %vm1317_vm8 = vcmask 259072   ;;  %s371_s12 = scalar_lea.vmem %s1836_s10, %s1693_s27 }
   0xf   : > { %1491 = vmatpush3.msra.mxu1 %v461_v3  ;;  %1480 = vmatpush3.msra.mxu0 %v376_v4  ;;  %v374_v9 = vld [vmem:[%s1828_s2] sm:$0xff] }
  0x10   : > { %1492 = vmatprep.subr.mxu1 %v1596_v2  ;;  %1481 = vmatprep.subr.mxu0 %v1596_v2  ;;  %v1715_v10 = vld [vmem:[%s363_s18] sm:$0x3f] }
  0x11   : > { %1493 = vmatpush3.msra.mxu1 %v460_v5  ;;  %1482 = vmatpush3.msra.mxu0 %v375_v6  ;;  %v1422_v11 = vld [vmem:[%s1831_s5] ss:$0 sm:$0xff] }
  0x12   : > { %1494 = vmatprep.subr.mxu1 %v1596_v2  ;;  %1496 = vmatprep.mubr.msk.f32.mxu1 %vm1597_vm1, %v1596_v2  ;;  %v1420_v13 = vld [vmem:[%s1829_s3] ss:$0 sm:$0xff] }
  0x13   : > { %1495 = vmatpush3.msra.mxu1 %v459_v7  ;;  %1483 = vmatprep.subr.mxu0 %v1596_v2 }
  0x14   : > { %1497 = vmatmul.mubr.msk.f32.vlgmr.msra.gmra.mxu1 %vm385_vm0, %v373_v8  ;;  %1484 = vmatpush3.msra.mxu0 %v374_v9 }
  0x15   : > { %1485 = vmatprep.mubr.msk.f32.mxu0 %vm1597_vm1, %v1596_v2  ;;  %1499 = vmatprep.subr.mxu1 %v1596_v2 }
  0x16   : > { %1486 = vmatmul.mubr.msk.f32.vlgmr.msra.gmra.mxu0 %vm385_vm0, %v1715_v10  ;;  %1501 = vmatprep.mubr.msk.f32.mxu1 %vm1597_vm1, %v1596_v2 }
  0x17   : > { %1509 = vmatprep.subr.mxu0 %v1596_v2  ;;  %1511 = vmatprep.mubr.msk.f32.mxu0 %vm1597_vm1, %v1596_v2 }
  0xd4   : > { %v539_v12 = vpop.f32.mrf.mxu1 }
  0xd5   : > { %v1734_v14 = vadd.f32 %v1422_v11, %v539_v12 }
  0xd6   : > { %v455_v15 = vpop.f32.mrf.mxu0  ;;  %v1498_v16 = vpop.f32.mrf.mxu1 }
  0xd7   : > { %v456_v17 = vadd.f32 %v1420_v13, %v455_v15  ;;  %881 = vrot.lane.b32.xlu1 %v1734_v14, %s1598_s23  ;;  %714 = vrot.lane.b32.xlu0 %v1734_v14, %s1599_s24 }
  0xd8   : > { %1500 = vmatpush3.xpose.msk.msra.mxu1 %vm543_vm2, %v1734_v14  ;;  %v1487_v18 = vpop.f32.mrf.mxu0 }
  0xd9   : > { %1504 = vmatprep.subr.mxu1 %v1596_v2  ;;  %v1232_v18 = vld [vmem:[%s1832_s6 + $0x10] sm:$0xff] }
  0xdb   : > { %1502 = vmatmul.mubr.msk.f32.vlgmr.msra.gmra.mxu1 %vm543_vm2, %v456_v17  ;;  %879 = vrot.lane.b32.xlu1 %v456_v17, %s1598_s23 }
  0xdc   : > { %712 = vrot.lane.b32.xlu0 %v456_v17, %s1599_s24  ;;  %1506 = vmatprep.mubr.msk.f32.mxu1 %vm1597_vm1, %v1596_v2 }
  0xdf   : > { %1046 = vrot.lane.b32.xlu1 %v456_v17, %s1600_s25  ;;  %v1233_v17 = vld [vmem:[%s1832_s6 + $0x18] sm:$0xff] }
  0xe0   : > { %1048 = vrot.lane.b32.xlu0 %v1734_v14, %s1600_s25 }
 0x149   : > { %v715_v19 = vpop.permute.xlu0 %714  ;;  %v882_v20 = vpop.permute.xlu1 %881 }
 0x14a   : > { %1510 = vmatpush3.xpose.msk.msra.mxu0 %vm543_vm2, %v715_v19  ;;  %v1231_v19 = vld [vmem:[%s1832_s6 + $0x8] sm:$0xff] }
 0x14b   : > { %1519 = vmatprep.subr.mxu0 %v1596_v2 }
 0x14d   : > { %v880_v22 = vpop.permute.xlu1 %879 }
 0x14e   : > { %v713_v21 = vpop.permute.xlu0 %712 }
 0x14f   : > { %1512 = vmatmul.mubr.msk.f32.vlgmr.msra.gmra.mxu0 %vm543_vm2, %v713_v21 }
 0x150   : > { %1520 = vmatpush3.xpose.msk.msra.mxu0 %vm543_vm2, %v882_v20  ;;  %1521 = vmatprep.mubr.msk.f32.mxu0 %vm1597_vm1, %v1596_v2  ;;  %v1230_v20 = vld [vmem:[%s1832_s6] sm:$0xff] }
 0x151   : > { %1529 = vmatprep.subr.mxu0 %v1596_v2  ;;  %v1047_v24 = vpop.permute.xlu1 %1046 }
 0x152   : > { %v1049_v23 = vpop.permute.xlu0 %1048 }
 0x153   : > { %1522 = vmatmul.mubr.msk.f32.vlgmr.msra.gmra.mxu0 %vm543_vm2, %v880_v22 }
 0x154   : > { %1530 = vmatpush3.xpose.msk.msra.mxu0 %vm543_vm2, %v1049_v23  ;;  %1531 = vmatprep.mubr.msk.f32.mxu0 %vm1597_vm1, %v1596_v2 }
 0x155   : > { %1539 = vmatprep.subr.mxu0 %v1596_v2 }
 0x157   : > { %1532 = vmatmul.mubr.msk.f32.vlgmr.msra.gmra.mxu0 %vm543_vm2, %v1047_v24 }
 0x158   : > { %1547 = vmatprep.mubr.msk.f32.mxu0 %vm1597_vm1, %v1596_v2  ;;  %1540 = vmatpush3.msra.mxu0 %v1233_v17 }
 0x159   : > { %1541 = vmatprep.subr.mxu0 %v1596_v2 }
 0x15a   : > { %1542 = vmatpush3.msra.mxu0 %v1232_v18 }
 0x15b   : > { %1543 = vmatprep.subr.mxu0 %v1596_v2 }
 0x15c   : > { %1544 = vmatpush3.msra.mxu0 %v1231_v19 }
 0x15d   : > { %1545 = vmatprep.subr.mxu0 %v1596_v2 }
 0x15e   : > { %1546 = vmatpush3.msra.mxu0 %v1230_v20 }
 0x19b   : > { %v616_v25 = vpop.f32.mrf.mxu1 }
 0x19c   : > { %v620_v26 = vmul.f32 0.35355338, %v616_v25 }
 0x19d   : > { %v1503_v27 = vpop.f32.mrf.mxu1 }
 0x19e   : > { %v622_v28 = vsel %vm621_vm3, %v620_v26, -inf }
 0x19f   : > { %623 = vmax.xlane.f32.xlu0 %v622_v28 }
 0x20f   : > { %v786_v29 = vpop.f32.mrf.mxu0 }
 0x210   : > { %v790_v30 = vmul.f32 0.35355338, %v786_v29 }
 0x211   : > { %v1513_v31 = vpop.f32.mrf.mxu0 }
 0x212   : > { %v791_v32 = vsel %vm621_vm3, %v790_v30, -inf }
 0x213   : > { %792 = vmax.xlane.f32.xlu1 %v791_v32  ;;  %v953_v33 = vpop.f32.mrf.mxu0  ;;  %v1440_v32 = vld [vmem:[%s1833_s7] ss:$0 sm:$0xff] }
 0x214   : > { %v957_v34 = vmul.f32 0.35355338, %v953_v33 }
 0x215   : > { %v1523_v35 = vpop.f32.mrf.mxu0 }
 0x216   : > { %v958_v36 = vsel %vm621_vm3, %v957_v34, -inf }
 0x217   : > { %959 = vmax.xlane.f32.xlu0 %v958_v36  ;;  %v1120_v37 = vpop.f32.mrf.mxu0 }
 0x218   : > { %v1124_v38 = vmul.f32 0.35355338, %v1120_v37 }
 0x219   : > { %v1533_v39 = vpop.f32.mrf.mxu0 }
 0x21a   : > { %v1125_v40 = vsel %vm621_vm3, %v1124_v38, -inf }
 0x21b   : > { %1126 = vmax.xlane.f32.xlu0 %v1125_v40 }
 0x224   : > { %633 = vrot.lane.b32.xlu1 %v1734_v14, %s1601_s26 }
 0x228   : > { %v624_v41 = vpop.xlane.xlu0 %623 }
 0x229   : > { %v625_v42 = vsub.f32 %v620_v26, %v624_v41 }
 0x22b   : > { %v626_v43 = vmul.f32 1.442695, %v625_v42 }
 0x22d   : > { %1570 = vpow2.f32 %v626_v43 }
 0x23a   : > { %v1571_v44 = vpop.eup %1570 }
 0x23b   : > { %v628_v45 = vsel %vm621_vm3, %v1571_v44, 0.0 }
 0x248   : > { %629 = vadd.xlane.f32.xlu1 %v628_v45 }
 0x29c   : > { %v793_v46 = vpop.xlane.xlu1 %792 }
 0x29d   : > { %v794_v47 = vsub.f32 %v790_v30, %v793_v46 }
 0x29f   : > { %v795_v48 = vmul.f32 1.442695, %v794_v47 }
 0x2a0   : > { %v634_v49 = vpop.permute.xlu1 %633  ;;  %v960_v50 = vpop.xlane.xlu0 %959 }
 0x2a1   : > { %1572 = vpow2.f32 %v795_v48  ;;  %v961_v51 = vsub.f32 %v957_v34, %v960_v50  ;;  %1505 = vmatpush3.msk.msra.mxu1 %vm639_vm4, %v634_v49  ;;  %v1443_v48 = vld [vmem:[%s1835_s9] ss:$0 sm:$0xff] }
 0x2a2   : > { %1514 = vmatprep.subr.mxu1 %v1596_v2 }
 0x2a3   : > { %v962_v52 = vmul.f32 1.442695, %v961_v51 }
 0x2a4   : > { %v1127_v53 = vpop.xlane.xlu0 %1126 }
 0x2a5   : > { %1574 = vpow2.f32 %v962_v52  ;;  %v1128_v54 = vsub.f32 %v1124_v38, %v1127_v53 }
 0x2a7   : > { %v1129_v55 = vmul.f32 1.442695, %v1128_v54 }
 0x2a9   : > { %1576 = vpow2.f32 %v1129_v55 }
 0x2ae   : > { %v1573_v56 = vpop.eup %1572 }
 0x2af   : > { %v797_v57 = vsel %vm621_vm3, %v1573_v56, 0.0 }
 0x2b0   : > { %798 = vadd.xlane.f32.xlu0 %v797_v57 }
 0x2b2   : > { %v1575_v58 = vpop.eup %1574 }
 0x2b3   : > { %v964_v59 = vsel %vm621_vm3, %v1575_v58, 0.0 }
 0x2b4   : > { %965 = vadd.xlane.f32.xlu1 %v964_v59 }
 0x2b6   : > { %v1577_v60 = vpop.eup %1576 }
 0x2b7   : > { %v1131_v61 = vsel %vm621_vm3, %v1577_v60, 0.0 }
 0x2b8   : > { %1132 = vadd.xlane.f32.xlu0 %v1131_v61 }
 0x2c5   : > { %969 = vrot.lane.b32.xlu1 %v1734_v14, %s1602_s28 }
 0x2c9   : > { %1136 = vrot.lane.b32.xlu1 %v1734_v14, %s1603_s29 }
 0x2ce   : > { %802 = vrot.lane.b32.xlu0 %v1734_v14, %s1604_s30 }
 0x2d1   : > { %v630_v62 = vpop.xlane.xlu1 %629 }
 0x2d2   : > { %1578 = vrcp.f32 %v630_v62 }
 0x2df   : > { %v1579_v63 = vpop.eup %1578 }
 0x2e0   : > { %v632_v0 = vmul.f32 %v1579_v63, %v1571_v44 }
 0x2e2   : > { %1507 = vmatmul.mubr.msk.f32.vlgmr.msra.gmra.mxu1 %vm635_vm5, %v632_v0 }
 0x2e3   : > { %1516 = vmatprep.mubr.msk.f32.mxu1 %vm1597_vm1, %v1596_v2 }
 0x339   : > { %v799_v1 = vpop.xlane.xlu0 %798 }
 0x33a   : > { %1580 = vrcp.f32 %v799_v1 }
 0x33d   : > { %v966_v3 = vpop.xlane.xlu1 %965 }
 0x33e   : > { %1582 = vrcp.f32 %v966_v3 }
 0x341   : > { %v1133_v4 = vpop.xlane.xlu0 %1132  ;;  %v970_v7 = vpop.permute.xlu1 %969 }
 0x342   : > { %1584 = vrcp.f32 %v1133_v4 }
 0x345   : > { %v803_v5 = vpop.permute.xlu0 %802  ;;  %v1137_v12 = vpop.permute.xlu1 %1136 }
 0x346   : > { %1515 = vmatpush3.msk.msra.mxu1 %vm639_vm4, %v803_v5 }
 0x347   : > { %v1581_v6 = vpop.eup %1580  ;;  %1524 = vmatprep.subr.mxu1 %v1596_v2 }
 0x348   : > { %v801_v8 = vmul.f32 %v1581_v6, %v1573_v56 }
 0x34a   : > { %1517 = vmatmul.mubr.msk.f32.vlgmr.msra.gmra.mxu1 %vm635_vm5, %v801_v8 }
 0x34b   : > { %v1583_v9 = vpop.eup %1582  ;;  %1525 = vmatpush3.msk.msra.mxu1 %vm639_vm4, %v970_v7  ;;  %1526 = vmatprep.mubr.msk.f32.mxu1 %vm1597_vm1, %v1596_v2 }
 0x34c   : > { %1534 = vmatprep.subr.mxu1 %v1596_v2  ;;  %v968_v11 = vmul.f32 %v1583_v9, %v1575_v58 }
 0x34e   : > { %1527 = vmatmul.mubr.msk.f32.vlgmr.msra.gmra.mxu1 %vm635_vm5, %v968_v11 }
 0x34f   : > { %v1585_v13 = vpop.eup %1584  ;;  %1535 = vmatpush3.msk.msra.mxu1 %vm639_vm4, %v1137_v12  ;;  %1536 = vmatprep.mubr.msk.f32.mxu1 %vm1597_vm1, %v1596_v2 }
 0x350   : > { %v1135_v14 = vmul.f32 %v1585_v13, %v1577_v60 }
 0x352   : > { %1537 = vmatmul.mubr.msk.f32.vlgmr.msra.gmra.mxu1 %vm635_vm5, %v1135_v14 }
 0x3a2   : > { %v708_v15 = vpop.f32.mrf.mxu1 }
 0x3a4   : > { %v1508_v16 = vpop.f32.mrf.mxu1 }
 0x40a   : > { %v875_v21 = vpop.f32.mrf.mxu1 }
 0x40b   : > { %1214 = vrot.lane.b32.xlu0 %v875_v21, %s1605_s20 }
 0x40c   : > { %v1518_v22 = vpop.f32.mrf.mxu1 }
 0x40e   : > { %v1042_v23 = vpop.f32.mrf.mxu1 }
 0x40f   : > { %1218 = vrot.lane.b32.xlu1 %v1042_v23, %s1606_s21 }
 0x410   : > { %v1528_v24 = vpop.f32.mrf.mxu1 }
 0x412   : > { %v1209_v25 = vpop.f32.mrf.mxu1 }
 0x413   : > { %1222 = vrot.lane.b32.xlu0 %v1209_v25, %s1607_s22 }
 0x414   : > { %v1538_v26 = vpop.f32.mrf.mxu1 }
 0x47d   : > { %v1215_v27 = vpop.permute.xlu0 %1214 }
 0x47e   : > { %v1225_v28 = vsel %vm543_vm2, %v708_v15, %v1215_v27 }
 0x481   : > { %v1219_v2 = vpop.permute.xlu1 %1218 }
 0x482   : > { %v1227_v29 = vsel %vm1226_vm6, %v1225_v28, %v1219_v2 }
 0x485   : > { %v1223_v30 = vpop.permute.xlu0 %1222 }
 0x486   : > { %v1229_v31 = vsel %vm1228_vm7, %v1227_v29, %v1223_v30 }
 0x487   : > { %1548 = vmatmul.mubr.msk.f32.vlgmr.msra.gmra.mxu0 %vm385_vm0, %v1229_v31 }
 0x547   : > { %v1310_v33 = vpop.f32.mrf.mxu0 }
 0x548   : > { %v1311_v34 = vadd.f32 %v1440_v32, %v1310_v33 }
 0x549   : > { %v1549_v35 = vpop.f32.mrf.mxu0 }
 0x54a   : > { %v1314_v36 = vadd.f32 %v1311_v34, %v1715_v10  ;;  %v1442_v10 = vld [vmem:[%s1834_s8] ss:$0 sm:$0xff] }
 0x54c   : > { %v1318_v37 = vsel %vm1317_vm8, %v1314_v36, 0.0 }
 0x54d   : > { %1319 = vadd.xlane.f32.xlu1 %v1318_v37 }
 0x5d6   : > { %v1320_v38 = vpop.xlane.xlu1 %1319 }
 0x5d7   : > { %v1322_v39 = vmul.f32 0.03125, %v1320_v38 }
 0x5d9   : > { %v1323_v40 = vsub.f32 %v1314_v36, %v1322_v39 }
 0x5db   : > { %v1324_v41 = vmul.f32 %v1323_v40, %v1323_v40 }
 0x5dd   : > { %v1325_v42 = vsel %vm1317_vm8, %v1324_v41, 0.0 }
 0x5de   : > { %1326 = vadd.xlane.f32.xlu0 %v1325_v42 }
 0x667   : > { %v1327_v43 = vpop.xlane.xlu0 %1326 }
 0x668   : > { %v1328_v44 = vmul.f32 0.03125, %v1327_v43 }
 0x66a   : > { %v1329_v45 = vadd.f32 1e-05, %v1328_v44 }
 0x66c   : > { %1586 = vrsqrt.f32 %v1329_v45 }
 0x679   : > { %v1587_v46 = vpop.eup %1586 }
 0x67a   : > { %v1331_v47 = vmul.f32 %v1587_v46, %v1323_v40 }
 0x67c   : > { %v1338_v49 = vmul.f32 %v1442_v10, %v1331_v47 }
 0x67e   : > { %v1345_v50 = vadd.f32 %v1443_v48, %v1338_v49 }
 0x680   : > { %1346 = vst.msk [vmem:[%s371_s12] sm:$0x3f] %vm1317_vm8, %v1345_v50 }
 0x681 PF: > { %s20_s13 = sadd.s32 1, %s1594_s13  }
 0x682   : > { %p17_p4 = scmp.ge.s32.totalorder %s20_s13, 4  }
 0x684   :  { %19 = sbr.rel (!%p17_p4) target bundleno = 1 (0x1), region = 93 }

// kernel: forward.30
= control target key start
LH: loop header
LB: loop body
LE: loop exit
PB: predicated region body
PF: predicated region fallthrough
CT: control target
= control target key end

     0   :  { %s1943_s13 = smov 0   ;;  %s2243_s0 = inlined_call_operand.vmem [shape: f32[2,6,32], index: 0, kind: input, shape index: {}]   ;;  %s2244_s1 = inlined_call_operand.vmem [shape: f32[2,36,32], index: 1, kind: input, shape index: {}]   ;;  %s2245_s2 = inlined_call_operand.vmem [shape: f32[32,32], index: 2, kind: input, shape index: {}]   ;;  %s2246_s3 = inlined_call_operand.vmem [shape: f32[1,32], index: 3, kind: input, shape index: {}]   ;;  %s2247_s4 = inlined_call_operand.vmem [shape: f32[32,64], index: 4, kind: input, shape index: {}]   ;;  %s2248_s5 = inlined_call_operand.vmem [shape: f32[1,64], index: 5, kind: input, shape index: {}]   ;;  %s2249_s6 = inlined_call_operand.vmem [shape: f32[32,32], index: 6, kind: input, shape index: {}]   ;;  %s2250_s7 = inlined_call_operand.vmem [shape: f32[1,32], index: 7, kind: input, shape index: {}]   ;;  %s2251_s8 = inlined_call_operand.vmem [shape: f32[1,32], index: 8, kind: input, shape index: {}]   ;;  %s2252_s9 = inlined_call_operand.vmem [shape: f32[1,32], index: 9, kind: input, shape index: {}]   ;;  %s2253_s10 = inlined_call_operand.vmem [shape: f32[2,6,32], index: 10, kind: output, shape index: {}]  }
   0x1 LB: > { %s1559_s14 = sadd.s32 4294967295, %s1874_s13   ;;  %p1563_p0 = scmp.ge.s32.totalorder %s1874_s13, 1  ;;  %s1874_s13 = sphi %s1943_s13, %s20_s13  }
   0x2   : > { %p321_p1 = scmp.lt.s32.totalorder %s1874_s13, 3 }
   0x4   : > { %p322_p2 = pnand %p1563_p0, %p321_p1 }
   0x5   : > { %p362_p3 = scmp.lt.s32.totalorder (!%p322_p2), %s1559_s14, 1  ;;  %s1878_s23 = smov (!%p322_p2), 120  }
   0x6   : > { %325 = sbr.rel (%p322_p2) target bundleno = 2741 (0xab5), region = 60  ;;  %s1879_s26 = smov (!%p322_p2), 96  }
   0x7   : > { %s1880_s27 = smov (!%p322_p2), 88   ;;  %s1881_s29 = smov (!%p322_p2), 112  }
   0x8   : > { %s1882_s30 = smov (!%p322_p2), 80   ;;  %s1883_s11 = smov (!%p322_p2), 104  }
   0x9   : > { %s1884_s12 = smov (!%p322_p2), 72   ;;  %s1886_s16 = smov (!%p322_p2), 8  }
   0xb   : > { %v469_v0 = vld [vmem:[%s2247_s4 + $0x18] sm:$0xff]  ;;  %v1876_v1 = vmov 0.0   ;;  %v468_v2 = vld [vmem:[%s2247_s4 + $0x10] sm:$0xff]  ;;  %vm1877_vm0 = vmmov 0   ;;  %s2255_s14 = smov (!%p362_p3, %s1559_s14), 1  ;;  %v467_v5 = vld [vmem:[%s2247_s4 + $0x8] sm:$0xff] }
   0xc   : > { %1691 = vmatprep.subr.mxu1 %v1876_v1  ;;  %1699 = vmatprep.mubr.msk.f32.mxu1 %vm1877_vm0, %v1876_v1  ;;  %v384_v3 = vld [vmem:[%s2245_s2 + $0x18] sm:$0xff]  ;;  %v383_v4 = vld [vmem:[%s2245_s2 + $0x10] sm:$0xff]  ;;  %s1829_s25 = smul.u32 40, %s2255_s14  ;;  %v382_v6 = vld [vmem:[%s2245_s2 + $0x8] sm:$0xff]  ;;  %s1564_s28 = sshll.u32 %s2255_s14, 3  ;;  %vm392_vm1 = vcmask 261120  }
   0xd   : > { %1692 = vmatpush3.msra.mxu1 %v469_v0  ;;  %1680 = vmatprep.subr.mxu0 %v1876_v1  ;;  %v466_v7 = vld [vmem:[%s2247_s4] sm:$0xff]  ;;  %s365_s15 = scalar_lea.vmem %s2243_s0, %s1564_s28  ;;  %vm582_vm2 = vcmask 64512   ;;  %vm672_vm3 = vcmask 291840   ;;  %vm702_vm4 = vcmask 1043456   ;;  %vm698_vm5 = vcmask 293888   ;;  %s374_s17 = scalar_lea.vmem %s2253_s10, %s1564_s28 }
   0xe   : > { %1693 = vmatprep.subr.mxu1 %v1876_v1  ;;  %1681 = vmatpush3.msra.mxu0 %v384_v3  ;;  %s370_s18 = scalar_lea.vmem %s2244_s1, %s1829_s25  ;;  %v381_v8 = vld [vmem:[%s2245_s2] sm:$0xff]  ;;  %s1887_s25 = smov 24   ;;  %vm1373_vm6 = vcmask 130048   ;;  %vm1375_vm7 = vcmask 195584   ;;  %vm1464_vm8 = vcmask 259072  }
   0xf   : > { %1694 = vmatpush3.msra.mxu1 %v468_v2  ;;  %1682 = vmatprep.subr.mxu0 %v1876_v1  ;;  %v376_v9 = vld [vmem:[%s370_s18] sm:$0xff]  ;;  %v377_v11 = vld [vmem:[%s370_s18 + $0x8] sm:$0xff]  ;;  %v378_v12 = vld [vmem:[%s370_s18 + $0x10] sm:$0xff] }
  0x10   : > { %1695 = vmatprep.subr.mxu1 %v1876_v1  ;;  %1683 = vmatpush3.msra.mxu0 %v383_v4  ;;  %v1997_v10 = vld [vmem:[%s365_s15] sm:$0x3f]  ;;  %v379_v13 = vld [vmem:[%s370_s18 + $0x18] sm:$0xff]  ;;  %s1885_s15 = smov 16  }
  0x11   : > { %1696 = vmatpush3.msra.mxu1 %v467_v5  ;;  %1684 = vmatprep.subr.mxu0 %v1876_v1  ;;  %v380_v14 = vld [vmem:[%s370_s18 + $0x20] sm:$0xf] }
  0x12   : > { %1697 = vmatprep.subr.mxu1 %v1876_v1  ;;  %1685 = vmatpush3.msra.mxu0 %v382_v6  ;;  %v1569_v21 = vld [vmem:[%s2248_s5] ss:$0 sm:$0xff] }
  0x13   : > { %1698 = vmatpush3.msra.mxu1 %v466_v7  ;;  %1686 = vmatprep.subr.mxu0 %v1876_v1  ;;  %v1567_v27 = vld [vmem:[%s2246_s3] ss:$0 sm:$0xff] }
  0x14   : > { %1700 = vmatmul.mubr.msk.f32.vlgmr.msra.gmra.mxu1 %vm392_vm1, %v376_v9  ;;  %1687 = vmatpush3.msra.mxu0 %v381_v8 }
  0x15   : > { %1702 = vmatprep.mubr.msk.f32.mxu1 %vm1877_vm0, %v1876_v1  ;;  %1688 = vmatprep.mubr.msk.f32.mxu0 %vm1877_vm0, %v1876_v1 }
  0x16   : > { %1689 = vmatmul.mubr.msk.f32.vlgmr.msra.gmra.mxu0 %vm392_vm1, %v1997_v10  ;;  %1714 = vmatprep.subr.mxu0 %v1876_v1 }
  0x17   : > { %1724 = vmatprep.mubr.msk.f32.mxu0 %vm1877_vm0, %v1876_v1  ;;  %1727 = vmatprep.subr.mxu1 %v1876_v1 }
  0x18   : > { %1703 = vmatmul.mubr.msk.f32.gmra.mxu1 %vm392_vm1, %v377_v11 }
  0x19   : > { %1705 = vmatprep.mubr.msk.f32.mxu1 %vm1877_vm0, %v1876_v1 }
  0x1c   : > { %1706 = vmatmul.mubr.msk.f32.gmra.mxu1 %vm392_vm1, %v378_v12 }
  0x1d   : > { %1708 = vmatprep.mubr.msk.f32.mxu1 %vm1877_vm0, %v1876_v1 }
  0x20   : > { %1709 = vmatmul.mubr.msk.f32.gmra.mxu1 %vm392_vm1, %v379_v13 }
  0x21   : > { %1711 = vmatprep.mubr.msk.f32.mxu1 %vm1877_vm0, %v1876_v1 }
  0x24   : > { %1712 = vmatmul.mubr.msk.f32.gmra.mxu1 %vm392_vm1, %v380_v14 }
  0x25   : > { %1737 = vmatprep.mubr.msk.f32.mxu1 %vm1877_vm0, %v1876_v1 }
  0xd4   : > { %v558_v15 = vpop.f32.mrf.mxu1 }
  0xd5   : > { %v2049_v34 = vadd.f32 %v1569_v21, %v558_v15 }
  0xd6   : > { %v1701_v16 = vpop.f32.mrf.mxu1  ;;  %v462_v17 = vpop.f32.mrf.mxu0 }
  0xd7   : > { %v2034_v30 = vadd.f32 %v1567_v27, %v462_v17 }
  0xd8   : > { %v563_v18 = vpop.f32.mrf.mxu1  ;;  %v1690_v19 = vpop.f32.mrf.mxu0 }
  0xd9   : > { %v2028_v26 = vadd.f32 %v1569_v21, %v563_v18 }
  0xda   : > { %v1704_v20 = vpop.f32.mrf.mxu1 }
  0xdc   : > { %v568_v22 = vpop.f32.mrf.mxu1 }
  0xdd   : > { %v2025_v23 = vadd.f32 %v1569_v21, %v568_v22 }
  0xde   : > { %v1707_v24 = vpop.f32.mrf.mxu1 }
  0xdf   : > { %781 = vrot.lane.b32.xlu1 %v2025_v23, %s1878_s23 }
  0xe0   : > { %v573_v25 = vpop.f32.mrf.mxu1 }
  0xe1   : > { %v2043_v33 = vadd.f32 %v1569_v21, %v573_v25 }
  0xe2   : > { %v1710_v28 = vpop.f32.mrf.mxu1 }
  0xe3   : > { %779 = vrot.lane.b32.xlu1 %v2028_v26, %s1878_s23 }
  0xe4   : > { %v578_v29 = vpop.f32.mrf.mxu1 }
  0xe5   : > { %v2036_v31 = vadd.f32 %v1569_v21, %v578_v29 }
  0xe6   : > { %v1713_v32 = vpop.f32.mrf.mxu1 }
  0xe7   : > { %785 = vrot.lane.b32.xlu0 %v2036_v31, %s1878_s23  ;;  %1715 = vmatpush3.xpose.msk.msra.mxu0 %vm582_vm2, %v2036_v31 }
  0xe8   : > { %1716 = vmatprep.subr.mxu0 %v1876_v1  ;;  %775 = vrot.lane.b32.xlu1 %v2034_v30, %s1878_s23 }
  0xeb   : > { %783 = vrot.lane.b32.xlu0 %v2043_v33, %s1878_s23  ;;  %1717 = vmatpush3.xpose.msk.msra.mxu0 %vm582_vm2, %v2043_v33 }
  0xec   : > { %1718 = vmatprep.subr.mxu0 %v1876_v1 }
  0xef   : > { %777 = vrot.lane.b32.xlu0 %v2049_v34, %s1878_s23  ;;  %1719 = vmatpush3.xpose.msk.msra.mxu0 %vm582_vm2, %v2025_v23 }
  0xf0   : > { %1720 = vmatprep.subr.mxu0 %v1876_v1 }
  0xf3   : > { %1721 = vmatpush3.xpose.msk.msra.mxu0 %vm582_vm2, %v2028_v26 }
  0xf4   : > { %1722 = vmatprep.subr.mxu0 %v1876_v1 }
  0xf7   : > { %1723 = vmatpush3.xpose.msk.msra.mxu0 %vm582_vm2, %v2049_v34 }
  0xf8   : > { %1740 = vmatprep.subr.mxu0 %v1876_v1 }
  0xfa   : > { %1725 = vmatmul.mubr.msk.f32.vlgmr.msra.gmra.mxu0 %vm582_vm2, %v2034_v30 }
  0xfb   : > { %1750 = vmatprep.mubr.msk.f32.mxu0 %vm1877_vm0, %v1876_v1 }
 0x151   : > { %v782_v37 = vpop.permute.xlu1 %781 }
 0x155   : > { %v780_v38 = vpop.permute.xlu1 %779 }
 0x159   : > { %v786_v35 = vpop.permute.xlu0 %785 }
 0x15a   : > { %1741 = vmatpush3.xpose.msk.msra.mxu0 %vm582_vm2, %v786_v35  ;;  %v776_v40 = vpop.permute.xlu1 %775 }
 0x15b   : > { %1742 = vmatprep.subr.mxu0 %v1876_v1 }
 0x15d   : > { %v784_v36 = vpop.permute.xlu0 %783 }
 0x15e   : > { %1743 = vmatpush3.xpose.msk.msra.mxu0 %vm582_vm2, %v784_v36 }
 0x15f   : > { %1744 = vmatprep.subr.mxu0 %v1876_v1 }
 0x161   : > { %v778_v39 = vpop.permute.xlu0 %777 }
 0x162   : > { %1745 = vmatpush3.xpose.msk.msra.mxu0 %vm582_vm2, %v782_v37 }
 0x163   : > { %1746 = vmatprep.subr.mxu0 %v1876_v1 }
 0x166   : > { %1747 = vmatpush3.xpose.msk.msra.mxu0 %vm582_vm2, %v780_v38 }
 0x167   : > { %1748 = vmatprep.subr.mxu0 %v1876_v1 }
 0x16a   : > { %1749 = vmatpush3.xpose.msk.msra.mxu0 %vm582_vm2, %v778_v39 }
 0x16b   : > { %1779 = vmatprep.subr.mxu0 %v1876_v1 }
 0x16d   : > { %1751 = vmatmul.mubr.msk.f32.vlgmr.msra.gmra.mxu0 %vm582_vm2, %v776_v40 }
 0x16e   : > { %1789 = vmatprep.mubr.msk.f32.mxu0 %vm1877_vm0, %v1876_v1 }
 0x1ba   : > { %v667_v41 = vpop.f32.mrf.mxu0 }
 0x1bb   : > { %v671_v42 = vmul.f32 0.35355338, %v667_v41 }
 0x1bc   : > { %v1726_v43 = vpop.f32.mrf.mxu0 }
 0x1bd   : > { %v673_v44 = vsel %vm672_vm3, %v671_v42, -inf }
 0x1be   : > { %674 = vmax.xlane.f32.xlu0 %v673_v44 }
 0x1d4   : > { %690 = vrot.lane.b32.xlu0 %v2043_v33, %s1879_s26 }
 0x1d8   : > { %684 = vrot.lane.b32.xlu0 %v2049_v34, %s1879_s26 }
 0x1dc   : > { %887 = vrot.lane.b32.xlu0 %v2043_v33, %s1880_s27 }
 0x22d   : > { %v865_v45 = vpop.f32.mrf.mxu0 }
 0x22e   : > { %v869_v46 = vmul.f32 0.35355338, %v865_v45 }
 0x22f   : > { %v1752_v47 = vpop.f32.mrf.mxu0 }
 0x230   : > { %v870_v48 = vsel %vm672_vm3, %v869_v46, -inf }
 0x231   : > { %871 = vmax.xlane.f32.xlu1 %v870_v48 }
 0x242   : > { %692 = vrot.lane.b32.xlu1 %v2036_v31, %s1879_s26 }
 0x246   : > { %688 = vrot.lane.b32.xlu1 %v2025_v23, %s1879_s26 }
 0x247   : > { %v675_v49 = vpop.xlane.xlu0 %674 }
 0x248   : > { %v676_v50 = vsub.f32 %v671_v42, %v675_v49 }
 0x24a   : > { %v677_v51 = vmul.f32 1.442695, %v676_v50  ;;  %686 = vrot.lane.b32.xlu1 %v2028_v26, %s1879_s26 }
 0x24b   : > { %v691_v58 = vpop.permute.xlu0 %690 }
 0x24c   : > { %1850 = vpow2.f32 %v677_v51 }
 0x24e   : > { %889 = vrot.lane.b32.xlu1 %v2036_v31, %s1880_s27 }
 0x24f   : > { %v685_v61 = vpop.permute.xlu0 %684 }
 0x252   : > { %885 = vrot.lane.b32.xlu1 %v2025_v23, %s1880_s27 }
 0x253   : > { %v888_v0 = vpop.permute.xlu0 %887 }
 0x256   : > { %881 = vrot.lane.b32.xlu1 %v2049_v34, %s1880_s27 }
 0x259   : > { %v1851_v52 = vpop.eup %1850 }
 0x25a   : > { %978 = vrot.lane.b32.xlu1 %v2043_v33, %s1881_s29  ;;  %v679_v53 = vsel %vm672_vm3, %v1851_v52, 0.0 }
 0x25b   : > { %680 = vadd.xlane.f32.xlu0 %v679_v53 }
 0x25e   : > { %974 = vrot.lane.b32.xlu1 %v2028_v26, %s1881_s29 }
 0x262   : > { %970 = vrot.lane.b32.xlu1 %v2034_v30, %s1881_s29 }
 0x266   : > { %1082 = vrot.lane.b32.xlu1 %v2043_v33, %s1882_s30 }
 0x26a   : > { %1078 = vrot.lane.b32.xlu1 %v2028_v26, %s1882_s30 }
 0x26e   : > { %1175 = vrot.lane.b32.xlu1 %v2036_v31, %s1883_s11 }
 0x271   : > { %883 = vrot.lane.b32.xlu0 %v2028_v26, %s1880_s27 }
 0x2ba   : > { %v872_v54 = vpop.xlane.xlu1 %871 }
 0x2bb   : > { %v873_v55 = vsub.f32 %v869_v46, %v872_v54 }
 0x2bd   : > { %v874_v56 = vmul.f32 1.442695, %v873_v55 }
 0x2be   : > { %v693_v57 = vpop.permute.xlu1 %692 }
 0x2bf   : > { %1852 = vpow2.f32 %v874_v56  ;;  %1728 = vmatpush3.msk.msra.mxu1 %vm702_vm4, %v693_v57 }
 0x2c0   : > { %1729 = vmatprep.subr.mxu1 %v1876_v1 }
 0x2c1   : > { %1730 = vmatpush3.msra.mxu1 %v691_v58 }
 0x2c2   : > { %1731 = vmatprep.subr.mxu1 %v1876_v1  ;;  %v689_v59 = vpop.permute.xlu1 %688 }
 0x2c3   : > { %1732 = vmatpush3.msra.mxu1 %v689_v59 }
 0x2c4   : > { %1733 = vmatprep.subr.mxu1 %v1876_v1 }
 0x2c6   : > { %v687_v60 = vpop.permute.xlu1 %686 }
 0x2c7   : > { %1734 = vmatpush3.msra.mxu1 %v687_v60 }
 0x2c8   : > { %1735 = vmatprep.subr.mxu1 %v1876_v1 }
 0x2c9   : > { %1736 = vmatpush3.msra.mxu1 %v685_v61 }
 0x2ca   : > { %1753 = vmatprep.subr.mxu1 %v1876_v1  ;;  %v890_v3 = vpop.permute.xlu1 %889 }
 0x2cc   : > { %v1853_v62 = vpop.eup %1852 }
 0x2cd   : > { %v876_v63 = vsel %vm672_vm3, %v1853_v62, 0.0 }
 0x2ce   : > { %877 = vadd.xlane.f32.xlu0 %v876_v63  ;;  %v886_v6 = vpop.permute.xlu1 %885 }
 0x2d2   : > { %v882_v8 = vpop.permute.xlu1 %881 }
 0x2d6   : > { %v979_v14 = vpop.permute.xlu1 %978 }
 0x2da   : > { %v975_v16 = vpop.permute.xlu1 %974 }
 0x2de   : > { %v971_v18 = vpop.permute.xlu1 %970 }
 0x2e2   : > { %v1083_v36 = vpop.permute.xlu1 %1082 }
 0x2e4   : > { %v681_v2 = vpop.xlane.xlu0 %680  ;;  %980 = vrot.lane.b32.xlu0 %v2036_v31, %s1881_s29 }
 0x2e5   : > { %1854 = vrcp.f32 %v681_v2 }
 0x2e8   : > { %976 = vrot.lane.b32.xlu0 %v2025_v23, %s1881_s29  ;;  %v884_v7 = vpop.permute.xlu0 %883 }
 0x2ec   : > { %972 = vrot.lane.b32.xlu0 %v2049_v34, %s1881_s29 }
 0x2f2   : > { %v1855_v4 = vpop.eup %1854 }
 0x2f3   : > { %v683_v5 = vmul.f32 %v1855_v4, %v1851_v52  ;;  %v1378_v4 = vld [vmem:[%s2249_s6 + $0x8] sm:$0xff] }
 0x2f5   : > { %1738 = vmatmul.mubr.msk.f32.vlgmr.msra.gmra.mxu1 %vm698_vm5, %v683_v5  ;;  %v1377_v5 = vld [vmem:[%s2249_s6] sm:$0xff] }
 0x2f6   : > { %1754 = vmatpush3.msk.msra.mxu1 %vm702_vm4, %v890_v3  ;;  %1763 = vmatprep.mubr.msk.f32.mxu1 %vm1877_vm0, %v1876_v1  ;;  %v1379_v3 = vld [vmem:[%s2249_s6 + $0x10] sm:$0xff] }
 0x2f7   : > { %1755 = vmatprep.subr.mxu1 %v1876_v1 }
 0x2f8   : > { %1756 = vmatpush3.msra.mxu1 %v888_v0 }
 0x2f9   : > { %1757 = vmatprep.subr.mxu1 %v1876_v1 }
 0x2fa   : > { %1758 = vmatpush3.msra.mxu1 %v886_v6 }
 0x2fb   : > { %1759 = vmatprep.subr.mxu1 %v1876_v1 }
 0x2fc   : > { %1760 = vmatpush3.msra.mxu1 %v884_v7 }
 0x2fd   : > { %1761 = vmatprep.subr.mxu1 %v1876_v1 }
 0x2fe   : > { %1762 = vmatpush3.msra.mxu1 %v882_v8 }
 0x2ff   : > { %1766 = vmatprep.subr.mxu1 %v1876_v1 }
 0x357   : > { %v878_v9 = vpop.xlane.xlu0 %877 }
 0x358   : > { %1856 = vrcp.f32 %v878_v9 }
 0x35b   : > { %v981_v13 = vpop.permute.xlu0 %980 }
 0x35f   : > { %v977_v15 = vpop.permute.xlu0 %976 }
 0x363   : > { %v973_v17 = vpop.permute.xlu0 %972 }
 0x365   : > { %v1857_v11 = vpop.eup %1856 }
 0x366   : > { %v880_v12 = vmul.f32 %v1857_v11, %v1853_v62 }
 0x368   : > { %1764 = vmatmul.mubr.msk.f32.vlgmr.msra.gmra.mxu1 %vm698_vm5, %v880_v12 }
 0x369   : > { %1767 = vmatpush3.xpose.msk.msra.mxu1 %vm582_vm2, %v981_v13  ;;  %1776 = vmatprep.mubr.msk.f32.mxu1 %vm1877_vm0, %v1876_v1 }
 0x36a   : > { %1768 = vmatprep.subr.mxu1 %v1876_v1 }
 0x36d   : > { %1769 = vmatpush3.xpose.msk.msra.mxu1 %vm582_vm2, %v979_v14 }
 0x36e   : > { %1770 = vmatprep.subr.mxu1 %v1876_v1 }
 0x371   : > { %1771 = vmatpush3.xpose.msk.msra.mxu1 %vm582_vm2, %v977_v15 }
 0x372   : > { %1772 = vmatprep.subr.mxu1 %v1876_v1 }
 0x375   : > { %1773 = vmatpush3.xpose.msk.msra.mxu1 %vm582_vm2, %v975_v16 }
 0x376   : > { %1774 = vmatprep.subr.mxu1 %v1876_v1 }
 0x379   : > { %1775 = vmatpush3.xpose.msk.msra.mxu1 %vm582_vm2, %v973_v17 }
 0x37a   : > { %1805 = vmatprep.subr.mxu1 %v1876_v1 }
 0x37c   : > { %1777 = vmatmul.mubr.msk.f32.vlgmr.msra.gmra.mxu1 %vm582_vm2, %v971_v18 }
 0x37d   : > { %1815 = vmatprep.mubr.msk.f32.mxu1 %vm1877_vm0, %v1876_v1 }
 0x3b5   : > { %v2141_v19 = vpop.f32.mrf.mxu1 }
 0x3b7   : > { %v1739_v20 = vpop.f32.mrf.mxu1 }
 0x428   : > { %v2143_v21 = vpop.f32.mrf.mxu1 }
 0x42a   : > { %v1765_v22 = vpop.f32.mrf.mxu1 }
 0x43c   : > { %v1060_v24 = vpop.f32.mrf.mxu1 }
 0x43d   : > { %v1064_v25 = vmul.f32 0.35355338, %v1060_v24 }
 0x43e   : > { %v1778_v27 = vpop.f32.mrf.mxu1 }
 0x43f   : > { %v1065_v28 = vsel %vm672_vm3, %v1064_v25, -inf }
 0x440   : > { %1066 = vmax.xlane.f32.xlu0 %v1065_v28 }
 0x456   : > { %1084 = vrot.lane.b32.xlu0 %v2036_v31, %s1882_s30 }
 0x45a   : > { %1080 = vrot.lane.b32.xlu0 %v2025_v23, %s1882_s30 }
 0x45e   : > { %1076 = vrot.lane.b32.xlu0 %v2049_v34, %s1882_s30 }
 0x462   : > { %1173 = vrot.lane.b32.xlu0 %v2043_v33, %s1883_s11 }
 0x466   : > { %1169 = vrot.lane.b32.xlu0 %v2028_v26, %s1883_s11 }
 0x46a   : > { %1165 = vrot.lane.b32.xlu0 %v2034_v30, %s1883_s11  ;;  %v1079_v30 = vpop.permute.xlu1 %1078 }
 0x46e   : > { %1279 = vrot.lane.b32.xlu0 %v2036_v31, %s1884_s12  ;;  %v1176_v45 = vpop.permute.xlu1 %1175 }
 0x4c9   : > { %v1067_v29 = vpop.xlane.xlu0 %1066 }
 0x4ca   : > { %v1068_v32 = vsub.f32 %v1064_v25, %v1067_v29 }
 0x4cc   : > { %v1069_v35 = vmul.f32 1.442695, %v1068_v32 }
 0x4cd   : > { %v1085_v37 = vpop.permute.xlu0 %1084 }
 0x4ce   : > { %1858 = vpow2.f32 %v1069_v35  ;;  %1780 = vmatpush3.msk.msra.mxu0 %vm702_vm4, %v1085_v37 }
 0x4cf   : > { %1781 = vmatprep.subr.mxu0 %v1876_v1 }
 0x4d0   : > { %1782 = vmatpush3.msra.mxu0 %v1083_v36  ;;  %v1610_v36 = vld [vmem:[%s2252_s9] ss:$0 sm:$0xff] }
 0x4d1   : > { %v1081_v38 = vpop.permute.xlu0 %1080  ;;  %1783 = vmatprep.subr.mxu0 %v1876_v1 }
 0x4d2   : > { %1784 = vmatpush3.msra.mxu0 %v1081_v38 }
 0x4d3   : > { %1785 = vmatprep.subr.mxu0 %v1876_v1 }
 0x4d4   : > { %1786 = vmatpush3.msra.mxu0 %v1079_v30 }
 0x4d5   : > { %v1077_v31 = vpop.permute.xlu0 %1076  ;;  %1787 = vmatprep.subr.mxu0 %v1876_v1 }
 0x4d6   : > { %1788 = vmatpush3.msra.mxu0 %v1077_v31 }
 0x4d7   : > { %1792 = vmatprep.subr.mxu0 %v1876_v1 }
 0x4d9   : > { %v1174_v39 = vpop.permute.xlu0 %1173 }
 0x4db   : > { %v1859_v40 = vpop.eup %1858 }
 0x4dc   : > { %v1071_v41 = vsel %vm672_vm3, %v1859_v40, 0.0 }
 0x4dd   : > { %1072 = vadd.xlane.f32.xlu1 %v1071_v41  ;;  %v1170_v42 = vpop.permute.xlu0 %1169 }
 0x4e1   : > { %v1166_v43 = vpop.permute.xlu0 %1165 }
 0x4e5   : > { %v1280_v44 = vpop.permute.xlu0 %1279 }
 0x4e6   : > { %1806 = vmatpush3.msk.msra.mxu1 %vm702_vm4, %v1280_v44 }
 0x4e7   : > { %1807 = vmatprep.subr.mxu1 %v1876_v1 }
 0x4ee   : > { %1171 = vrot.lane.b32.xlu1 %v2025_v23, %s1883_s11 }
 0x4f2   : > { %1167 = vrot.lane.b32.xlu1 %v2049_v34, %s1883_s11 }
 0x566   : > { %v1073_v46 = vpop.xlane.xlu1 %1072 }
 0x567   : > { %1860 = vrcp.f32 %v1073_v46 }
 0x56a   : > { %v1172_v49 = vpop.permute.xlu1 %1171 }
 0x56e   : > { %v1168_v50 = vpop.permute.xlu1 %1167 }
 0x574   : > { %v1861_v47 = vpop.eup %1860 }
 0x575   : > { %v1075_v48 = vmul.f32 %v1861_v47, %v1859_v40 }
 0x577   : > { %1790 = vmatmul.mubr.msk.f32.vlgmr.msra.gmra.mxu0 %vm698_vm5, %v1075_v48 }
 0x578   : > { %1793 = vmatpush3.xpose.msk.msra.mxu0 %vm582_vm2, %v1176_v45  ;;  %1802 = vmatprep.mubr.msk.f32.mxu0 %vm1877_vm0, %v1876_v1 }
 0x579   : > { %1794 = vmatprep.subr.mxu0 %v1876_v1 }
 0x57c   : > { %1795 = vmatpush3.xpose.msk.msra.mxu0 %vm582_vm2, %v1174_v39 }
 0x57d   : > { %1796 = vmatprep.subr.mxu0 %v1876_v1 }
 0x580   : > { %1797 = vmatpush3.xpose.msk.msra.mxu0 %vm582_vm2, %v1172_v49 }
 0x581   : > { %1798 = vmatprep.subr.mxu0 %v1876_v1 }
 0x584   : > { %1799 = vmatpush3.xpose.msk.msra.mxu0 %vm582_vm2, %v1170_v42 }
 0x585   : > { %1800 = vmatprep.subr.mxu0 %v1876_v1 }
 0x588   : > { %1801 = vmatpush3.xpose.msk.msra.mxu0 %vm582_vm2, %v1168_v50 }
 0x58b   : > { %1803 = vmatmul.mubr.msk.f32.vlgmr.msra.gmra.mxu0 %vm582_vm2, %v1166_v43 }
 0x637   : > { %v1161_v51 = vpop.f32.mrf.mxu0 }
 0x639   : > { %v1791_v52 = vpop.f32.mrf.mxu0 }
 0x64b   : > { %v1255_v53 = vpop.f32.mrf.mxu0 }
 0x64c   : > { %v1259_v54 = vmul.f32 0.35355338, %v1255_v53 }
 0x64d   : > { %v1804_v55 = vpop.f32.mrf.mxu0 }
 0x64e   : > { %v1260_v56 = vsel %vm672_vm3, %v1259_v54, -inf }
 0x64f   : > { %1261 = vmax.xlane.f32.xlu1 %v1260_v56 }
 0x660   : > { %1277 = vrot.lane.b32.xlu1 %v2043_v33, %s1884_s12 }
 0x664   : > { %1275 = vrot.lane.b32.xlu1 %v2025_v23, %s1884_s12 }
 0x668   : > { %1271 = vrot.lane.b32.xlu1 %v2049_v34, %s1884_s12 }
 0x66c   : > { %1365 = vrot.lane.b32.xlu1 %v1161_v51, %s1885_s15 }
 0x6d8   : > { %v1262_v57 = vpop.xlane.xlu1 %1261 }
 0x6d9   : > { %v1263_v58 = vsub.f32 %v1259_v54, %v1262_v57 }
 0x6db   : > { %v1264_v59 = vmul.f32 1.442695, %v1263_v58 }
 0x6dc   : > { %v1278_v60 = vpop.permute.xlu1 %1277 }
 0x6dd   : > { %1862 = vpow2.f32 %v1264_v59  ;;  %1808 = vmatpush3.msra.mxu1 %v1278_v60 }
 0x6de   : > { %1809 = vmatprep.subr.mxu1 %v1876_v1 }
 0x6e0   : > { %v1276_v61 = vpop.permute.xlu1 %1275 }
 0x6e1   : > { %1810 = vmatpush3.msra.mxu1 %v1276_v61 }
 0x6e2   : > { %1811 = vmatprep.subr.mxu1 %v1876_v1 }
 0x6e4   : > { %v1272_v63 = vpop.permute.xlu1 %1271 }
 0x6e8   : > { %v1366_v11 = vpop.permute.xlu1 %1365 }
 0x6ea   : > { %v1863_v33 = vpop.eup %1862 }
 0x6eb   : > { %v1266_v23 = vsel %vm672_vm3, %v1863_v33, 0.0 }
 0x6ec   : > { %1267 = vadd.xlane.f32.xlu0 %v1266_v23 }
 0x702   : > { %1273 = vrot.lane.b32.xlu0 %v2028_v26, %s1884_s12  ;;  %v1380_v26 = vld [vmem:[%s2249_s6 + $0x18] sm:$0xff] }
 0x706   : > { %1361 = vrot.lane.b32.xlu0 %v2143_v21, %s1886_s16 }
 0x775   : > { %v1268_v34 = vpop.xlane.xlu0 %1267 }
 0x776   : > { %1864 = vrcp.f32 %v1268_v34 }
 0x779   : > { %v1274_v62 = vpop.permute.xlu0 %1273 }
 0x77a   : > { %1812 = vmatpush3.msra.mxu1 %v1274_v62 }
 0x77b   : > { %1813 = vmatprep.subr.mxu1 %v1876_v1 }
 0x77c   : > { %1814 = vmatpush3.msra.mxu1 %v1272_v63 }
 0x77d   : > { %1818 = vmatprep.subr.mxu1 %v1876_v1  ;;  %v1362_v8 = vpop.permute.xlu0 %1361 }
 0x77e   : > { %v1372_v9 = vsel %vm582_vm2, %v2141_v19, %v1362_v8 }
 0x77f   : > { %v1374_v13 = vsel %vm1373_vm6, %v1372_v9, %v1366_v11 }
 0x783   : > { %v1865_v0 = vpop.eup %1864 }
 0x784   : > { %v1270_v2 = vmul.f32 %v1865_v0, %v1863_v33 }
 0x786   : > { %1816 = vmatmul.mubr.msk.f32.vlgmr.msra.gmra.mxu1 %vm698_vm5, %v1270_v2 }
 0x787   : > { %1826 = vmatprep.mubr.msk.f32.mxu1 %vm1877_vm0, %v1876_v1  ;;  %1819 = vmatpush3.msra.mxu1 %v1380_v26 }
 0x788   : > { %1820 = vmatprep.subr.mxu1 %v1876_v1 }
 0x789   : > { %1821 = vmatpush3.msra.mxu1 %v1379_v3 }
 0x78a   : > { %1822 = vmatprep.subr.mxu1 %v1876_v1 }
 0x78b   : > { %1823 = vmatpush3.msra.mxu1 %v1378_v4 }
 0x78c   : > { %1824 = vmatprep.subr.mxu1 %v1876_v1  ;;  %v1607_v1 = vld [vmem:[%s2250_s7] ss:$0 sm:$0xff] }
 0x78d   : > { %1825 = vmatpush3.msra.mxu1 %v1377_v5 }
 0x846   : > { %v1356_v6 = vpop.f32.mrf.mxu1 }
 0x847   : > { %1369 = vrot.lane.b32.xlu0 %v1356_v6, %s1887_s25 }
 0x848   : > { %v1817_v7 = vpop.f32.mrf.mxu1 }
 0x8b9   : > { %v1370_v12 = vpop.permute.xlu0 %1369 }
 0x8ba   : > { %v1376_v14 = vsel %vm1375_vm7, %v1374_v13, %v1370_v12 }
 0x8bb   : > { %1827 = vmatmul.mubr.msk.f32.vlgmr.msra.gmra.mxu1 %vm392_vm1, %v1376_v14 }
 0x97b   : > { %v1457_v15 = vpop.f32.mrf.mxu1 }
 0x97c   : > { %v1458_v16 = vadd.f32 %v1607_v1, %v1457_v15 }
 0x97d   : > { %v1828_v17 = vpop.f32.mrf.mxu1 }
 0x97e   : > { %v1461_v18 = vadd.f32 %v1458_v16, %v1997_v10  ;;  %v1609_v10 = vld [vmem:[%s2251_s8] ss:$0 sm:$0xff] }
 0x980   : > { %v1465_v19 = vsel %vm1464_vm8, %v1461_v18, 0.0 }
 0x981   : > { %1466 = vadd.xlane.f32.xlu1 %v1465_v19 }
 0xa0a   : > { %v1467_v20 = vpop.xlane.xlu1 %1466 }
 0xa0b   : > { %v1469_v21 = vmul.f32 0.03125, %v1467_v20 }
 0xa0d   : > { %v1470_v22 = vsub.f32 %v1461_v18, %v1469_v21 }
 0xa0f   : > { %v1471_v24 = vmul.f32 %v1470_v22, %v1470_v22 }
 0xa11   : > { %v1472_v25 = vsel %vm1464_vm8, %v1471_v24, 0.0 }
 0xa12   : > { %1473 = vadd.xlane.f32.xlu0 %v1472_v25 }
 0xa9b   : > { %v1474_v27 = vpop.xlane.xlu0 %1473 }
 0xa9c   : > { %v1475_v28 = vmul.f32 0.03125, %v1474_v27 }
 0xa9e   : > { %v1476_v29 = vadd.f32 1e-05, %v1475_v28 }
 0xaa0   : > { %1866 = vrsqrt.f32 %v1476_v29 }
 0xaad   : > { %v1867_v32 = vpop.eup %1866 }
 0xaae   : > { %v1478_v35 = vmul.f32 %v1867_v32, %v1470_v22 }
 0xab0   : > { %v1485_v37 = vmul.f32 %v1609_v10, %v1478_v35 }
 0xab2   : > { %v1492_v38 = vadd.f32 %v1610_v36, %v1485_v37 }
 0xab4   : > { %1493 = vst.msk [vmem:[%s374_s17] sm:$0x3f] %vm1464_vm8, %v1492_v38 }
 0xab5 PF: > { %s20_s13 = sadd.s32 1, %s1874_s13  }
 0xab6   : > { %p17_p4 = scmp.ge.s32.totalorder %s20_s13, 4  }
 0xab8   :  { %19 = sbr.rel (!%p17_p4) target bundleno = 1 (0x1), region = 93 }

</bundles_post_ra>
